<compile_context>
chip_gen: v5e
topology: v5e:2x2
jax: 0.10.0
libtpu: 0.0.40
codegen_flags: <defaults>
</compile_context>

<pallas_src>
import math
from functools import partial

import jax
import jax.numpy as jnp
from jax.experimental import pallas as pl
from jax.experimental.pallas import tpu as pltpu  # noqa: F401  (TPU backend)

EPS = 1e-5                      # torch nn.LayerNorm default eps
GAIN_RELU = math.sqrt(2.0)      # torch nn.init.calculate_gain('relu')
_INV_SQRT2 = 1.0 / math.sqrt(2.0)


def _gelu(x):
    # exact GELU (matches torch nn.GELU default, erf-based)
    return 0.5 * x * (1.0 + jax.lax.erf(x * _INV_SQRT2))


def _layer_norm(x, g, b):
    mu = jnp.mean(x, axis=-1, keepdims=True)
    var = jnp.mean(jnp.square(x - mu), axis=-1, keepdims=True)
    return (x - mu) * jax.lax.rsqrt(var + EPS) * g + b


# --------------------------- fused forward kernel ---------------------------

def _fused_kernel(
    x0_ref, pos_ref, graph_ref,
    se_g_ref, se_b_ref, se_w_ref, se_bias_ref,
    ln_g_ref, ln_b_ref,
    wqkv_ref, bqkv_ref, wp_ref, bp_ref,
    ln1_g_ref, ln1_b_ref, ln2_g_ref, ln2_b_ref,
    fc1_w_ref, fc1_b_ref, fc2_w_ref, fc2_b_ref,
    h1_w_ref, h1_b_ref, hln_g_ref, hln_b_ref, h2_w_ref, h2_b_ref,
    out_ref, att_ref,
    *, B, L, n_head, hops,
):
    M = B * L
    D = se_w_ref.shape[1]
    hd = D // n_head
    scale = 1.0 / math.sqrt(hd)

    # ---- communication graph: graph * no_diagonal + diagonal ---------------
    r = jax.lax.broadcasted_iota(jnp.int32, (L, L), 0)
    c = jax.lax.broadcasted_iota(jnp.int32, (L, L), 1)
    eye = (r == c).astype(jnp.float32)                      # (L, L)
    g = graph_ref[...] * (1.0 - eye)[None] + eye[None]      # (B, L, L)

    # ---- state encoder: LayerNorm -> Linear -> GELU (+ optional pos) -------
    x0 = x0_ref[...]                                        # (M, Din)
    h = _layer_norm(x0, se_g_ref[...], se_b_ref[...])
    h = jnp.dot(h, se_w_ref[...], preferred_element_type=jnp.float32) + se_bias_ref[...]
    h = _gelu(h)
    h = h + pos_ref[...]
    x2 = _layer_norm(h, ln_g_ref[...], ln_b_ref[...])       # (M, D)

    # ---- communication hops (statically unrolled) --------------------------
    for t in range(hops):
        x_res = x2

        # fused Q/K/V projection: one (M, D) x (D, 3D) matmul
        qkv = jnp.dot(x2, wqkv_ref[t], preferred_element_type=jnp.float32) + bqkv_ref[t]
        q = qkv[:, 0 * D:1 * D].reshape(B, L, D)
        k = qkv[:, 1 * D:2 * D].reshape(B, L, D)
        v = qkv[:, 2 * D:3 * D].reshape(B, L, D)

        wp_hop = wp_ref[t]                                   # (n_head, hd, D)
        acc = None
        for hh in range(n_head):
            sl = slice(hh * hd, (hh + 1) * hd)
            qh, kh, vh = q[:, :, sl], k[:, :, sl], v[:, :, sl]        # (B, L, hd)
            s = jnp.einsum("bld,bmd->blm", qh, kh,
                           preferred_element_type=jnp.float32) * scale
            s = s * g                                        # graph gating (per head)
            s = s - jnp.max(s, axis=-1, keepdims=True)
            e = jnp.exp(s)
            p = e * pl.reciprocal(jnp.sum(e, axis=-1, keepdims=True), approx=True)
            if t == hops - 1:                                # only final hop's att is returned
                att_ref[hh] = p                              # (B, L, L)
            yh = jnp.einsum("blm,bmd->bld", p, vh,
                            preferred_element_type=jnp.float32)       # (B, L, hd)
            # project head output directly (no concatenate): y @ Wp == sum_h y_h @ Wp_h
            contrib = jnp.dot(yh.reshape(M, hd), wp_hop[hh],
                              preferred_element_type=jnp.float32)     # (M, D)
            acc = contrib if acc is None else acc + contrib
        y_attn = acc + bp_ref[t]

        x2 = _layer_norm(x_res + y_attn, ln1_g_ref[t], ln1_b_ref[t])
        m = _gelu(jnp.dot(x2, fc1_w_ref[t], preferred_element_type=jnp.float32) + fc1_b_ref[t])
        m = jnp.dot(m, fc2_w_ref[t], preferred_element_type=jnp.float32) + fc2_b_ref[t]
        x2 = _layer_norm(x2 + m, ln2_g_ref[t], ln2_b_ref[t])

    # ---- head: Linear -> GELU -> LayerNorm -> Linear ------------------------
    o = _gelu(jnp.dot(x2, h1_w_ref[...], preferred_element_type=jnp.float32) + h1_b_ref[...])
    o = _layer_norm(o, hln_g_ref[...], hln_b_ref[...])
    o = jnp.dot(o, h2_w_ref[...], preferred_element_type=jnp.float32) + h2_b_ref[...]
    out_ref[...] = o                                         # (M, OUT)


# --------------------------- parameter creation ---------------------------

def orthogonal_init(key, out_dim, in_dim, gain):
    # deterministic orthogonal init (same spirit as torch.nn.init.orthogonal_)
    m, n = max(out_dim, in_dim), min(out_dim, in_dim)
    a = jax.random.normal(key, (m, n), dtype=jnp.float32)
    q, r = jnp.linalg.qr(a)
    q = q * jnp.sign(jnp.diagonal(r))
    if out_dim < in_dim:
        q = q.T
    return (gain * q).astype(jnp.float32)          # (out_dim, in_dim)


def make_linear(key, in_dim, out_dim, gain):
    w = orthogonal_init(key, out_dim, in_dim, gain).T   # stored as (in, out)
    b = jnp.zeros((1, out_dim), jnp.float32)
    return w, b


def make_params(key, input_size, hidden, output_size, n_head, n_agent, hops):
    keys = iter(jax.random.split(key, 8 + 8 * hops))
    ones = lambda d: jnp.ones((1, d), jnp.float32)
    zeros = lambda d: jnp.zeros((1, d), jnp.float32)
    hd = hidden // n_head

    se_w, se_b = make_linear(next(keys), input_size, hidden, GAIN_RELU)

    wqkv, bqkv, wp, bp = [], [], [], []
    ln1_g, ln1_b, ln2_g, ln2_b = [], [], [], []
    fc1_w, fc1_b, fc2_w, fc2_b = [], [], [], []
    mask_logits = []
    for _ in range(hops):
        wq, bq = make_linear(next(keys), hidden, hidden, 0.01)
        wk, bk = make_linear(next(keys), hidden, hidden, 0.01)
        wv, bv = make_linear(next(keys), hidden, hidden, 0.01)
        wproj, bproj = make_linear(next(keys), hidden, hidden, 0.01)
        wqkv.append(jnp.concatenate([wq, wk, wv], axis=1))       # (D, 3D)
        bqkv.append(jnp.concatenate([bq, bk, bv], axis=1))       # (1, 3D)
        wp.append(wproj.reshape(n_head, hd, hidden))             # (H, hd, D)
        bp.append(bproj)
        ln1_g.append(ones(hidden)); ln1_b.append(zeros(hidden))
        ln2_g.append(ones(hidden)); ln2_b.append(zeros(hidden))
        w1, b1 = make_linear(next(keys), hidden, hidden, GAIN_RELU)
        w2, b2 = make_linear(next(keys), hidden, hidden, 0.01)
        fc1_w.append(w1); fc1_b.append(b1)
        fc2_w.append(w2); fc2_b.append(b2)
        mask_logits.append(jnp.zeros((1, n_head, n_agent, n_agent), jnp.float32))

    h1_w, h1_b = make_linear(next(keys), hidden, hidden, GAIN_RELU)
    h2_w, h2_b = make_linear(next(keys), hidden, output_size, 0.01)

    stack = lambda xs: jnp.stack(xs, axis=0)
    return {
        "se_ln_g": ones(input_size), "se_ln_b": zeros(input_size),
        "se_w": se_w, "se_b": se_b,
        "ln_g": ones(hidden), "ln_b": zeros(hidden),
        "wqkv": stack(wqkv), "bqkv": stack(bqkv),
        "wp": stack(wp), "bp": stack(bp),
        "ln1_g": stack(ln1_g), "ln1_b": stack(ln1_b),
        "ln2_g": stack(ln2_g), "ln2_b": stack(ln2_b),
        "fc1_w": stack(fc1_w), "fc1_b": stack(fc1_b),
        "fc2_w": stack(fc2_w), "fc2_b": stack(fc2_b),
        "h1_w": h1_w, "h1_b": h1_b,
        "hln_g": ones(hidden), "hln_b": zeros(hidden),
        "h2_w": h2_w, "h2_b": h2_b,
        "mask_logits": stack(mask_logits),     # (hops, 1, H, L, L)
    }


# ------------------------------ forward pass ------------------------------

def transformer_comm_forward(params, inp, graph, n_head, pos_embed=None):
    B, L, Din = inp.shape
    hidden = params["se_w"].shape[1]
    out_dim = params["h2_w"].shape[1]
    hops = params["wqkv"].shape[0]
    M = B * L

    x0 = inp.reshape(M, Din).astype(jnp.float32)
    if pos_embed is not None:
        pos = pos_embed.reshape(M, hidden).astype(jnp.float32)
    else:
        pos = jnp.zeros((M, hidden), jnp.float32)

    kernel = partial(_fused_kernel, B=B, L=L, n_head=n_head, hops=hops)
    out2d, att_hb = pl.pallas_call(
        kernel,
        out_shape=(
            jax.ShapeDtypeStruct((M, out_dim), jnp.float32),
            jax.ShapeDtypeStruct((n_head, B, L, L), jnp.float32),
        ),
    )(
        x0, pos, graph.astype(jnp.float32),
        params["se_ln_g"], params["se_ln_b"], params["se_w"], params["se_b"],
        params["ln_g"], params["ln_b"],
        params["wqkv"], params["bqkv"], params["wp"], params["bp"],
        params["ln1_g"], params["ln1_b"], params["ln2_g"], params["ln2_b"],
        params["fc1_w"], params["fc1_b"], params["fc2_w"], params["fc2_b"],
        params["h1_w"], params["h1_b"], params["hln_g"], params["hln_b"],
        params["h2_w"], params["h2_b"],
    )

    out = out2d.reshape(B, L, out_dim)
    att = jnp.transpose(att_hb, (1, 0, 2, 3))          # (B, n_head, L, L)
    mask = params["mask_logits"][hops - 1]             # (1, n_head, L, L)
    return out, att, mask


# ----------------------------------- main ----------------------------------

if __name__ == "__main__":
    B = 2            # batch
    L = 8            # num_agents (sequence length)
    INPUT = 16       # input_size
    HIDDEN = 32      # hidden_size (n_embd)
    OUTPUT = 8       # output_size
    HEADS = 4        # num_heads
    HOPS = 2         # num_comm_hops

    root = jax.random.PRNGKey(0)
    k_param, k_inp, k_graph = jax.random.split(root, 3)

    params = make_params(k_param, INPUT, HIDDEN, OUTPUT, HEADS, L, HOPS)
    inp = jax.random.normal(k_inp, (B, L, INPUT), dtype=jnp.float32)
    graph = (jax.random.uniform(k_graph, (B, L, L)) > 0.5).astype(jnp.float32)

    fwd = jax.jit(partial(transformer_comm_forward, n_head=HEADS))
    out, att, mask = fwd(params, inp, graph)
    jax.block_until_ready((out, att, mask))

    assert out.shape == (B, L, OUTPUT)
    assert att.shape == (B, HEADS, L, L)
    assert mask.shape == (1, HEADS, L, L)
    print("KERNEL_OK")
</pallas_src>

<mosaic_0001>
module attributes {stable_mosaic.version = 11 : i64} {
  func.func @_fused_kernel(%arg0: memref<16x16xf32, #tpu.memory_space<vmem>>, %arg1: memref<16x32xf32, #tpu.memory_space<vmem>>, %arg2: memref<2x8x8xf32, #tpu.memory_space<vmem>>, %arg3: memref<1x16xf32, #tpu.memory_space<vmem>>, %arg4: memref<1x16xf32, #tpu.memory_space<vmem>>, %arg5: memref<16x32xf32, #tpu.memory_space<vmem>>, %arg6: memref<1x32xf32, #tpu.memory_space<vmem>>, %arg7: memref<1x32xf32, #tpu.memory_space<vmem>>, %arg8: memref<1x32xf32, #tpu.memory_space<vmem>>, %arg9: memref<2x32x96xf32, #tpu.memory_space<vmem>>, %arg10: memref<2x1x96xf32, #tpu.memory_space<vmem>>, %arg11: memref<2x4x8x32xf32, #tpu.memory_space<vmem>>, %arg12: memref<2x1x32xf32, #tpu.memory_space<vmem>>, %arg13: memref<2x1x32xf32, #tpu.memory_space<vmem>>, %arg14: memref<2x1x32xf32, #tpu.memory_space<vmem>>, %arg15: memref<2x1x32xf32, #tpu.memory_space<vmem>>, %arg16: memref<2x1x32xf32, #tpu.memory_space<vmem>>, %arg17: memref<2x32x32xf32, #tpu.memory_space<vmem>>, %arg18: memref<2x1x32xf32, #tpu.memory_space<vmem>>, %arg19: memref<2x32x32xf32, #tpu.memory_space<vmem>>, %arg20: memref<2x1x32xf32, #tpu.memory_space<vmem>>, %arg21: memref<32x32xf32, #tpu.memory_space<vmem>>, %arg22: memref<1x32xf32, #tpu.memory_space<vmem>>, %arg23: memref<1x32xf32, #tpu.memory_space<vmem>>, %arg24: memref<1x32xf32, #tpu.memory_space<vmem>>, %arg25: memref<32x8xf32, #tpu.memory_space<vmem>>, %arg26: memref<1x8xf32, #tpu.memory_space<vmem>>, %arg27: memref<16x8xf32, #tpu.memory_space<vmem>>, %arg28: memref<4x2x8x8xf32, #tpu.memory_space<vmem>>) attributes {dimension_semantics = [], scalar_prefetch = 0 : i64, scratch_operands = 0 : i64, tpu.core_type = #tpu.core_type<tc>} {
    %0 = tpu.iota {dimensions = array<i32: 0>} : vector<8x8xi32>
    %1 = tpu.iota {dimensions = array<i32: 1>} : vector<8x8xi32>
    %2 = arith.cmpi eq, %0, %1 : vector<8x8xi32>
    %3 = arith.extui %2 : vector<8x8xi1> to vector<8x8xi32>
    %4 = arith.sitofp %3 : vector<8x8xi32> to vector<8x8xf32>
    %c0 = arith.constant 0 : index
    %c0_0 = arith.constant 0 : index
    %c0_1 = arith.constant 0 : index
    %5 = vector.load %arg2[%c0, %c0_0, %c0_1] : memref<2x8x8xf32, #tpu.memory_space<vmem>>, vector<2x8x8xf32>
    %cst = arith.constant 1.000000e+00 : f32
    %6 = vector.broadcast %cst : f32 to vector<8x8xf32>
    %7 = arith.subf %6, %4 : vector<8x8xf32>
    %8 = vector.shape_cast %7 : vector<8x8xf32> to vector<1x8x8xf32>
    %9 = vector.broadcast %8 : vector<1x8x8xf32> to vector<2x8x8xf32>
    %10 = arith.mulf %5, %9 : vector<2x8x8xf32>
    %11 = vector.shape_cast %4 : vector<8x8xf32> to vector<1x8x8xf32>
    %12 = vector.broadcast %11 : vector<1x8x8xf32> to vector<2x8x8xf32>
    %13 = arith.addf %10, %12 : vector<2x8x8xf32>
    %c0_2 = arith.constant 0 : index
    %c0_3 = arith.constant 0 : index
    %14 = vector.load %arg0[%c0_2, %c0_3] : memref<16x16xf32, #tpu.memory_space<vmem>>, vector<16x16xf32>
    %c0_4 = arith.constant 0 : index
    %c0_5 = arith.constant 0 : index
    %15 = vector.load %arg3[%c0_4, %c0_5] : memref<1x16xf32, #tpu.memory_space<vmem>>, vector<1x16xf32>
    %c0_6 = arith.constant 0 : index
    %c0_7 = arith.constant 0 : index
    %16 = vector.load %arg4[%c0_6, %c0_7] : memref<1x16xf32, #tpu.memory_space<vmem>>, vector<1x16xf32>
    %cst_8 = arith.constant dense<0.000000e+00> : vector<16xf32>
    %17 = vector.multi_reduction <add>, %14, %cst_8 [1] : vector<16x16xf32> to vector<16xf32>
    %18 = vector.shape_cast %17 : vector<16xf32> to vector<16x1xf32>
    %cst_9 = arith.constant 1.600000e+01 : f32
    %19 = vector.broadcast %cst_9 : f32 to vector<16x1xf32>
    %20 = arith.divf %18, %19 : vector<16x1xf32>
    %21 = vector.broadcast %20 : vector<16x1xf32> to vector<16x16xf32>
    %22 = arith.subf %14, %21 : vector<16x16xf32>
    %23 = arith.mulf %22, %22 : vector<16x16xf32>
    %cst_10 = arith.constant dense<0.000000e+00> : vector<16xf32>
    %24 = vector.multi_reduction <add>, %23, %cst_10 [1] : vector<16x16xf32> to vector<16xf32>
    %25 = vector.shape_cast %24 : vector<16xf32> to vector<16x1xf32>
    %cst_11 = arith.constant 1.600000e+01 : f32
    %26 = vector.broadcast %cst_11 : f32 to vector<16x1xf32>
    %27 = arith.divf %25, %26 : vector<16x1xf32>
    %28 = vector.broadcast %20 : vector<16x1xf32> to vector<16x16xf32>
    %29 = arith.subf %14, %28 : vector<16x16xf32>
    %cst_12 = arith.constant 9.99999974E-6 : f32
    %30 = vector.broadcast %cst_12 : f32 to vector<16x1xf32>
    %31 = arith.addf %27, %30 : vector<16x1xf32>
    %32 = math.rsqrt %31 : vector<16x1xf32>
    %33 = vector.broadcast %32 : vector<16x1xf32> to vector<16x16xf32>
    %34 = arith.mulf %29, %33 : vector<16x16xf32>
    %35 = vector.broadcast %15 : vector<1x16xf32> to vector<16x16xf32>
    %36 = arith.mulf %34, %35 : vector<16x16xf32>
    %37 = vector.broadcast %16 : vector<1x16xf32> to vector<16x16xf32>
    %38 = arith.addf %36, %37 : vector<16x16xf32>
    %c0_13 = arith.constant 0 : index
    %c0_14 = arith.constant 0 : index
    %39 = vector.load %arg5[%c0_13, %c0_14] : memref<16x32xf32, #tpu.memory_space<vmem>>, vector<16x32xf32>
    %cst_15 = arith.constant dense<0.000000e+00> : vector<16x32xf32>
    %40 = tpu.matmul %38, %39, %cst_15 {dimension_numbers = #tpu.dot_dimension_numbers<[1], [0], [0], [1], [0, 0, 1, 1], [], []>} : vector<16x16xf32>, vector<16x32xf32>, vector<16x32xf32> -> vector<16x32xf32>
    %c0_16 = arith.constant 0 : index
    %c0_17 = arith.constant 0 : index
    %41 = vector.load %arg6[%c0_16, %c0_17] : memref<1x32xf32, #tpu.memory_space<vmem>>, vector<1x32xf32>
    %42 = vector.broadcast %41 : vector<1x32xf32> to vector<16x32xf32>
    %43 = arith.addf %40, %42 : vector<16x32xf32>
    %cst_18 = arith.constant 5.000000e-01 : f32
    %44 = vector.broadcast %cst_18 : f32 to vector<16x32xf32>
    %45 = arith.mulf %44, %43 : vector<16x32xf32>
    %cst_19 = arith.constant 0.707106769 : f32
    %46 = vector.broadcast %cst_19 : f32 to vector<16x32xf32>
    %47 = arith.mulf %43, %46 : vector<16x32xf32>
    %48 = math.erf %47 : vector<16x32xf32>
    %cst_20 = arith.constant 1.000000e+00 : f32
    %49 = vector.broadcast %cst_20 : f32 to vector<16x32xf32>
    %50 = arith.addf %49, %48 : vector<16x32xf32>
    %51 = arith.mulf %45, %50 : vector<16x32xf32>
    %c0_21 = arith.constant 0 : index
    %c0_22 = arith.constant 0 : index
    %52 = vector.load %arg1[%c0_21, %c0_22] : memref<16x32xf32, #tpu.memory_space<vmem>>, vector<16x32xf32>
    %53 = arith.addf %51, %52 : vector<16x32xf32>
    %c0_23 = arith.constant 0 : index
    %c0_24 = arith.constant 0 : index
    %54 = vector.load %arg7[%c0_23, %c0_24] : memref<1x32xf32, #tpu.memory_space<vmem>>, vector<1x32xf32>
    %c0_25 = arith.constant 0 : index
    %c0_26 = arith.constant 0 : index
    %55 = vector.load %arg8[%c0_25, %c0_26] : memref<1x32xf32, #tpu.memory_space<vmem>>, vector<1x32xf32>
    %cst_27 = arith.constant dense<0.000000e+00> : vector<16xf32>
    %56 = vector.multi_reduction <add>, %53, %cst_27 [1] : vector<16x32xf32> to vector<16xf32>
    %57 = vector.shape_cast %56 : vector<16xf32> to vector<16x1xf32>
    %cst_28 = arith.constant 3.200000e+01 : f32
    %58 = vector.broadcast %cst_28 : f32 to vector<16x1xf32>
    %59 = arith.divf %57, %58 : vector<16x1xf32>
    %60 = vector.broadcast %59 : vector<16x1xf32> to vector<16x32xf32>
    %61 = arith.subf %53, %60 : vector<16x32xf32>
    %62 = arith.mulf %61, %61 : vector<16x32xf32>
    %cst_29 = arith.constant dense<0.000000e+00> : vector<16xf32>
    %63 = vector.multi_reduction <add>, %62, %cst_29 [1] : vector<16x32xf32> to vector<16xf32>
    %64 = vector.shape_cast %63 : vector<16xf32> to vector<16x1xf32>
    %cst_30 = arith.constant 3.200000e+01 : f32
    %65 = vector.broadcast %cst_30 : f32 to vector<16x1xf32>
    %66 = arith.divf %64, %65 : vector<16x1xf32>
    %67 = vector.broadcast %59 : vector<16x1xf32> to vector<16x32xf32>
    %68 = arith.subf %53, %67 : vector<16x32xf32>
    %cst_31 = arith.constant 9.99999974E-6 : f32
    %69 = vector.broadcast %cst_31 : f32 to vector<16x1xf32>
    %70 = arith.addf %66, %69 : vector<16x1xf32>
    %71 = math.rsqrt %70 : vector<16x1xf32>
    %72 = vector.broadcast %71 : vector<16x1xf32> to vector<16x32xf32>
    %73 = arith.mulf %68, %72 : vector<16x32xf32>
    %74 = vector.broadcast %54 : vector<1x32xf32> to vector<16x32xf32>
    %75 = arith.mulf %73, %74 : vector<16x32xf32>
    %76 = vector.broadcast %55 : vector<1x32xf32> to vector<16x32xf32>
    %77 = arith.addf %75, %76 : vector<16x32xf32>
    %c0_32 = arith.constant 0 : index
    %c0_33 = arith.constant 0 : index
    %c0_34 = arith.constant 0 : index
    %78 = vector.load %arg9[%c0_32, %c0_33, %c0_34] : memref<2x32x96xf32, #tpu.memory_space<vmem>>, vector<1x32x96xf32>
    %79 = vector.shape_cast %78 : vector<1x32x96xf32> to vector<32x96xf32>
    %cst_35 = arith.constant dense<0.000000e+00> : vector<16x96xf32>
    %80 = tpu.matmul %77, %79, %cst_35 {dimension_numbers = #tpu.dot_dimension_numbers<[1], [0], [0], [1], [0, 0, 1, 1], [], []>} : vector<16x32xf32>, vector<32x96xf32>, vector<16x96xf32> -> vector<16x96xf32>
    %c0_36 = arith.constant 0 : index
    %c0_37 = arith.constant 0 : index
    %c0_38 = arith.constant 0 : index
    %81 = vector.load %arg10[%c0_36, %c0_37, %c0_38] : memref<2x1x96xf32, #tpu.memory_space<vmem>>, vector<1x1x96xf32>
    %82 = vector.shape_cast %81 : vector<1x1x96xf32> to vector<1x96xf32>
    %83 = vector.broadcast %82 : vector<1x96xf32> to vector<16x96xf32>
    %84 = arith.addf %80, %83 : vector<16x96xf32>
    %85 = vector.extract_strided_slice %84 {offsets = [0, 0], sizes = [16, 32], strides = [1, 1]} : vector<16x96xf32> to vector<16x32xf32>
    %86 = vector.shape_cast %85 : vector<16x32xf32> to vector<2x8x32xf32>
    %87 = vector.extract_strided_slice %84 {offsets = [0, 32], sizes = [16, 32], strides = [1, 1]} : vector<16x96xf32> to vector<16x32xf32>
    %88 = vector.shape_cast %87 : vector<16x32xf32> to vector<2x8x32xf32>
    %89 = vector.extract_strided_slice %84 {offsets = [0, 64], sizes = [16, 32], strides = [1, 1]} : vector<16x96xf32> to vector<16x32xf32>
    %90 = vector.shape_cast %89 : vector<16x32xf32> to vector<2x8x32xf32>
    %c0_39 = arith.constant 0 : index
    %c0_40 = arith.constant 0 : index
    %c0_41 = arith.constant 0 : index
    %c0_42 = arith.constant 0 : index
    %91 = vector.load %arg11[%c0_39, %c0_40, %c0_41, %c0_42] : memref<2x4x8x32xf32, #tpu.memory_space<vmem>>, vector<1x4x8x32xf32>
    %92 = vector.shape_cast %91 : vector<1x4x8x32xf32> to vector<4x8x32xf32>
    %93 = vector.extract_strided_slice %86 {offsets = [0, 0, 0], sizes = [2, 8, 8], strides = [1, 1, 1]} : vector<2x8x32xf32> to vector<2x8x8xf32>
    %94 = vector.extract_strided_slice %88 {offsets = [0, 0, 0], sizes = [2, 8, 8], strides = [1, 1, 1]} : vector<2x8x32xf32> to vector<2x8x8xf32>
    %95 = vector.extract_strided_slice %90 {offsets = [0, 0, 0], sizes = [2, 8, 8], strides = [1, 1, 1]} : vector<2x8x32xf32> to vector<2x8x8xf32>
    "tpu.trace_start"() <{level = 10 : i32, message = "bld,bmd->blm"}> : () -> ()
    %cst_43 = arith.constant dense<0.000000e+00> : vector<2x8x8xf32>
    %96 = tpu.matmul %93, %94, %cst_43 {dimension_numbers = #tpu.dot_dimension_numbers<[2], [2], [1], [1], [0, 0, 0, 1, 1, 1], [0], [0]>} : vector<2x8x8xf32>, vector<2x8x8xf32>, vector<2x8x8xf32> -> vector<2x8x8xf32>
    "tpu.trace_stop"() : () -> ()
    %cst_44 = arith.constant 0.353553385 : f32
    %97 = vector.broadcast %cst_44 : f32 to vector<2x8x8xf32>
    %98 = arith.mulf %96, %97 : vector<2x8x8xf32>
    %99 = arith.mulf %98, %13 : vector<2x8x8xf32>
    %cst_45 = arith.constant dense<0xFF800000> : vector<2x8xf32>
    %100 = vector.multi_reduction <maximumf>, %99, %cst_45 [2] : vector<2x8x8xf32> to vector<2x8xf32>
    %101 = vector.shape_cast %100 : vector<2x8xf32> to vector<2x8x1xf32>
    %102 = vector.broadcast %101 : vector<2x8x1xf32> to vector<2x8x8xf32>
    %103 = arith.subf %99, %102 : vector<2x8x8xf32>
    %104 = math.exp %103 : vector<2x8x8xf32>
    %cst_46 = arith.constant dense<0.000000e+00> : vector<2x8xf32>
    %105 = vector.multi_reduction <add>, %104, %cst_46 [2] : vector<2x8x8xf32> to vector<2x8xf32>
    %106 = vector.shape_cast %105 : vector<2x8xf32> to vector<2x8x1xf32>
    %107 = tpu.reciprocal %106 {approx = true} : vector<2x8x1xf32> -> vector<2x8x1xf32>
    %108 = vector.broadcast %107 : vector<2x8x1xf32> to vector<2x8x8xf32>
    %109 = arith.mulf %104, %108 : vector<2x8x8xf32>
    "tpu.trace_start"() <{level = 10 : i32, message = "blm,bmd->bld"}> : () -> ()
    %cst_47 = arith.constant dense<0.000000e+00> : vector<2x8x8xf32>
    %110 = tpu.matmul %109, %95, %cst_47 {dimension_numbers = #tpu.dot_dimension_numbers<[2], [1], [1], [2], [0, 0, 0, 1, 1, 2], [0], [0]>} : vector<2x8x8xf32>, vector<2x8x8xf32>, vector<2x8x8xf32> -> vector<2x8x8xf32>
    "tpu.trace_stop"() : () -> ()
    %111 = vector.shape_cast %110 : vector<2x8x8xf32> to vector<16x8xf32>
    %112 = vector.extract_strided_slice %92 {offsets = [0, 0, 0], sizes = [1, 8, 32], strides = [1, 1, 1]} : vector<4x8x32xf32> to vector<1x8x32xf32>
    %113 = vector.shape_cast %112 : vector<1x8x32xf32> to vector<8x32xf32>
    %cst_48 = arith.constant dense<0.000000e+00> : vector<16x32xf32>
    %114 = tpu.matmul %111, %113, %cst_48 {dimension_numbers = #tpu.dot_dimension_numbers<[1], [0], [0], [1], [0, 0, 1, 1], [], []>} : vector<16x8xf32>, vector<8x32xf32>, vector<16x32xf32> -> vector<16x32xf32>
    %115 = vector.extract_strided_slice %86 {offsets = [0, 0, 8], sizes = [2, 8, 8], strides = [1, 1, 1]} : vector<2x8x32xf32> to vector<2x8x8xf32>
    %116 = vector.extract_strided_slice %88 {offsets = [0, 0, 8], sizes = [2, 8, 8], strides = [1, 1, 1]} : vector<2x8x32xf32> to vector<2x8x8xf32>
    %117 = vector.extract_strided_slice %90 {offsets = [0, 0, 8], sizes = [2, 8, 8], strides = [1, 1, 1]} : vector<2x8x32xf32> to vector<2x8x8xf32>
    "tpu.trace_start"() <{level = 10 : i32, message = "bld,bmd->blm"}> : () -> ()
    %cst_49 = arith.constant dense<0.000000e+00> : vector<2x8x8xf32>
    %118 = tpu.matmul %115, %116, %cst_49 {dimension_numbers = #tpu.dot_dimension_numbers<[2], [2], [1], [1], [0, 0, 0, 1, 1, 1], [0], [0]>} : vector<2x8x8xf32>, vector<2x8x8xf32>, vector<2x8x8xf32> -> vector<2x8x8xf32>
    "tpu.trace_stop"() : () -> ()
    %cst_50 = arith.constant 0.353553385 : f32
    %119 = vector.broadcast %cst_50 : f32 to vector<2x8x8xf32>
    %120 = arith.mulf %118, %119 : vector<2x8x8xf32>
    %121 = arith.mulf %120, %13 : vector<2x8x8xf32>
    %cst_51 = arith.constant dense<0xFF800000> : vector<2x8xf32>
    %122 = vector.multi_reduction <maximumf>, %121, %cst_51 [2] : vector<2x8x8xf32> to vector<2x8xf32>
    %123 = vector.shape_cast %122 : vector<2x8xf32> to vector<2x8x1xf32>
    %124 = vector.broadcast %123 : vector<2x8x1xf32> to vector<2x8x8xf32>
    %125 = arith.subf %121, %124 : vector<2x8x8xf32>
    %126 = math.exp %125 : vector<2x8x8xf32>
    %cst_52 = arith.constant dense<0.000000e+00> : vector<2x8xf32>
    %127 = vector.multi_reduction <add>, %126, %cst_52 [2] : vector<2x8x8xf32> to vector<2x8xf32>
    %128 = vector.shape_cast %127 : vector<2x8xf32> to vector<2x8x1xf32>
    %129 = tpu.reciprocal %128 {approx = true} : vector<2x8x1xf32> -> vector<2x8x1xf32>
    %130 = vector.broadcast %129 : vector<2x8x1xf32> to vector<2x8x8xf32>
    %131 = arith.mulf %126, %130 : vector<2x8x8xf32>
    "tpu.trace_start"() <{level = 10 : i32, message = "blm,bmd->bld"}> : () -> ()
    %cst_53 = arith.constant dense<0.000000e+00> : vector<2x8x8xf32>
    %132 = tpu.matmul %131, %117, %cst_53 {dimension_numbers = #tpu.dot_dimension_numbers<[2], [1], [1], [2], [0, 0, 0, 1, 1, 2], [0], [0]>} : vector<2x8x8xf32>, vector<2x8x8xf32>, vector<2x8x8xf32> -> vector<2x8x8xf32>
    "tpu.trace_stop"() : () -> ()
    %133 = vector.shape_cast %132 : vector<2x8x8xf32> to vector<16x8xf32>
    %134 = vector.extract_strided_slice %92 {offsets = [1, 0, 0], sizes = [1, 8, 32], strides = [1, 1, 1]} : vector<4x8x32xf32> to vector<1x8x32xf32>
    %135 = vector.shape_cast %134 : vector<1x8x32xf32> to vector<8x32xf32>
    %cst_54 = arith.constant dense<0.000000e+00> : vector<16x32xf32>
    %136 = tpu.matmul %133, %135, %cst_54 {dimension_numbers = #tpu.dot_dimension_numbers<[1], [0], [0], [1], [0, 0, 1, 1], [], []>} : vector<16x8xf32>, vector<8x32xf32>, vector<16x32xf32> -> vector<16x32xf32>
    %137 = arith.addf %114, %136 : vector<16x32xf32>
    %138 = vector.extract_strided_slice %86 {offsets = [0, 0, 16], sizes = [2, 8, 8], strides = [1, 1, 1]} : vector<2x8x32xf32> to vector<2x8x8xf32>
    %139 = vector.extract_strided_slice %88 {offsets = [0, 0, 16], sizes = [2, 8, 8], strides = [1, 1, 1]} : vector<2x8x32xf32> to vector<2x8x8xf32>
    %140 = vector.extract_strided_slice %90 {offsets = [0, 0, 16], sizes = [2, 8, 8], strides = [1, 1, 1]} : vector<2x8x32xf32> to vector<2x8x8xf32>
    "tpu.trace_start"() <{level = 10 : i32, message = "bld,bmd->blm"}> : () -> ()
    %cst_55 = arith.constant dense<0.000000e+00> : vector<2x8x8xf32>
    %141 = tpu.matmul %138, %139, %cst_55 {dimension_numbers = #tpu.dot_dimension_numbers<[2], [2], [1], [1], [0, 0, 0, 1, 1, 1], [0], [0]>} : vector<2x8x8xf32>, vector<2x8x8xf32>, vector<2x8x8xf32> -> vector<2x8x8xf32>
    "tpu.trace_stop"() : () -> ()
    %cst_56 = arith.constant 0.353553385 : f32
    %142 = vector.broadcast %cst_56 : f32 to vector<2x8x8xf32>
    %143 = arith.mulf %141, %142 : vector<2x8x8xf32>
    %144 = arith.mulf %143, %13 : vector<2x8x8xf32>
    %cst_57 = arith.constant dense<0xFF800000> : vector<2x8xf32>
    %145 = vector.multi_reduction <maximumf>, %144, %cst_57 [2] : vector<2x8x8xf32> to vector<2x8xf32>
    %146 = vector.shape_cast %145 : vector<2x8xf32> to vector<2x8x1xf32>
    %147 = vector.broadcast %146 : vector<2x8x1xf32> to vector<2x8x8xf32>
    %148 = arith.subf %144, %147 : vector<2x8x8xf32>
    %149 = math.exp %148 : vector<2x8x8xf32>
    %cst_58 = arith.constant dense<0.000000e+00> : vector<2x8xf32>
    %150 = vector.multi_reduction <add>, %149, %cst_58 [2] : vector<2x8x8xf32> to vector<2x8xf32>
    %151 = vector.shape_cast %150 : vector<2x8xf32> to vector<2x8x1xf32>
    %152 = tpu.reciprocal %151 {approx = true} : vector<2x8x1xf32> -> vector<2x8x1xf32>
    %153 = vector.broadcast %152 : vector<2x8x1xf32> to vector<2x8x8xf32>
    %154 = arith.mulf %149, %153 : vector<2x8x8xf32>
    "tpu.trace_start"() <{level = 10 : i32, message = "blm,bmd->bld"}> : () -> ()
    %cst_59 = arith.constant dense<0.000000e+00> : vector<2x8x8xf32>
    %155 = tpu.matmul %154, %140, %cst_59 {dimension_numbers = #tpu.dot_dimension_numbers<[2], [1], [1], [2], [0, 0, 0, 1, 1, 2], [0], [0]>} : vector<2x8x8xf32>, vector<2x8x8xf32>, vector<2x8x8xf32> -> vector<2x8x8xf32>
    "tpu.trace_stop"() : () -> ()
    %156 = vector.shape_cast %155 : vector<2x8x8xf32> to vector<16x8xf32>
    %157 = vector.extract_strided_slice %92 {offsets = [2, 0, 0], sizes = [1, 8, 32], strides = [1, 1, 1]} : vector<4x8x32xf32> to vector<1x8x32xf32>
    %158 = vector.shape_cast %157 : vector<1x8x32xf32> to vector<8x32xf32>
    %cst_60 = arith.constant dense<0.000000e+00> : vector<16x32xf32>
    %159 = tpu.matmul %156, %158, %cst_60 {dimension_numbers = #tpu.dot_dimension_numbers<[1], [0], [0], [1], [0, 0, 1, 1], [], []>} : vector<16x8xf32>, vector<8x32xf32>, vector<16x32xf32> -> vector<16x32xf32>
    %160 = arith.addf %137, %159 : vector<16x32xf32>
    %161 = vector.extract_strided_slice %86 {offsets = [0, 0, 24], sizes = [2, 8, 8], strides = [1, 1, 1]} : vector<2x8x32xf32> to vector<2x8x8xf32>
    %162 = vector.extract_strided_slice %88 {offsets = [0, 0, 24], sizes = [2, 8, 8], strides = [1, 1, 1]} : vector<2x8x32xf32> to vector<2x8x8xf32>
    %163 = vector.extract_strided_slice %90 {offsets = [0, 0, 24], sizes = [2, 8, 8], strides = [1, 1, 1]} : vector<2x8x32xf32> to vector<2x8x8xf32>
    "tpu.trace_start"() <{level = 10 : i32, message = "bld,bmd->blm"}> : () -> ()
    %cst_61 = arith.constant dense<0.000000e+00> : vector<2x8x8xf32>
    %164 = tpu.matmul %161, %162, %cst_61 {dimension_numbers = #tpu.dot_dimension_numbers<[2], [2], [1], [1], [0, 0, 0, 1, 1, 1], [0], [0]>} : vector<2x8x8xf32>, vector<2x8x8xf32>, vector<2x8x8xf32> -> vector<2x8x8xf32>
    "tpu.trace_stop"() : () -> ()
    %cst_62 = arith.constant 0.353553385 : f32
    %165 = vector.broadcast %cst_62 : f32 to vector<2x8x8xf32>
    %166 = arith.mulf %164, %165 : vector<2x8x8xf32>
    %167 = arith.mulf %166, %13 : vector<2x8x8xf32>
    %cst_63 = arith.constant dense<0xFF800000> : vector<2x8xf32>
    %168 = vector.multi_reduction <maximumf>, %167, %cst_63 [2] : vector<2x8x8xf32> to vector<2x8xf32>
    %169 = vector.shape_cast %168 : vector<2x8xf32> to vector<2x8x1xf32>
    %170 = vector.broadcast %169 : vector<2x8x1xf32> to vector<2x8x8xf32>
    %171 = arith.subf %167, %170 : vector<2x8x8xf32>
    %172 = math.exp %171 : vector<2x8x8xf32>
    %cst_64 = arith.constant dense<0.000000e+00> : vector<2x8xf32>
    %173 = vector.multi_reduction <add>, %172, %cst_64 [2] : vector<2x8x8xf32> to vector<2x8xf32>
    %174 = vector.shape_cast %173 : vector<2x8xf32> to vector<2x8x1xf32>
    %175 = tpu.reciprocal %174 {approx = true} : vector<2x8x1xf32> -> vector<2x8x1xf32>
    %176 = vector.broadcast %175 : vector<2x8x1xf32> to vector<2x8x8xf32>
    %177 = arith.mulf %172, %176 : vector<2x8x8xf32>
    "tpu.trace_start"() <{level = 10 : i32, message = "blm,bmd->bld"}> : () -> ()
    %cst_65 = arith.constant dense<0.000000e+00> : vector<2x8x8xf32>
    %178 = tpu.matmul %177, %163, %cst_65 {dimension_numbers = #tpu.dot_dimension_numbers<[2], [1], [1], [2], [0, 0, 0, 1, 1, 2], [0], [0]>} : vector<2x8x8xf32>, vector<2x8x8xf32>, vector<2x8x8xf32> -> vector<2x8x8xf32>
    "tpu.trace_stop"() : () -> ()
    %179 = vector.shape_cast %178 : vector<2x8x8xf32> to vector<16x8xf32>
    %180 = vector.extract_strided_slice %92 {offsets = [3, 0, 0], sizes = [1, 8, 32], strides = [1, 1, 1]} : vector<4x8x32xf32> to vector<1x8x32xf32>
    %181 = vector.shape_cast %180 : vector<1x8x32xf32> to vector<8x32xf32>
    %cst_66 = arith.constant dense<0.000000e+00> : vector<16x32xf32>
    %182 = tpu.matmul %179, %181, %cst_66 {dimension_numbers = #tpu.dot_dimension_numbers<[1], [0], [0], [1], [0, 0, 1, 1], [], []>} : vector<16x8xf32>, vector<8x32xf32>, vector<16x32xf32> -> vector<16x32xf32>
    %183 = arith.addf %160, %182 : vector<16x32xf32>
    %c0_67 = arith.constant 0 : index
    %c0_68 = arith.constant 0 : index
    %c0_69 = arith.constant 0 : index
    %184 = vector.load %arg12[%c0_67, %c0_68, %c0_69] : memref<2x1x32xf32, #tpu.memory_space<vmem>>, vector<1x1x32xf32>
    %185 = vector.shape_cast %184 : vector<1x1x32xf32> to vector<1x32xf32>
    %186 = vector.broadcast %185 : vector<1x32xf32> to vector<16x32xf32>
    %187 = arith.addf %183, %186 : vector<16x32xf32>
    %188 = arith.addf %77, %187 : vector<16x32xf32>
    %c0_70 = arith.constant 0 : index
    %c0_71 = arith.constant 0 : index
    %c0_72 = arith.constant 0 : index
    %189 = vector.load %arg13[%c0_70, %c0_71, %c0_72] : memref<2x1x32xf32, #tpu.memory_space<vmem>>, vector<1x1x32xf32>
    %190 = vector.shape_cast %189 : vector<1x1x32xf32> to vector<1x32xf32>
    %c0_73 = arith.constant 0 : index
    %c0_74 = arith.constant 0 : index
    %c0_75 = arith.constant 0 : index
    %191 = vector.load %arg14[%c0_73, %c0_74, %c0_75] : memref<2x1x32xf32, #tpu.memory_space<vmem>>, vector<1x1x32xf32>
    %192 = vector.shape_cast %191 : vector<1x1x32xf32> to vector<1x32xf32>
    %cst_76 = arith.constant dense<0.000000e+00> : vector<16xf32>
    %193 = vector.multi_reduction <add>, %188, %cst_76 [1] : vector<16x32xf32> to vector<16xf32>
    %194 = vector.shape_cast %193 : vector<16xf32> to vector<16x1xf32>
    %cst_77 = arith.constant 3.200000e+01 : f32
    %195 = vector.broadcast %cst_77 : f32 to vector<16x1xf32>
    %196 = arith.divf %194, %195 : vector<16x1xf32>
    %197 = vector.broadcast %196 : vector<16x1xf32> to vector<16x32xf32>
    %198 = arith.subf %188, %197 : vector<16x32xf32>
    %199 = arith.mulf %198, %198 : vector<16x32xf32>
    %cst_78 = arith.constant dense<0.000000e+00> : vector<16xf32>
    %200 = vector.multi_reduction <add>, %199, %cst_78 [1] : vector<16x32xf32> to vector<16xf32>
    %201 = vector.shape_cast %200 : vector<16xf32> to vector<16x1xf32>
    %cst_79 = arith.constant 3.200000e+01 : f32
    %202 = vector.broadcast %cst_79 : f32 to vector<16x1xf32>
    %203 = arith.divf %201, %202 : vector<16x1xf32>
    %204 = vector.broadcast %196 : vector<16x1xf32> to vector<16x32xf32>
    %205 = arith.subf %188, %204 : vector<16x32xf32>
    %cst_80 = arith.constant 9.99999974E-6 : f32
    %206 = vector.broadcast %cst_80 : f32 to vector<16x1xf32>
    %207 = arith.addf %203, %206 : vector<16x1xf32>
    %208 = math.rsqrt %207 : vector<16x1xf32>
    %209 = vector.broadcast %208 : vector<16x1xf32> to vector<16x32xf32>
    %210 = arith.mulf %205, %209 : vector<16x32xf32>
    %211 = vector.broadcast %190 : vector<1x32xf32> to vector<16x32xf32>
    %212 = arith.mulf %210, %211 : vector<16x32xf32>
    %213 = vector.broadcast %192 : vector<1x32xf32> to vector<16x32xf32>
    %214 = arith.addf %212, %213 : vector<16x32xf32>
    %c0_81 = arith.constant 0 : index
    %c0_82 = arith.constant 0 : index
    %c0_83 = arith.constant 0 : index
    %215 = vector.load %arg17[%c0_81, %c0_82, %c0_83] : memref<2x32x32xf32, #tpu.memory_space<vmem>>, vector<1x32x32xf32>
    %216 = vector.shape_cast %215 : vector<1x32x32xf32> to vector<32x32xf32>
    %cst_84 = arith.constant dense<0.000000e+00> : vector<16x32xf32>
    %217 = tpu.matmul %214, %216, %cst_84 {dimension_numbers = #tpu.dot_dimension_numbers<[1], [0], [0], [1], [0, 0, 1, 1], [], []>} : vector<16x32xf32>, vector<32x32xf32>, vector<16x32xf32> -> vector<16x32xf32>
    %c0_85 = arith.constant 0 : index
    %c0_86 = arith.constant 0 : index
    %c0_87 = arith.constant 0 : index
    %218 = vector.load %arg18[%c0_85, %c0_86, %c0_87] : memref<2x1x32xf32, #tpu.memory_space<vmem>>, vector<1x1x32xf32>
    %219 = vector.shape_cast %218 : vector<1x1x32xf32> to vector<1x32xf32>
    %220 = vector.broadcast %219 : vector<1x32xf32> to vector<16x32xf32>
    %221 = arith.addf %217, %220 : vector<16x32xf32>
    %cst_88 = arith.constant 5.000000e-01 : f32
    %222 = vector.broadcast %cst_88 : f32 to vector<16x32xf32>
    %223 = arith.mulf %222, %221 : vector<16x32xf32>
    %cst_89 = arith.constant 0.707106769 : f32
    %224 = vector.broadcast %cst_89 : f32 to vector<16x32xf32>
    %225 = arith.mulf %221, %224 : vector<16x32xf32>
    %226 = math.erf %225 : vector<16x32xf32>
    %cst_90 = arith.constant 1.000000e+00 : f32
    %227 = vector.broadcast %cst_90 : f32 to vector<16x32xf32>
    %228 = arith.addf %227, %226 : vector<16x32xf32>
    %229 = arith.mulf %223, %228 : vector<16x32xf32>
    %c0_91 = arith.constant 0 : index
    %c0_92 = arith.constant 0 : index
    %c0_93 = arith.constant 0 : index
    %230 = vector.load %arg19[%c0_91, %c0_92, %c0_93] : memref<2x32x32xf32, #tpu.memory_space<vmem>>, vector<1x32x32xf32>
    %231 = vector.shape_cast %230 : vector<1x32x32xf32> to vector<32x32xf32>
    %cst_94 = arith.constant dense<0.000000e+00> : vector<16x32xf32>
    %232 = tpu.matmul %229, %231, %cst_94 {dimension_numbers = #tpu.dot_dimension_numbers<[1], [0], [0], [1], [0, 0, 1, 1], [], []>} : vector<16x32xf32>, vector<32x32xf32>, vector<16x32xf32> -> vector<16x32xf32>
    %c0_95 = arith.constant 0 : index
    %c0_96 = arith.constant 0 : index
    %c0_97 = arith.constant 0 : index
    %233 = vector.load %arg20[%c0_95, %c0_96, %c0_97] : memref<2x1x32xf32, #tpu.memory_space<vmem>>, vector<1x1x32xf32>
    %234 = vector.shape_cast %233 : vector<1x1x32xf32> to vector<1x32xf32>
    %235 = vector.broadcast %234 : vector<1x32xf32> to vector<16x32xf32>
    %236 = arith.addf %232, %235 : vector<16x32xf32>
    %237 = arith.addf %214, %236 : vector<16x32xf32>
    %c0_98 = arith.constant 0 : index
    %c0_99 = arith.constant 0 : index
    %c0_100 = arith.constant 0 : index
    %238 = vector.load %arg15[%c0_98, %c0_99, %c0_100] : memref<2x1x32xf32, #tpu.memory_space<vmem>>, vector<1x1x32xf32>
    %239 = vector.shape_cast %238 : vector<1x1x32xf32> to vector<1x32xf32>
    %c0_101 = arith.constant 0 : index
    %c0_102 = arith.constant 0 : index
    %c0_103 = arith.constant 0 : index
    %240 = vector.load %arg16[%c0_101, %c0_102, %c0_103] : memref<2x1x32xf32, #tpu.memory_space<vmem>>, vector<1x1x32xf32>
    %241 = vector.shape_cast %240 : vector<1x1x32xf32> to vector<1x32xf32>
    %cst_104 = arith.constant dense<0.000000e+00> : vector<16xf32>
    %242 = vector.multi_reduction <add>, %237, %cst_104 [1] : vector<16x32xf32> to vector<16xf32>
    %243 = vector.shape_cast %242 : vector<16xf32> to vector<16x1xf32>
    %cst_105 = arith.constant 3.200000e+01 : f32
    %244 = vector.broadcast %cst_105 : f32 to vector<16x1xf32>
    %245 = arith.divf %243, %244 : vector<16x1xf32>
    %246 = vector.broadcast %245 : vector<16x1xf32> to vector<16x32xf32>
    %247 = arith.subf %237, %246 : vector<16x32xf32>
    %248 = arith.mulf %247, %247 : vector<16x32xf32>
    %cst_106 = arith.constant dense<0.000000e+00> : vector<16xf32>
    %249 = vector.multi_reduction <add>, %248, %cst_106 [1] : vector<16x32xf32> to vector<16xf32>
    %250 = vector.shape_cast %249 : vector<16xf32> to vector<16x1xf32>
    %cst_107 = arith.constant 3.200000e+01 : f32
    %251 = vector.broadcast %cst_107 : f32 to vector<16x1xf32>
    %252 = arith.divf %250, %251 : vector<16x1xf32>
    %253 = vector.broadcast %245 : vector<16x1xf32> to vector<16x32xf32>
    %254 = arith.subf %237, %253 : vector<16x32xf32>
    %cst_108 = arith.constant 9.99999974E-6 : f32
    %255 = vector.broadcast %cst_108 : f32 to vector<16x1xf32>
    %256 = arith.addf %252, %255 : vector<16x1xf32>
    %257 = math.rsqrt %256 : vector<16x1xf32>
    %258 = vector.broadcast %257 : vector<16x1xf32> to vector<16x32xf32>
    %259 = arith.mulf %254, %258 : vector<16x32xf32>
    %260 = vector.broadcast %239 : vector<1x32xf32> to vector<16x32xf32>
    %261 = arith.mulf %259, %260 : vector<16x32xf32>
    %262 = vector.broadcast %241 : vector<1x32xf32> to vector<16x32xf32>
    %263 = arith.addf %261, %262 : vector<16x32xf32>
    %c1 = arith.constant 1 : index
    %c0_109 = arith.constant 0 : index
    %c0_110 = arith.constant 0 : index
    %264 = vector.load %arg9[%c1, %c0_109, %c0_110] : memref<2x32x96xf32, #tpu.memory_space<vmem>>, vector<1x32x96xf32>
    %265 = vector.shape_cast %264 : vector<1x32x96xf32> to vector<32x96xf32>
    %cst_111 = arith.constant dense<0.000000e+00> : vector<16x96xf32>
    %266 = tpu.matmul %263, %265, %cst_111 {dimension_numbers = #tpu.dot_dimension_numbers<[1], [0], [0], [1], [0, 0, 1, 1], [], []>} : vector<16x32xf32>, vector<32x96xf32>, vector<16x96xf32> -> vector<16x96xf32>
    %c1_112 = arith.constant 1 : index
    %c0_113 = arith.constant 0 : index
    %c0_114 = arith.constant 0 : index
    %267 = vector.load %arg10[%c1_112, %c0_113, %c0_114] : memref<2x1x96xf32, #tpu.memory_space<vmem>>, vector<1x1x96xf32>
    %268 = vector.shape_cast %267 : vector<1x1x96xf32> to vector<1x96xf32>
    %269 = vector.broadcast %268 : vector<1x96xf32> to vector<16x96xf32>
    %270 = arith.addf %266, %269 : vector<16x96xf32>
    %271 = vector.extract_strided_slice %270 {offsets = [0, 0], sizes = [16, 32], strides = [1, 1]} : vector<16x96xf32> to vector<16x32xf32>
    %272 = vector.shape_cast %271 : vector<16x32xf32> to vector<2x8x32xf32>
    %273 = vector.extract_strided_slice %270 {offsets = [0, 32], sizes = [16, 32], strides = [1, 1]} : vector<16x96xf32> to vector<16x32xf32>
    %274 = vector.shape_cast %273 : vector<16x32xf32> to vector<2x8x32xf32>
    %275 = vector.extract_strided_slice %270 {offsets = [0, 64], sizes = [16, 32], strides = [1, 1]} : vector<16x96xf32> to vector<16x32xf32>
    %276 = vector.shape_cast %275 : vector<16x32xf32> to vector<2x8x32xf32>
    %c1_115 = arith.constant 1 : index
    %c0_116 = arith.constant 0 : index
    %c0_117 = arith.constant 0 : index
    %c0_118 = arith.constant 0 : index
    %277 = vector.load %arg11[%c1_115, %c0_116, %c0_117, %c0_118] : memref<2x4x8x32xf32, #tpu.memory_space<vmem>>, vector<1x4x8x32xf32>
    %278 = vector.shape_cast %277 : vector<1x4x8x32xf32> to vector<4x8x32xf32>
    %279 = vector.extract_strided_slice %272 {offsets = [0, 0, 0], sizes = [2, 8, 8], strides = [1, 1, 1]} : vector<2x8x32xf32> to vector<2x8x8xf32>
    %280 = vector.extract_strided_slice %274 {offsets = [0, 0, 0], sizes = [2, 8, 8], strides = [1, 1, 1]} : vector<2x8x32xf32> to vector<2x8x8xf32>
    %281 = vector.extract_strided_slice %276 {offsets = [0, 0, 0], sizes = [2, 8, 8], strides = [1, 1, 1]} : vector<2x8x32xf32> to vector<2x8x8xf32>
    "tpu.trace_start"() <{level = 10 : i32, message = "bld,bmd->blm"}> : () -> ()
    %cst_119 = arith.constant dense<0.000000e+00> : vector<2x8x8xf32>
    %282 = tpu.matmul %279, %280, %cst_119 {dimension_numbers = #tpu.dot_dimension_numbers<[2], [2], [1], [1], [0, 0, 0, 1, 1, 1], [0], [0]>} : vector<2x8x8xf32>, vector<2x8x8xf32>, vector<2x8x8xf32> -> vector<2x8x8xf32>
    "tpu.trace_stop"() : () -> ()
    %cst_120 = arith.constant 0.353553385 : f32
    %283 = vector.broadcast %cst_120 : f32 to vector<2x8x8xf32>
    %284 = arith.mulf %282, %283 : vector<2x8x8xf32>
    %285 = arith.mulf %284, %13 : vector<2x8x8xf32>
    %cst_121 = arith.constant dense<0xFF800000> : vector<2x8xf32>
    %286 = vector.multi_reduction <maximumf>, %285, %cst_121 [2] : vector<2x8x8xf32> to vector<2x8xf32>
    %287 = vector.shape_cast %286 : vector<2x8xf32> to vector<2x8x1xf32>
    %288 = vector.broadcast %287 : vector<2x8x1xf32> to vector<2x8x8xf32>
    %289 = arith.subf %285, %288 : vector<2x8x8xf32>
    %290 = math.exp %289 : vector<2x8x8xf32>
    %cst_122 = arith.constant dense<0.000000e+00> : vector<2x8xf32>
    %291 = vector.multi_reduction <add>, %290, %cst_122 [2] : vector<2x8x8xf32> to vector<2x8xf32>
    %292 = vector.shape_cast %291 : vector<2x8xf32> to vector<2x8x1xf32>
    %293 = tpu.reciprocal %292 {approx = true} : vector<2x8x1xf32> -> vector<2x8x1xf32>
    %294 = vector.broadcast %293 : vector<2x8x1xf32> to vector<2x8x8xf32>
    %295 = arith.mulf %290, %294 : vector<2x8x8xf32>
    %c0_123 = arith.constant 0 : index
    %c0_124 = arith.constant 0 : index
    %c0_125 = arith.constant 0 : index
    %c0_126 = arith.constant 0 : index
    %296 = vector.load %arg28[%c0_123, %c0_124, %c0_125, %c0_126] : memref<4x2x8x8xf32, #tpu.memory_space<vmem>>, vector<1x2x8x8xf32>
    %297 = vector.shape_cast %296 : vector<1x2x8x8xf32> to vector<2x8x8xf32>
    %298 = vector.shape_cast %295 : vector<2x8x8xf32> to vector<1x2x8x8xf32>
    tpu.vector_store %arg28[%c0_123, %c0_124, %c0_125, %c0_126], %298 {strides = array<i32>} : memref<4x2x8x8xf32, #tpu.memory_space<vmem>>, vector<1x2x8x8xf32>,
    "tpu.trace_start"() <{level = 10 : i32, message = "blm,bmd->bld"}> : () -> ()
    %cst_127 = arith.constant dense<0.000000e+00> : vector<2x8x8xf32>
    %299 = tpu.matmul %295, %281, %cst_127 {dimension_numbers = #tpu.dot_dimension_numbers<[2], [1], [1], [2], [0, 0, 0, 1, 1, 2], [0], [0]>} : vector<2x8x8xf32>, vector<2x8x8xf32>, vector<2x8x8xf32> -> vector<2x8x8xf32>
    "tpu.trace_stop"() : () -> ()
    %300 = vector.shape_cast %299 : vector<2x8x8xf32> to vector<16x8xf32>
    %301 = vector.extract_strided_slice %278 {offsets = [0, 0, 0], sizes = [1, 8, 32], strides = [1, 1, 1]} : vector<4x8x32xf32> to vector<1x8x32xf32>
    %302 = vector.shape_cast %301 : vector<1x8x32xf32> to vector<8x32xf32>
    %cst_128 = arith.constant dense<0.000000e+00> : vector<16x32xf32>
    %303 = tpu.matmul %300, %302, %cst_128 {dimension_numbers = #tpu.dot_dimension_numbers<[1], [0], [0], [1], [0, 0, 1, 1], [], []>} : vector<16x8xf32>, vector<8x32xf32>, vector<16x32xf32> -> vector<16x32xf32>
    %304 = vector.extract_strided_slice %272 {offsets = [0, 0, 8], sizes = [2, 8, 8], strides = [1, 1, 1]} : vector<2x8x32xf32> to vector<2x8x8xf32>
    %305 = vector.extract_strided_slice %274 {offsets = [0, 0, 8], sizes = [2, 8, 8], strides = [1, 1, 1]} : vector<2x8x32xf32> to vector<2x8x8xf32>
    %306 = vector.extract_strided_slice %276 {offsets = [0, 0, 8], sizes = [2, 8, 8], strides = [1, 1, 1]} : vector<2x8x32xf32> to vector<2x8x8xf32>
    "tpu.trace_start"() <{level = 10 : i32, message = "bld,bmd->blm"}> : () -> ()
    %cst_129 = arith.constant dense<0.000000e+00> : vector<2x8x8xf32>
    %307 = tpu.matmul %304, %305, %cst_129 {dimension_numbers = #tpu.dot_dimension_numbers<[2], [2], [1], [1], [0, 0, 0, 1, 1, 1], [0], [0]>} : vector<2x8x8xf32>, vector<2x8x8xf32>, vector<2x8x8xf32> -> vector<2x8x8xf32>
    "tpu.trace_stop"() : () -> ()
    %cst_130 = arith.constant 0.353553385 : f32
    %308 = vector.broadcast %cst_130 : f32 to vector<2x8x8xf32>
    %309 = arith.mulf %307, %308 : vector<2x8x8xf32>
    %310 = arith.mulf %309, %13 : vector<2x8x8xf32>
    %cst_131 = arith.constant dense<0xFF800000> : vector<2x8xf32>
    %311 = vector.multi_reduction <maximumf>, %310, %cst_131 [2] : vector<2x8x8xf32> to vector<2x8xf32>
    %312 = vector.shape_cast %311 : vector<2x8xf32> to vector<2x8x1xf32>
    %313 = vector.broadcast %312 : vector<2x8x1xf32> to vector<2x8x8xf32>
    %314 = arith.subf %310, %313 : vector<2x8x8xf32>
    %315 = math.exp %314 : vector<2x8x8xf32>
    %cst_132 = arith.constant dense<0.000000e+00> : vector<2x8xf32>
    %316 = vector.multi_reduction <add>, %315, %cst_132 [2] : vector<2x8x8xf32> to vector<2x8xf32>
    %317 = vector.shape_cast %316 : vector<2x8xf32> to vector<2x8x1xf32>
    %318 = tpu.reciprocal %317 {approx = true} : vector<2x8x1xf32> -> vector<2x8x1xf32>
    %319 = vector.broadcast %318 : vector<2x8x1xf32> to vector<2x8x8xf32>
    %320 = arith.mulf %315, %319 : vector<2x8x8xf32>
    %c1_133 = arith.constant 1 : index
    %c0_134 = arith.constant 0 : index
    %c0_135 = arith.constant 0 : index
    %c0_136 = arith.constant 0 : index
    %321 = vector.load %arg28[%c1_133, %c0_134, %c0_135, %c0_136] : memref<4x2x8x8xf32, #tpu.memory_space<vmem>>, vector<1x2x8x8xf32>
    %322 = vector.shape_cast %321 : vector<1x2x8x8xf32> to vector<2x8x8xf32>
    %323 = vector.shape_cast %320 : vector<2x8x8xf32> to vector<1x2x8x8xf32>
    tpu.vector_store %arg28[%c1_133, %c0_134, %c0_135, %c0_136], %323 {strides = array<i32>} : memref<4x2x8x8xf32, #tpu.memory_space<vmem>>, vector<1x2x8x8xf32>,
    "tpu.trace_start"() <{level = 10 : i32, message = "blm,bmd->bld"}> : () -> ()
    %cst_137 = arith.constant dense<0.000000e+00> : vector<2x8x8xf32>
    %324 = tpu.matmul %320, %306, %cst_137 {dimension_numbers = #tpu.dot_dimension_numbers<[2], [1], [1], [2], [0, 0, 0, 1, 1, 2], [0], [0]>} : vector<2x8x8xf32>, vector<2x8x8xf32>, vector<2x8x8xf32> -> vector<2x8x8xf32>
    "tpu.trace_stop"() : () -> ()
    %325 = vector.shape_cast %324 : vector<2x8x8xf32> to vector<16x8xf32>
    %326 = vector.extract_strided_slice %278 {offsets = [1, 0, 0], sizes = [1, 8, 32], strides = [1, 1, 1]} : vector<4x8x32xf32> to vector<1x8x32xf32>
    %327 = vector.shape_cast %326 : vector<1x8x32xf32> to vector<8x32xf32>
    %cst_138 = arith.constant dense<0.000000e+00> : vector<16x32xf32>
    %328 = tpu.matmul %325, %327, %cst_138 {dimension_numbers = #tpu.dot_dimension_numbers<[1], [0], [0], [1], [0, 0, 1, 1], [], []>} : vector<16x8xf32>, vector<8x32xf32>, vector<16x32xf32> -> vector<16x32xf32>
    %329 = arith.addf %303, %328 : vector<16x32xf32>
    %330 = vector.extract_strided_slice %272 {offsets = [0, 0, 16], sizes = [2, 8, 8], strides = [1, 1, 1]} : vector<2x8x32xf32> to vector<2x8x8xf32>
    %331 = vector.extract_strided_slice %274 {offsets = [0, 0, 16], sizes = [2, 8, 8], strides = [1, 1, 1]} : vector<2x8x32xf32> to vector<2x8x8xf32>
    %332 = vector.extract_strided_slice %276 {offsets = [0, 0, 16], sizes = [2, 8, 8], strides = [1, 1, 1]} : vector<2x8x32xf32> to vector<2x8x8xf32>
    "tpu.trace_start"() <{level = 10 : i32, message = "bld,bmd->blm"}> : () -> ()
    %cst_139 = arith.constant dense<0.000000e+00> : vector<2x8x8xf32>
    %333 = tpu.matmul %330, %331, %cst_139 {dimension_numbers = #tpu.dot_dimension_numbers<[2], [2], [1], [1], [0, 0, 0, 1, 1, 1], [0], [0]>} : vector<2x8x8xf32>, vector<2x8x8xf32>, vector<2x8x8xf32> -> vector<2x8x8xf32>
    "tpu.trace_stop"() : () -> ()
    %cst_140 = arith.constant 0.353553385 : f32
    %334 = vector.broadcast %cst_140 : f32 to vector<2x8x8xf32>
    %335 = arith.mulf %333, %334 : vector<2x8x8xf32>
    %336 = arith.mulf %335, %13 : vector<2x8x8xf32>
    %cst_141 = arith.constant dense<0xFF800000> : vector<2x8xf32>
    %337 = vector.multi_reduction <maximumf>, %336, %cst_141 [2] : vector<2x8x8xf32> to vector<2x8xf32>
    %338 = vector.shape_cast %337 : vector<2x8xf32> to vector<2x8x1xf32>
    %339 = vector.broadcast %338 : vector<2x8x1xf32> to vector<2x8x8xf32>
    %340 = arith.subf %336, %339 : vector<2x8x8xf32>
    %341 = math.exp %340 : vector<2x8x8xf32>
    %cst_142 = arith.constant dense<0.000000e+00> : vector<2x8xf32>
    %342 = vector.multi_reduction <add>, %341, %cst_142 [2] : vector<2x8x8xf32> to vector<2x8xf32>
    %343 = vector.shape_cast %342 : vector<2x8xf32> to vector<2x8x1xf32>
    %344 = tpu.reciprocal %343 {approx = true} : vector<2x8x1xf32> -> vector<2x8x1xf32>
    %345 = vector.broadcast %344 : vector<2x8x1xf32> to vector<2x8x8xf32>
    %346 = arith.mulf %341, %345 : vector<2x8x8xf32>
    %c2 = arith.constant 2 : index
    %c0_143 = arith.constant 0 : index
    %c0_144 = arith.constant 0 : index
    %c0_145 = arith.constant 0 : index
    %347 = vector.load %arg28[%c2, %c0_143, %c0_144, %c0_145] : memref<4x2x8x8xf32, #tpu.memory_space<vmem>>, vector<1x2x8x8xf32>
    %348 = vector.shape_cast %347 : vector<1x2x8x8xf32> to vector<2x8x8xf32>
    %349 = vector.shape_cast %346 : vector<2x8x8xf32> to vector<1x2x8x8xf32>
    tpu.vector_store %arg28[%c2, %c0_143, %c0_144, %c0_145], %349 {strides = array<i32>} : memref<4x2x8x8xf32, #tpu.memory_space<vmem>>, vector<1x2x8x8xf32>,
    "tpu.trace_start"() <{level = 10 : i32, message = "blm,bmd->bld"}> : () -> ()
    %cst_146 = arith.constant dense<0.000000e+00> : vector<2x8x8xf32>
    %350 = tpu.matmul %346, %332, %cst_146 {dimension_numbers = #tpu.dot_dimension_numbers<[2], [1], [1], [2], [0, 0, 0, 1, 1, 2], [0], [0]>} : vector<2x8x8xf32>, vector<2x8x8xf32>, vector<2x8x8xf32> -> vector<2x8x8xf32>
    "tpu.trace_stop"() : () -> ()
    %351 = vector.shape_cast %350 : vector<2x8x8xf32> to vector<16x8xf32>
    %352 = vector.extract_strided_slice %278 {offsets = [2, 0, 0], sizes = [1, 8, 32], strides = [1, 1, 1]} : vector<4x8x32xf32> to vector<1x8x32xf32>
    %353 = vector.shape_cast %352 : vector<1x8x32xf32> to vector<8x32xf32>
    %cst_147 = arith.constant dense<0.000000e+00> : vector<16x32xf32>
    %354 = tpu.matmul %351, %353, %cst_147 {dimension_numbers = #tpu.dot_dimension_numbers<[1], [0], [0], [1], [0, 0, 1, 1], [], []>} : vector<16x8xf32>, vector<8x32xf32>, vector<16x32xf32> -> vector<16x32xf32>
    %355 = arith.addf %329, %354 : vector<16x32xf32>
    %356 = vector.extract_strided_slice %272 {offsets = [0, 0, 24], sizes = [2, 8, 8], strides = [1, 1, 1]} : vector<2x8x32xf32> to vector<2x8x8xf32>
    %357 = vector.extract_strided_slice %274 {offsets = [0, 0, 24], sizes = [2, 8, 8], strides = [1, 1, 1]} : vector<2x8x32xf32> to vector<2x8x8xf32>
    %358 = vector.extract_strided_slice %276 {offsets = [0, 0, 24], sizes = [2, 8, 8], strides = [1, 1, 1]} : vector<2x8x32xf32> to vector<2x8x8xf32>
    "tpu.trace_start"() <{level = 10 : i32, message = "bld,bmd->blm"}> : () -> ()
    %cst_148 = arith.constant dense<0.000000e+00> : vector<2x8x8xf32>
    %359 = tpu.matmul %356, %357, %cst_148 {dimension_numbers = #tpu.dot_dimension_numbers<[2], [2], [1], [1], [0, 0, 0, 1, 1, 1], [0], [0]>} : vector<2x8x8xf32>, vector<2x8x8xf32>, vector<2x8x8xf32> -> vector<2x8x8xf32>
    "tpu.trace_stop"() : () -> ()
    %cst_149 = arith.constant 0.353553385 : f32
    %360 = vector.broadcast %cst_149 : f32 to vector<2x8x8xf32>
    %361 = arith.mulf %359, %360 : vector<2x8x8xf32>
    %362 = arith.mulf %361, %13 : vector<2x8x8xf32>
    %cst_150 = arith.constant dense<0xFF800000> : vector<2x8xf32>
    %363 = vector.multi_reduction <maximumf>, %362, %cst_150 [2] : vector<2x8x8xf32> to vector<2x8xf32>
    %364 = vector.shape_cast %363 : vector<2x8xf32> to vector<2x8x1xf32>
    %365 = vector.broadcast %364 : vector<2x8x1xf32> to vector<2x8x8xf32>
    %366 = arith.subf %362, %365 : vector<2x8x8xf32>
    %367 = math.exp %366 : vector<2x8x8xf32>
    %cst_151 = arith.constant dense<0.000000e+00> : vector<2x8xf32>
    %368 = vector.multi_reduction <add>, %367, %cst_151 [2] : vector<2x8x8xf32> to vector<2x8xf32>
    %369 = vector.shape_cast %368 : vector<2x8xf32> to vector<2x8x1xf32>
    %370 = tpu.reciprocal %369 {approx = true} : vector<2x8x1xf32> -> vector<2x8x1xf32>
    %371 = vector.broadcast %370 : vector<2x8x1xf32> to vector<2x8x8xf32>
    %372 = arith.mulf %367, %371 : vector<2x8x8xf32>
    %c3 = arith.constant 3 : index
    %c0_152 = arith.constant 0 : index
    %c0_153 = arith.constant 0 : index
    %c0_154 = arith.constant 0 : index
    %373 = vector.load %arg28[%c3, %c0_152, %c0_153, %c0_154] : memref<4x2x8x8xf32, #tpu.memory_space<vmem>>, vector<1x2x8x8xf32>
    %374 = vector.shape_cast %373 : vector<1x2x8x8xf32> to vector<2x8x8xf32>
    %375 = vector.shape_cast %372 : vector<2x8x8xf32> to vector<1x2x8x8xf32>
    tpu.vector_store %arg28[%c3, %c0_152, %c0_153, %c0_154], %375 {strides = array<i32>} : memref<4x2x8x8xf32, #tpu.memory_space<vmem>>, vector<1x2x8x8xf32>,
    "tpu.trace_start"() <{level = 10 : i32, message = "blm,bmd->bld"}> : () -> ()
    %cst_155 = arith.constant dense<0.000000e+00> : vector<2x8x8xf32>
    %376 = tpu.matmul %372, %358, %cst_155 {dimension_numbers = #tpu.dot_dimension_numbers<[2], [1], [1], [2], [0, 0, 0, 1, 1, 2], [0], [0]>} : vector<2x8x8xf32>, vector<2x8x8xf32>, vector<2x8x8xf32> -> vector<2x8x8xf32>
    "tpu.trace_stop"() : () -> ()
    %377 = vector.shape_cast %376 : vector<2x8x8xf32> to vector<16x8xf32>
    %378 = vector.extract_strided_slice %278 {offsets = [3, 0, 0], sizes = [1, 8, 32], strides = [1, 1, 1]} : vector<4x8x32xf32> to vector<1x8x32xf32>
    %379 = vector.shape_cast %378 : vector<1x8x32xf32> to vector<8x32xf32>
    %cst_156 = arith.constant dense<0.000000e+00> : vector<16x32xf32>
    %380 = tpu.matmul %377, %379, %cst_156 {dimension_numbers = #tpu.dot_dimension_numbers<[1], [0], [0], [1], [0, 0, 1, 1], [], []>} : vector<16x8xf32>, vector<8x32xf32>, vector<16x32xf32> -> vector<16x32xf32>
    %381 = arith.addf %355, %380 : vector<16x32xf32>
    %c1_157 = arith.constant 1 : index
    %c0_158 = arith.constant 0 : index
    %c0_159 = arith.constant 0 : index
    %382 = vector.load %arg12[%c1_157, %c0_158, %c0_159] : memref<2x1x32xf32, #tpu.memory_space<vmem>>, vector<1x1x32xf32>
    %383 = vector.shape_cast %382 : vector<1x1x32xf32> to vector<1x32xf32>
    %384 = vector.broadcast %383 : vector<1x32xf32> to vector<16x32xf32>
    %385 = arith.addf %381, %384 : vector<16x32xf32>
    %386 = arith.addf %263, %385 : vector<16x32xf32>
    %c1_160 = arith.constant 1 : index
    %c0_161 = arith.constant 0 : index
    %c0_162 = arith.constant 0 : index
    %387 = vector.load %arg13[%c1_160, %c0_161, %c0_162] : memref<2x1x32xf32, #tpu.memory_space<vmem>>, vector<1x1x32xf32>
    %388 = vector.shape_cast %387 : vector<1x1x32xf32> to vector<1x32xf32>
    %c1_163 = arith.constant 1 : index
    %c0_164 = arith.constant 0 : index
    %c0_165 = arith.constant 0 : index
    %389 = vector.load %arg14[%c1_163, %c0_164, %c0_165] : memref<2x1x32xf32, #tpu.memory_space<vmem>>, vector<1x1x32xf32>
    %390 = vector.shape_cast %389 : vector<1x1x32xf32> to vector<1x32xf32>
    %cst_166 = arith.constant dense<0.000000e+00> : vector<16xf32>
    %391 = vector.multi_reduction <add>, %386, %cst_166 [1] : vector<16x32xf32> to vector<16xf32>
    %392 = vector.shape_cast %391 : vector<16xf32> to vector<16x1xf32>
    %cst_167 = arith.constant 3.200000e+01 : f32
    %393 = vector.broadcast %cst_167 : f32 to vector<16x1xf32>
    %394 = arith.divf %392, %393 : vector<16x1xf32>
    %395 = vector.broadcast %394 : vector<16x1xf32> to vector<16x32xf32>
    %396 = arith.subf %386, %395 : vector<16x32xf32>
    %397 = arith.mulf %396, %396 : vector<16x32xf32>
    %cst_168 = arith.constant dense<0.000000e+00> : vector<16xf32>
    %398 = vector.multi_reduction <add>, %397, %cst_168 [1] : vector<16x32xf32> to vector<16xf32>
    %399 = vector.shape_cast %398 : vector<16xf32> to vector<16x1xf32>
    %cst_169 = arith.constant 3.200000e+01 : f32
    %400 = vector.broadcast %cst_169 : f32 to vector<16x1xf32>
    %401 = arith.divf %399, %400 : vector<16x1xf32>
    %402 = vector.broadcast %394 : vector<16x1xf32> to vector<16x32xf32>
    %403 = arith.subf %386, %402 : vector<16x32xf32>
    %cst_170 = arith.constant 9.99999974E-6 : f32
    %404 = vector.broadcast %cst_170 : f32 to vector<16x1xf32>
    %405 = arith.addf %401, %404 : vector<16x1xf32>
    %406 = math.rsqrt %405 : vector<16x1xf32>
    %407 = vector.broadcast %406 : vector<16x1xf32> to vector<16x32xf32>
    %408 = arith.mulf %403, %407 : vector<16x32xf32>
    %409 = vector.broadcast %388 : vector<1x32xf32> to vector<16x32xf32>
    %410 = arith.mulf %408, %409 : vector<16x32xf32>
    %411 = vector.broadcast %390 : vector<1x32xf32> to vector<16x32xf32>
    %412 = arith.addf %410, %411 : vector<16x32xf32>
    %c1_171 = arith.constant 1 : index
    %c0_172 = arith.constant 0 : index
    %c0_173 = arith.constant 0 : index
    %413 = vector.load %arg17[%c1_171, %c0_172, %c0_173] : memref<2x32x32xf32, #tpu.memory_space<vmem>>, vector<1x32x32xf32>
    %414 = vector.shape_cast %413 : vector<1x32x32xf32> to vector<32x32xf32>
    %cst_174 = arith.constant dense<0.000000e+00> : vector<16x32xf32>
    %415 = tpu.matmul %412, %414, %cst_174 {dimension_numbers = #tpu.dot_dimension_numbers<[1], [0], [0], [1], [0, 0, 1, 1], [], []>} : vector<16x32xf32>, vector<32x32xf32>, vector<16x32xf32> -> vector<16x32xf32>
    %c1_175 = arith.constant 1 : index
    %c0_176 = arith.constant 0 : index
    %c0_177 = arith.constant 0 : index
    %416 = vector.load %arg18[%c1_175, %c0_176, %c0_177] : memref<2x1x32xf32, #tpu.memory_space<vmem>>, vector<1x1x32xf32>
    %417 = vector.shape_cast %416 : vector<1x1x32xf32> to vector<1x32xf32>
    %418 = vector.broadcast %417 : vector<1x32xf32> to vector<16x32xf32>
    %419 = arith.addf %415, %418 : vector<16x32xf32>
    %cst_178 = arith.constant 5.000000e-01 : f32
    %420 = vector.broadcast %cst_178 : f32 to vector<16x32xf32>
    %421 = arith.mulf %420, %419 : vector<16x32xf32>
    %cst_179 = arith.constant 0.707106769 : f32
    %422 = vector.broadcast %cst_179 : f32 to vector<16x32xf32>
    %423 = arith.mulf %419, %422 : vector<16x32xf32>
    %424 = math.erf %423 : vector<16x32xf32>
    %cst_180 = arith.constant 1.000000e+00 : f32
    %425 = vector.broadcast %cst_180 : f32 to vector<16x32xf32>
    %426 = arith.addf %425, %424 : vector<16x32xf32>
    %427 = arith.mulf %421, %426 : vector<16x32xf32>
    %c1_181 = arith.constant 1 : index
    %c0_182 = arith.constant 0 : index
    %c0_183 = arith.constant 0 : index
    %428 = vector.load %arg19[%c1_181, %c0_182, %c0_183] : memref<2x32x32xf32, #tpu.memory_space<vmem>>, vector<1x32x32xf32>
    %429 = vector.shape_cast %428 : vector<1x32x32xf32> to vector<32x32xf32>
    %cst_184 = arith.constant dense<0.000000e+00> : vector<16x32xf32>
    %430 = tpu.matmul %427, %429, %cst_184 {dimension_numbers = #tpu.dot_dimension_numbers<[1], [0], [0], [1], [0, 0, 1, 1], [], []>} : vector<16x32xf32>, vector<32x32xf32>, vector<16x32xf32> -> vector<16x32xf32>
    %c1_185 = arith.constant 1 : index
    %c0_186 = arith.constant 0 : index
    %c0_187 = arith.constant 0 : index
    %431 = vector.load %arg20[%c1_185, %c0_186, %c0_187] : memref<2x1x32xf32, #tpu.memory_space<vmem>>, vector<1x1x32xf32>
    %432 = vector.shape_cast %431 : vector<1x1x32xf32> to vector<1x32xf32>
    %433 = vector.broadcast %432 : vector<1x32xf32> to vector<16x32xf32>
    %434 = arith.addf %430, %433 : vector<16x32xf32>
    %435 = arith.addf %412, %434 : vector<16x32xf32>
    %c1_188 = arith.constant 1 : index
    %c0_189 = arith.constant 0 : index
    %c0_190 = arith.constant 0 : index
    %436 = vector.load %arg15[%c1_188, %c0_189, %c0_190] : memref<2x1x32xf32, #tpu.memory_space<vmem>>, vector<1x1x32xf32>
    %437 = vector.shape_cast %436 : vector<1x1x32xf32> to vector<1x32xf32>
    %c1_191 = arith.constant 1 : index
    %c0_192 = arith.constant 0 : index
    %c0_193 = arith.constant 0 : index
    %438 = vector.load %arg16[%c1_191, %c0_192, %c0_193] : memref<2x1x32xf32, #tpu.memory_space<vmem>>, vector<1x1x32xf32>
    %439 = vector.shape_cast %438 : vector<1x1x32xf32> to vector<1x32xf32>
    %cst_194 = arith.constant dense<0.000000e+00> : vector<16xf32>
    %440 = vector.multi_reduction <add>, %435, %cst_194 [1] : vector<16x32xf32> to vector<16xf32>
    %441 = vector.shape_cast %440 : vector<16xf32> to vector<16x1xf32>
    %cst_195 = arith.constant 3.200000e+01 : f32
    %442 = vector.broadcast %cst_195 : f32 to vector<16x1xf32>
    %443 = arith.divf %441, %442 : vector<16x1xf32>
    %444 = vector.broadcast %443 : vector<16x1xf32> to vector<16x32xf32>
    %445 = arith.subf %435, %444 : vector<16x32xf32>
    %446 = arith.mulf %445, %445 : vector<16x32xf32>
    %cst_196 = arith.constant dense<0.000000e+00> : vector<16xf32>
    %447 = vector.multi_reduction <add>, %446, %cst_196 [1] : vector<16x32xf32> to vector<16xf32>
    %448 = vector.shape_cast %447 : vector<16xf32> to vector<16x1xf32>
    %cst_197 = arith.constant 3.200000e+01 : f32
    %449 = vector.broadcast %cst_197 : f32 to vector<16x1xf32>
    %450 = arith.divf %448, %449 : vector<16x1xf32>
    %451 = vector.broadcast %443 : vector<16x1xf32> to vector<16x32xf32>
    %452 = arith.subf %435, %451 : vector<16x32xf32>
    %cst_198 = arith.constant 9.99999974E-6 : f32
    %453 = vector.broadcast %cst_198 : f32 to vector<16x1xf32>
    %454 = arith.addf %450, %453 : vector<16x1xf32>
    %455 = math.rsqrt %454 : vector<16x1xf32>
    %456 = vector.broadcast %455 : vector<16x1xf32> to vector<16x32xf32>
    %457 = arith.mulf %452, %456 : vector<16x32xf32>
    %458 = vector.broadcast %437 : vector<1x32xf32> to vector<16x32xf32>
    %459 = arith.mulf %457, %458 : vector<16x32xf32>
    %460 = vector.broadcast %439 : vector<1x32xf32> to vector<16x32xf32>
    %461 = arith.addf %459, %460 : vector<16x32xf32>
    %c0_199 = arith.constant 0 : index
    %c0_200 = arith.constant 0 : index
    %462 = vector.load %arg21[%c0_199, %c0_200] : memref<32x32xf32, #tpu.memory_space<vmem>>, vector<32x32xf32>
    %cst_201 = arith.constant dense<0.000000e+00> : vector<16x32xf32>
    %463 = tpu.matmul %461, %462, %cst_201 {dimension_numbers = #tpu.dot_dimension_numbers<[1], [0], [0], [1], [0, 0, 1, 1], [], []>} : vector<16x32xf32>, vector<32x32xf32>, vector<16x32xf32> -> vector<16x32xf32>
    %c0_202 = arith.constant 0 : index
    %c0_203 = arith.constant 0 : index
    %464 = vector.load %arg22[%c0_202, %c0_203] : memref<1x32xf32, #tpu.memory_space<vmem>>, vector<1x32xf32>
    %465 = vector.broadcast %464 : vector<1x32xf32> to vector<16x32xf32>
    %466 = arith.addf %463, %465 : vector<16x32xf32>
    %cst_204 = arith.constant 5.000000e-01 : f32
    %467 = vector.broadcast %cst_204 : f32 to vector<16x32xf32>
    %468 = arith.mulf %467, %466 : vector<16x32xf32>
    %cst_205 = arith.constant 0.707106769 : f32
    %469 = vector.broadcast %cst_205 : f32 to vector<16x32xf32>
    %470 = arith.mulf %466, %469 : vector<16x32xf32>
    %471 = math.erf %470 : vector<16x32xf32>
    %cst_206 = arith.constant 1.000000e+00 : f32
    %472 = vector.broadcast %cst_206 : f32 to vector<16x32xf32>
    %473 = arith.addf %472, %471 : vector<16x32xf32>
    %474 = arith.mulf %468, %473 : vector<16x32xf32>
    %c0_207 = arith.constant 0 : index
    %c0_208 = arith.constant 0 : index
    %475 = vector.load %arg23[%c0_207, %c0_208] : memref<1x32xf32, #tpu.memory_space<vmem>>, vector<1x32xf32>
    %c0_209 = arith.constant 0 : index
    %c0_210 = arith.constant 0 : index
    %476 = vector.load %arg24[%c0_209, %c0_210] : memref<1x32xf32, #tpu.memory_space<vmem>>, vector<1x32xf32>
    %cst_211 = arith.constant dense<0.000000e+00> : vector<16xf32>
    %477 = vector.multi_reduction <add>, %474, %cst_211 [1] : vector<16x32xf32> to vector<16xf32>
    %478 = vector.shape_cast %477 : vector<16xf32> to vector<16x1xf32>
    %cst_212 = arith.constant 3.200000e+01 : f32
    %479 = vector.broadcast %cst_212 : f32 to vector<16x1xf32>
    %480 = arith.divf %478, %479 : vector<16x1xf32>
    %481 = vector.broadcast %480 : vector<16x1xf32> to vector<16x32xf32>
    %482 = arith.subf %474, %481 : vector<16x32xf32>
    %483 = arith.mulf %482, %482 : vector<16x32xf32>
    %cst_213 = arith.constant dense<0.000000e+00> : vector<16xf32>
    %484 = vector.multi_reduction <add>, %483, %cst_213 [1] : vector<16x32xf32> to vector<16xf32>
    %485 = vector.shape_cast %484 : vector<16xf32> to vector<16x1xf32>
    %cst_214 = arith.constant 3.200000e+01 : f32
    %486 = vector.broadcast %cst_214 : f32 to vector<16x1xf32>
    %487 = arith.divf %485, %486 : vector<16x1xf32>
    %488 = vector.broadcast %480 : vector<16x1xf32> to vector<16x32xf32>
    %489 = arith.subf %474, %488 : vector<16x32xf32>
    %cst_215 = arith.constant 9.99999974E-6 : f32
    %490 = vector.broadcast %cst_215 : f32 to vector<16x1xf32>
    %491 = arith.addf %487, %490 : vector<16x1xf32>
    %492 = math.rsqrt %491 : vector<16x1xf32>
    %493 = vector.broadcast %492 : vector<16x1xf32> to vector<16x32xf32>
    %494 = arith.mulf %489, %493 : vector<16x32xf32>
    %495 = vector.broadcast %475 : vector<1x32xf32> to vector<16x32xf32>
    %496 = arith.mulf %494, %495 : vector<16x32xf32>
    %497 = vector.broadcast %476 : vector<1x32xf32> to vector<16x32xf32>
    %498 = arith.addf %496, %497 : vector<16x32xf32>
    %c0_216 = arith.constant 0 : index
    %c0_217 = arith.constant 0 : index
    %499 = vector.load %arg25[%c0_216, %c0_217] : memref<32x8xf32, #tpu.memory_space<vmem>>, vector<32x8xf32>
    %cst_218 = arith.constant dense<0.000000e+00> : vector<16x8xf32>
    %500 = tpu.matmul %498, %499, %cst_218 {dimension_numbers = #tpu.dot_dimension_numbers<[1], [0], [0], [1], [0, 0, 1, 1], [], []>} : vector<16x32xf32>, vector<32x8xf32>, vector<16x8xf32> -> vector<16x8xf32>
    %c0_219 = arith.constant 0 : index
    %c0_220 = arith.constant 0 : index
    %501 = vector.load %arg26[%c0_219, %c0_220] : memref<1x8xf32, #tpu.memory_space<vmem>>, vector<1x8xf32>
    %502 = vector.broadcast %501 : vector<1x8xf32> to vector<16x8xf32>
    %503 = arith.addf %500, %502 : vector<16x8xf32>
    %c0_221 = arith.constant 0 : index
    %c0_222 = arith.constant 0 : index
    %504 = vector.load %arg27[%c0_221, %c0_222] : memref<16x8xf32, #tpu.memory_space<vmem>>, vector<16x8xf32>
    tpu.vector_store %arg27[%c0_221, %c0_222], %503 {strides = array<i32>} : memref<16x8xf32, #tpu.memory_space<vmem>>, vector<16x8xf32>,
    return
  }
}

</mosaic_0001>

<bundles_post_ra>
// kernel: transformer_comm_forward.1
= control target key start
LH: loop header
LB: loop body
LE: loop exit
PB: predicated region body
PF: predicated region fallthrough
CT: control target
= control target key end

     0   :  { %s4516_s0 = inlined_call_operand.vmem [shape: f32[16,16], index: 0, kind: input, shape index: {}]   ;;  %s4517_s1 = inlined_call_operand.vmem [shape: f32[16,32], index: 1, kind: input, shape index: {}]   ;;  %s4518_s2 = inlined_call_operand.hbm [shape: f32[2,8,8], index: 2, kind: input, shape index: {}]   ;;  %s4519_s3 = inlined_call_operand.vmem [shape: f32[1,16], index: 3, kind: input, shape index: {}]   ;;  %s4520_s4 = inlined_call_operand.hbm [shape: f32[1,16], index: 4, kind: input, shape index: {}]   ;;  %s4521_s5 = inlined_call_operand.hbm [shape: f32[16,32], index: 5, kind: input, shape index: {}]   ;;  %s4522_s6 = inlined_call_operand.hbm [shape: f32[1,32], index: 6, kind: input, shape index: {}]   ;;  %s4523_s7 = inlined_call_operand.hbm [shape: f32[1,32], index: 7, kind: input, shape index: {}]   ;;  %s4524_s8 = inlined_call_operand.hbm [shape: f32[1,32], index: 8, kind: input, shape index: {}]   ;;  %s4525_s9 = inlined_call_operand.vmem [shape: f32[2,32,96], index: 9, kind: input, shape index: {}]   ;;  %s4526_s10 = inlined_call_operand.hbm [shape: f32[2,1,96], index: 10, kind: input, shape index: {}]   ;;  %s4527_s11 = inlined_call_operand.hbm [shape: f32[2,4,8,32], index: 11, kind: input, shape index: {}]   ;;  %s4528_s12 = inlined_call_operand.hbm [shape: f32[2,1,32], index: 12, kind: input, shape index: {}]   ;;  %s4529_s13 = inlined_call_operand.hbm [shape: f32[2,1,32], index: 13, kind: input, shape index: {}]   ;;  %s4530_s14 = inlined_call_operand.hbm [shape: f32[2,1,32], index: 14, kind: input, shape index: {}]   ;;  %s4531_s15 = inlined_call_operand.hbm [shape: f32[2,1,32], index: 15, kind: input, shape index: {}]   ;;  %s4532_s16 = inlined_call_operand.hbm [shape: f32[2,1,32], index: 16, kind: input, shape index: {}]   ;;  %s4533_s17 = inlined_call_operand.hbm [shape: f32[2,32,32], index: 17, kind: input, shape index: {}]   ;;  %s4534_s18 = inlined_call_operand.hbm [shape: f32[2,1,32], index: 18, kind: input, shape index: {}]   ;;  %s4535_s19 = inlined_call_operand.hbm [shape: f32[2,32,32], index: 19, kind: input, shape index: {}]   ;;  %s4536_s20 = inlined_call_operand.hbm [shape: f32[2,1,32], index: 20, kind: input, shape index: {}]   ;;  %s4537_s21 = inlined_call_operand.hbm [shape: f32[32,32], index: 21, kind: input, shape index: {}]   ;;  %s4538_s22 = inlined_call_operand.hbm [shape: f32[1,32], index: 22, kind: input, shape index: {}]   ;;  %s4539_s23 = inlined_call_operand.hbm [shape: f32[1,32], index: 23, kind: input, shape index: {}]   ;;  %s4540_s24 = inlined_call_operand.hbm [shape: f32[1,32], index: 24, kind: input, shape index: {}]   ;;  %s4541_s25 = inlined_call_operand.vmem [shape: f32[32,8], index: 25, kind: input, shape index: {}]   ;;  %s4542_s26 = inlined_call_operand.hbm [shape: f32[1,8], index: 26, kind: input, shape index: {}]   ;;  %s4543_s27 = inlined_call_operand.hbm [shape: f32[16,8], index: 27, kind: output, shape index: {0}]   ;;  %s4544_s28 = inlined_call_operand.vmem [shape: f32[4,2,8,8], index: 28, kind: output, shape index: {1}]  }
   0x1   :  { %4550 = sst [smem:[#allocation51_spill]] %s4516_s0 }
   0x2   :  { %4551 = sst [smem:[#allocation52_spill]] %s4517_s1 }
   0x3   :  { %4552 = sst [smem:[#allocation53_spill]] %s4518_s2 }
   0x4   :  { %4553 = sst [smem:[#allocation54_spill]] %s4519_s3 }
   0x5   :  { %4554 = sst [smem:[#allocation55_spill]] %s4520_s4 }
   0x6   :  { %4555 = sst [smem:[#allocation56_spill]] %s4521_s5 }
   0x7   :  { %4556 = sst [smem:[#allocation57_spill]] %s4522_s6 }
   0x8   :  { %4557 = sst [smem:[#allocation58_spill]] %s4523_s7 }
   0x9   :  { %4558 = sst [smem:[#allocation59_spill]] %s4524_s8 }
   0xa   :  { %4559 = sst [smem:[#allocation60_spill]] %s4525_s9 }
   0xb   :  { %4560 = sst [smem:[#allocation61_spill]] %s4526_s10 }
   0xc   :  { %4561 = sst [smem:[#allocation62_spill]] %s4527_s11 }
   0xd   :  { %4562 = sst [smem:[#allocation63_spill]] %s4528_s12 }
   0xe   :  { %4563 = sst [smem:[#allocation64_spill]] %s4541_s25 }
   0xf   :  { %4564 = sst [smem:[#allocation65_spill]] %s4543_s27 }
  0x10   :  { %4565 = sst [smem:[#allocation66_spill]] %s4544_s28 }
  0x11   :  { %34 = vsyncpa [#allocation3], 0 }
  0x12   :  { %35 = vsyncpa [#allocation6], 0 }
  0x13   :  { %36 = vsyncpa [#allocation9], 0 }
  0x14   :  { %37 = vsyncpa [#allocation12], 0 }
  0x15   :  { %38 = vsyncpa [#allocation15], 0 }
  0x16   :  { %39 = vsyncpa [#allocation18], 0 }
  0x17   :  { %40 = vsyncpa [#allocation21], 0 }
  0x18   :  { %41 = vsyncpa [#allocation24], 0 }
  0x19   :  { %42 = vsyncpa [#allocation27], 0 }
  0x1a   :  { %43 = vsyncpa [#allocation30], 0 }
  0x1b   :  { %44 = vsyncpa [#allocation33], 0 }
  0x1c   :  { %45 = vsyncpa [#allocation36], 0  ;;  %s4566_s9 = sld [smem:[#allocation55_spill]] }
  0x22   :  { %s71_s30 = sshll.u32 %s4566_s9, 4  ;;  %s72_s30 = int_to_ptr.hbm [resolvable:$true] %s71_s30 }
  0x23   :  { %46 = vsyncpa [#allocation4], 0  ;;  %s3781_s3 = smov [#allocation5]   ;;  %s4567_s11 = sld [smem:[#allocation57_spill]] }
  0x24   :  { %s73_s6 = sshll.u32 %s3781_s3, 4  ;;  %s3782_s2 = smov [#allocation8]   ;;  %s74_s6 = int_to_ptr.vmem [resolvable:$true] %s73_s6 }
  0x25   :  { %76 = dma.hbm_to_vmem [thread:$0]  %s72_s30, 16, %s74_s6, [#allocation6]  }
  0x26   :  { %s97_s7 = sshll.u32 %s3782_s2, 4  ;;  %s4568_s4 = sld [smem:[#allocation59_spill]]  ;;  %s98_s7 = int_to_ptr.vmem [resolvable:$true] %s97_s7 }
  0x27   :  { %s3783_s8 = smov [#allocation11]   ;;  %s4569_s25 = sld [smem:[#allocation62_spill]] }
  0x28   :  { %s119_s5 = sshll.u32 %s3783_s8, 4  ;;  %s3784_s30 = smov [#allocation14]   ;;  %s120_s5 = int_to_ptr.vmem [resolvable:$true] %s119_s5 }
  0x29   :  { %s95_s29 = sshll.u32 %s4567_s11, 4  ;;  %s144_s6 = sshll.u32 %s3784_s30, 4  ;;  %s96_s29 = int_to_ptr.hbm [resolvable:$true] %s95_s29  ;;  %s145_s6 = int_to_ptr.vmem [resolvable:$true] %s144_s6 }
  0x2a   :  { %100 = dma.hbm_to_vmem [thread:$0]  %s96_s29, 16, %s98_s7, [#allocation9]  }
  0x2b   :  { %s3785_s10 = smov 128   ;;  %s3786_s0 = smov 8  }
  0x2c   :  { %s117_s27 = sshll.u32 %s4568_s4, 4  ;;  %s168_s2 = sshll.u32 %s4529_s13, 4  ;;  %s118_s27 = int_to_ptr.hbm [resolvable:$true] %s117_s27  ;;  %s169_s2 = int_to_ptr.hbm [resolvable:$true] %s168_s2 }
  0x2d   :  { %s142_s28 = sshll.u32 %s4569_s25, 4  ;;  %s3787_s7 = smov [#allocation17]   ;;  %s143_s28 = int_to_ptr.hbm [resolvable:$true] %s142_s28 }
  0x2e   :  { %122 = dma.hbm_to_vmem [thread:$0]  %s118_s27, 16, %s120_s5, [#allocation12]  }
  0x2f   :  { %150 = dma.hbm_to_vmem [thread:$0]  %s143_s28, 1024, %s145_s6, [#allocation15], %s3785_s10, %s3785_s10, %s3786_s0  }
  0x30   :  { %s170_s12 = sshll.u32 %s3787_s7, 4  ;;  %s194_s1 = sshll.u32 %s4531_s15, 4  ;;  %s171_s12 = int_to_ptr.vmem [resolvable:$true] %s170_s12  ;;  %s195_s1 = int_to_ptr.hbm [resolvable:$true] %s194_s1 }
  0x31   :  { %s3788_s4 = smov 16   ;;  %s3789_s8 = smov 1  }
  0x32   :  { %176 = dma.hbm_to_vmem [thread:$0]  %s169_s2, 32, %s171_s12, [#allocation18], %s3788_s4, %s3788_s4, %s3789_s8  }
  0x33   :  { %s3790_s28 = smov [#allocation20]   ;;  %s220_s13 = sshll.u32 %s4533_s17, 4  ;;  %s221_s13 = int_to_ptr.hbm [resolvable:$true] %s220_s13 }
  0x34   :  { %s196_s5 = sshll.u32 %s3790_s28, 4  ;;  %s246_s6 = sshll.u32 %s4535_s19, 4  ;;  %s197_s5 = int_to_ptr.vmem [resolvable:$true] %s196_s5  ;;  %s247_s6 = int_to_ptr.hbm [resolvable:$true] %s246_s6 }
  0x35   :  { %202 = dma.hbm_to_vmem [thread:$0]  %s195_s1, 32, %s197_s5, [#allocation21], %s3788_s4, %s3788_s4, %s3789_s8  }
  0x36   :  { %s3791_s11 = smov [#allocation23]   ;;  %s3792_s2 = smov [#allocation26]  }
  0x37   :  { %s222_s29 = sshll.u32 %s3791_s11, 4  ;;  %s248_s17 = sshll.u32 %s3792_s2, 4  ;;  %s223_s29 = int_to_ptr.vmem [resolvable:$true] %s222_s29  ;;  %s249_s17 = int_to_ptr.vmem [resolvable:$true] %s248_s17 }
  0x38   :  { %228 = dma.hbm_to_vmem [thread:$0]  %s221_s13, 1024, %s223_s29, [#allocation24], %s3785_s10, %s3785_s10, %s3786_s0  }
  0x39   :  { %s272_s25 = sshll.u32 %s4537_s21, 4  ;;  %s297_s1 = sshll.u32 %s4539_s23, 4  ;;  %s273_s25 = int_to_ptr.hbm [resolvable:$true] %s272_s25  ;;  %s298_s1 = int_to_ptr.hbm [resolvable:$true] %s297_s1 }
  0x3a   :  { %254 = dma.hbm_to_vmem [thread:$0]  %s247_s6, 1024, %s249_s17, [#allocation27], %s3785_s10, %s3785_s10, %s3786_s0  }
  0x3b   :  { %s3793_s28 = smov [#allocation29]   ;;  %s3794_s9 = smov [#allocation32]  }
  0x3c   :  { %s274_s5 = sshll.u32 %s3793_s28, 4  ;;  %s299_s21 = sshll.u32 %s3794_s9, 4  ;;  %s275_s5 = int_to_ptr.vmem [resolvable:$true] %s274_s5  ;;  %s300_s21 = int_to_ptr.vmem [resolvable:$true] %s299_s21 }
  0x3d   :  { %280 = dma.hbm_to_vmem [thread:$0]  %s273_s25, 512, %s275_s5, [#allocation30], %s3785_s10, %s3785_s10, %s3786_s0  }
  0x3e   :  { %s4570_s15 = sld [smem:[#allocation53_spill]]  ;;  %s3795_s2 = smov [#allocation2]  }
  0x3f   :  { %302 = dma.hbm_to_vmem [thread:$0]  %s298_s1, 16, %s300_s21, [#allocation33]  }
  0x40   :  { %s4571_s23 = sld [smem:[#allocation56_spill]]  ;;  %s57_s17 = sshll.u32 %s3795_s2, 4  ;;  %s58_s17 = int_to_ptr.vmem [resolvable:$true] %s57_s17 }
  0x41   :  { %s3796_s7 = smov [#allocation7]   ;;  %s4572_s27 = sld [smem:[#allocation58_spill]] }
  0x42   :  { %s83_s12 = sshll.u32 %s3796_s7, 4  ;;  %s4573_s9 = sld [smem:[#allocation61_spill]]  ;;  %s84_s12 = int_to_ptr.vmem [resolvable:$true] %s83_s12 }
  0x43   :  { %s3797_s3 = smov [#allocation10]   ;;  %s181_s7 = sshll.u32 %s4530_s14, 4  ;;  %s182_s7 = int_to_ptr.hbm [resolvable:$true] %s181_s7 }
  0x44   :  { %s55_s30 = sshll.u32 %s4570_s15, 4  ;;  %s108_s13 = sshll.u32 %s3797_s3, 4  ;;  %s56_s30 = int_to_ptr.hbm [resolvable:$true] %s55_s30  ;;  %s109_s13 = int_to_ptr.vmem [resolvable:$true] %s108_s13 }
  0x45   :  { %63 = dma.hbm_to_vmem [thread:$0]  %s56_s30, 256, %s58_s17, [#allocation3], %s3785_s10, %s3785_s10, %s3786_s0  }
  0x46   :  { %s81_s29 = sshll.u32 %s4571_s23, 4  ;;  %s3798_s15 = smov [#allocation13]   ;;  %s82_s29 = int_to_ptr.hbm [resolvable:$true] %s81_s29 }
  0x47   :  { %s106_s28 = sshll.u32 %s4572_s27, 4  ;;  %s131_s30 = sshll.u32 %s3798_s15, 4  ;;  %s107_s28 = int_to_ptr.hbm [resolvable:$true] %s106_s28  ;;  %s132_s30 = int_to_ptr.vmem [resolvable:$true] %s131_s30 }
  0x48   :  { %89 = dma.hbm_to_vmem [thread:$0]  %s82_s29, 256, %s84_s12, [#allocation6], %s3785_s10, %s3785_s10, %s3786_s0  }
  0x49   :  { %s129_s21 = sshll.u32 %s4573_s9, 4  ;;  %s4574_s23 = sld [smem:[#allocation63_spill]]  ;;  %s130_s21 = int_to_ptr.hbm [resolvable:$true] %s129_s21 }
  0x4a   :  { %111 = dma.hbm_to_vmem [thread:$0]  %s107_s28, 16, %s109_s13, [#allocation9]  }
  0x4b   :  { %137 = dma.hbm_to_vmem [thread:$0]  %s130_s21, 32, %s132_s30, [#allocation12], %s3788_s4, %s3788_s4, %s3789_s8  }
  0x4c   :  { %s3799_s12 = smov [#allocation16]   ;;  %s3800_s19 = smov [#allocation19]  }
  0x4d   :  { %s157_s25 = sshll.u32 %s3799_s12, 4  ;;  %s183_s27 = sshll.u32 %s3800_s19, 4  ;;  %s158_s25 = int_to_ptr.vmem [resolvable:$true] %s157_s25  ;;  %s184_s27 = int_to_ptr.vmem [resolvable:$true] %s183_s27 }
  0x4e   :  { %s207_s5 = sshll.u32 %s4532_s16, 4  ;;  %s233_s21 = sshll.u32 %s4534_s18, 4  ;;  %s208_s5 = int_to_ptr.hbm [resolvable:$true] %s207_s5  ;;  %s234_s21 = int_to_ptr.hbm [resolvable:$true] %s233_s21 }
  0x4f   :  { %s155_s2 = sshll.u32 %s4574_s23, 4  ;;  %s3801_s3 = smov [#allocation22]   ;;  %s156_s2 = int_to_ptr.hbm [resolvable:$true] %s155_s2 }
  0x50   :  { %163 = dma.hbm_to_vmem [thread:$0]  %s156_s2, 32, %s158_s25, [#allocation15], %s3788_s4, %s3788_s4, %s3789_s8  }
  0x51   :  { %189 = dma.hbm_to_vmem [thread:$0]  %s182_s7, 32, %s184_s27, [#allocation18], %s3788_s4, %s3788_s4, %s3789_s8  }
  0x52   :  { %s209_s13 = sshll.u32 %s3801_s3, 4  ;;  %s3802_s15 = smov [#allocation25]   ;;  %s210_s13 = int_to_ptr.vmem [resolvable:$true] %s209_s13 }
  0x53   :  { %215 = dma.hbm_to_vmem [thread:$0]  %s208_s5, 32, %s210_s13, [#allocation21], %s3788_s4, %s3788_s4, %s3789_s8  }
  0x54   :  { %s235_s16 = sshll.u32 %s3802_s15, 4  ;;  %s259_s11 = sshll.u32 %s4536_s20, 4  ;;  %s236_s16 = int_to_ptr.vmem [resolvable:$true] %s235_s16  ;;  %s260_s11 = int_to_ptr.hbm [resolvable:$true] %s259_s11 }
  0x55   :  { %241 = dma.hbm_to_vmem [thread:$0]  %s234_s21, 32, %s236_s16, [#allocation24], %s3788_s4, %s3788_s4, %s3789_s8  }
  0x56   :  { %s286_s2 = sshll.u32 %s4538_s22, 4  ;;  %s3803_s29 = smov [#allocation28]   ;;  %s287_s2 = int_to_ptr.hbm [resolvable:$true] %s286_s2 }
  0x57   :  { %s261_s17 = sshll.u32 %s3803_s29, 4  ;;  %s3804_s7 = smov [#allocation31]   ;;  %s262_s17 = int_to_ptr.vmem [resolvable:$true] %s261_s17 }
  0x58   :  { %267 = dma.hbm_to_vmem [thread:$0]  %s260_s11, 32, %s262_s17, [#allocation27], %s3788_s4, %s3788_s4, %s3789_s8  }
  0x59   :  { %s288_s20 = sshll.u32 %s3804_s7, 4  ;;  %s308_s19 = sshll.u32 %s4540_s24, 4  ;;  %s289_s20 = int_to_ptr.vmem [resolvable:$true] %s288_s20  ;;  %s309_s19 = int_to_ptr.hbm [resolvable:$true] %s308_s19 }
  0x5a   :  { %291 = dma.hbm_to_vmem [thread:$0]  %s287_s2, 16, %s289_s20, [#allocation30]  }
  0x5b   :  { %s321_s22 = sshll.u32 %s4542_s26, 4  ;;  %s3805_s1 = smov [#allocation34]   ;;  %s322_s22 = int_to_ptr.hbm [resolvable:$true] %s321_s22 }
  0x5c   :  { %s310_s5 = sshll.u32 %s3805_s1, 4  ;;  %s3806_s14 = smov [#allocation35]   ;;  %s311_s5 = int_to_ptr.vmem [resolvable:$true] %s310_s5 }
  0x5d   :  { %313 = dma.hbm_to_vmem [thread:$0]  %s309_s19, 16, %s311_s5, [#allocation33]  }
  0x5e   :  { %s323_s4 = sshll.u32 %s3806_s14, 4  ;;  %s324_s4 = int_to_ptr.vmem [resolvable:$true] %s323_s4 }
  0x5f   :  { %326 = dma.hbm_to_vmem [thread:$0]  %s322_s22, 16, %s324_s4, [#allocation36]  }
  0x60   :  { %3755 = dma.done.wait [#allocation3], 256  }
  0x61   :  { %3756 = vsyncadd [#allocation3], 4294967040 }
  0x62   :  { %3757 = dma.done.wait [#allocation6], 272  }
  0x63   :  { %3758 = vsyncadd [#allocation6], 4294967024 }
  0x64   :  { %3759 = dma.done.wait [#allocation9], 32  }
  0x65   :  { %3760 = vsyncadd [#allocation9], 4294967264 }
  0x66   :  { %3761 = dma.done.wait [#allocation12], 48  }
  0x67   :  { %3762 = vsyncadd [#allocation12], 4294967248 }
  0x68   :  { %3763 = dma.done.wait [#allocation15], 1056  }
  0x69   :  { %3764 = vsyncadd [#allocation15], 4294966240 }
  0x6a   :  { %3765 = dma.done.wait [#allocation18], 64  }
  0x6b   :  { %3766 = vsyncadd [#allocation18], 4294967232 }
  0x6c   :  { %3767 = dma.done.wait [#allocation21], 64  }
  0x6d   :  { %3768 = vsyncadd [#allocation21], 4294967232 }
  0x6e   :  { %3769 = dma.done.wait [#allocation24], 1056  }
  0x6f   :  { %3770 = vsyncadd [#allocation24], 4294966240 }
  0x70   :  { %3771 = dma.done.wait [#allocation27], 1056  }
  0x71   :  { %3772 = vsyncadd [#allocation27], 4294966240 }
  0x72   :  { %3773 = dma.done.wait [#allocation30], 528  }
  0x73   :  { %3774 = vsyncadd [#allocation30], 4294966768 }
  0x74   :  { %3775 = dma.done.wait [#allocation33], 32  }
  0x75   :  { %3776 = vsyncadd [#allocation33], 4294967264 }
  0x76   :  { %3777 = dma.done.wait [#allocation36], 16  }
  0x77   :  { %3778 = vsyncadd [#allocation36], 4294967280  ;;  %vm433_vm0 = vcmask 130048   ;;  %s4575_s8 = sld [smem:[#allocation51_spill]]  ;;  %v3807_v4 = vmov 16.0   ;;  %v496_v21 = vld [vmem:[#allocation7 + $0x8] sm:$0xff] }
  0x78   :  { %3091 = vrcp.f32 %v3807_v4  ;;  %v495_v22 = vld [vmem:[#allocation7] sm:$0xff]  ;;  %521 = vmatpush.msra.mxu0 %v496_v21  ;;  %3023 = vmatpush.msra.mxu2 %v496_v21  ;;  %s4576_s15 = sld [smem:[#allocation54_spill]]  ;;  %v3067_v44 = vld [vmem:[#allocation5] ss:$0 sm:$0xff]  ;;  %v3068_v51 = vld [vmem:[#allocation8] ss:$0 sm:$0xff] }
  0x79   :  { %s4577_s6 = sld [smem:[#allocation52_spill]]  ;;  %s3809_s27 = smov 96  }
  0x7a   :  { %522 = vmatpush.msra.mxu0 %v495_v22  ;;  %3024 = vmatpush.msra.mxu2 %v495_v22  ;;  %s4578_s29 = sld [smem:[#allocation60_spill]]  ;;  %s3810_s28 = smov 88  }
  0x7b   :  { %s3811_s22 = smov 120   ;;  %s3812_s1 = smov 64  }
  0x7c   :  { %s3814_s5 = smov 80   ;;  %s3815_s14 = smov 56  }
  0x7d   :  { %v430_v0 = vld [vmem:[%s4575_s8 + $0x8] sm:$0xff]  ;;  %v429_v1 = vld [vmem:[%s4575_s8] sm:$0xff]  ;;  %s3816_s4 = smov 72   ;;  %s3817_s24 = smov 104  }
  0x7e   :  { %v437_v2 = vsel %vm433_vm0, %v430_v0, 0.0  ;;  %v434_v3 = vsel %vm433_vm0, %v429_v1, 0.0  ;;  %v3092_v5 = vpop.eup %3091  ;;  %v3066_v41 = vld [vmem:[%s4576_s15] ss:$0 sm:$0xff]  ;;  %s3818_s26 = smov 112   ;;  %s3819_s8 = smov 48  }
  0x7f   :  { %438 = vadd.xlane.f32.xlu1 %v437_v2  ;;  %435 = vadd.xlane.f32.xlu0 %v434_v3  ;;  %v441_v6 = vmul.f32 16.0, %v3092_v5  ;;  %vm445_vm1 = vweird.f32 %v3092_v5  ;;  %s3820_s9 = smov 40   ;;  %s4579_s2 = sld [smem:[#allocation66_spill]] }
  0x80   :  { %s3821_s30 = smov [#allocation37]   ;;  %s4581_s23 = sld [smem:[#allocation65_spill]] }
  0x81   :  { %v442_v7 = vsub.f32 1.0, %v441_v6 }
  0x83   :  { %v443_v8 = vmul.f32 %v3092_v5, %v442_v7 }
  0x85   :  { %v444_v9 = vadd.f32 %v3092_v5, %v443_v8 }
  0x87   :  { %v446_v10 = vsel %vm445_vm1, %v3092_v5, %v444_v9 }
  0xf2   :  { %v439_v11 = vpop.xlane.xlu1 %438  ;;  %v436_v12 = vpop.xlane.xlu0 %435 }
  0xf3   :  { %v448_v13 = vmul.f32 %v446_v10, %v439_v11  ;;  %v447_v14 = vmul.f32 %v446_v10, %v436_v12 }
  0xf5   :  { %v450_v15 = vsub.f32 %v430_v0, %v448_v13  ;;  %v449_v16 = vsub.f32 %v429_v1, %v447_v14 }
  0xf7   :  { %v452_v17 = vmul.f32 %v450_v15, %v450_v15  ;;  %v451_v18 = vmul.f32 %v449_v16, %v449_v16 }
  0xf9   :  { %v456_v19 = vsel %vm433_vm0, %v452_v17, 0.0  ;;  %v453_v20 = vsel %vm433_vm0, %v451_v18, 0.0 }
  0xfa   :  { %457 = vadd.xlane.f32.xlu1 %v456_v19  ;;  %454 = vadd.xlane.f32.xlu0 %v453_v20 }
 0x16d   :  { %v458_v23 = vpop.xlane.xlu1 %457  ;;  %v455_v24 = vpop.xlane.xlu0 %454 }
 0x16e   :  { %v460_v25 = vmul.f32 %v458_v23, %v446_v10  ;;  %v459_v26 = vmul.f32 %v455_v24, %v446_v10 }
 0x170   :  { %v462_v27 = vadd.f32 1e-05, %v460_v25  ;;  %v461_v28 = vadd.f32 1e-05, %v459_v26 }
 0x172   :  { %3093 = vrsqrt.f32 %v462_v27  ;;  %vm479_vm2 = vweird.f32 %v462_v27  ;;  %vm469_vm6 = vweird.f32 %v461_v28 }
 0x173   :  { %3095 = vrsqrt.f32 %v461_v28 }
 0x178   :  { %v3094_v29 = vpop.eup %3093 }
 0x179   :  { %v3096_v30 = vpop.eup %3095  ;;  %v474_v31 = vmul.f32 %v3094_v29, %v462_v27  ;;  %vm480_vm3 = vweird.f32 %v3094_v29 }
 0x17a   :  { %v464_v32 = vmul.f32 %v3096_v30, %v461_v28  ;;  %vm481_vm4 = vmor %vm479_vm2, %vm480_vm3  ;;  %vm470_vm5 = vweird.f32 %v3096_v30 }
 0x17b   :  { %v475_v33 = vmul.f32 %v3094_v29, %v474_v31  ;;  %vm471_vm7 = vmor %vm469_vm6, %vm470_vm5 }
 0x17c   :  { %v465_v34 = vmul.f32 %v3096_v30, %v464_v32 }
 0x17d   :  { %v476_v35 = vmul.f32 0.5, %v475_v33 }
 0x17e   :  { %v466_v36 = vmul.f32 0.5, %v465_v34 }
 0x17f   :  { %v477_v37 = vsub.f32 1.5, %v476_v35 }
 0x180   :  { %v467_v38 = vsub.f32 1.5, %v466_v36 }
 0x181   :  { %v478_v39 = vmul.f32 %v3094_v29, %v477_v37 }
 0x182   :  { %v468_v40 = vmul.f32 %v3096_v30, %v467_v38 }
 0x183   :  { %v482_v42 = vsel %vm481_vm4, %v3094_v29, %v478_v39 }
 0x184   :  { %v472_v43 = vsel %vm471_vm7, %v3096_v30, %v468_v40  ;;  %v484_v45 = vmul.f32 %v482_v42, %v450_v15 }
 0x185   :  { %v483_v46 = vmul.f32 %v472_v43, %v449_v16 }
 0x186   :  { %v489_v47 = vmul.f32 %v3066_v41, %v484_v45 }
 0x187   :  { %v488_v48 = vmul.f32 %v3066_v41, %v483_v46 }
 0x188   :  { %v494_v49 = vadd.f32 %v3067_v44, %v489_v47 }
 0x189   :  { %v493_v50 = vadd.f32 %v3067_v44, %v488_v48 }
 0x18a   :  { %2924 = vmatmul.msk.f32.vlgmr.msra.gmra.mxu2 %vm433_vm0, %v494_v49 }
 0x18b   :  { %2923 = vmatmul.msk.f32.vlgmr.msra.gmra.mxu0 %vm433_vm0, %v493_v50  ;;  %vm624_vm0 = vcmask 261120  }
 0x208   :  { %v524_v52 = vpop.f32.mrf.mxu0 }
 0x209   :  { %v4090_v53 = vadd.f32 %v3068_v51, %v524_v52 }
 0x20b   :  { %v4093_v54 = vmul.f32 0.70710677, %v4090_v53 }
 0x20d   :  { %v534_v55 = vmul.f32 %v4093_v54, %v4093_v54  ;;  %v527_v56 = vpop.f32.mrf.mxu2 }
 0x20e   :  { %v4097_v57 = vadd.f32 %v3068_v51, %v527_v56 }
 0x20f   :  { %v535_v58 = vmin.f32 %v534_v55, 16.0 }
 0x210   :  { %v4100_v59 = vmul.f32 0.70710677, %v4097_v57 }
 0x211   :  { %v536_v60 = vmul.f32 2.1237322e-06, %v535_v58  ;;  %v547_v61 = vmul.f32 3.8918573e-05, %v535_v58 }
 0x212   :  { %v574_v62 = vmul.f32 %v4100_v59, %v4100_v59 }
 0x213   :  { %v537_v63 = vadd.f32 0.00028619796, %v536_v60  ;;  %v548_v0 = vadd.f32 0.001143296, %v547_v61 }
 0x214   :  { %v575_v1 = vmin.f32 %v574_v62, 16.0 }
 0x215   :  { %v538_v2 = vmul.f32 %v537_v63, %v535_v58  ;;  %v549_v3 = vmul.f32 %v548_v0, %v535_v58 }
 0x216   :  { %v576_v4 = vmul.f32 2.1237322e-06, %v575_v1  ;;  %v587_v5 = vmul.f32 3.8918573e-05, %v575_v1 }
 0x217   :  { %v550_v6 = vadd.f32 0.014752088, %v549_v3  ;;  %v539_v7 = vadd.f32 0.0036580483, %v538_v2 }
 0x218   :  { %v577_v8 = vadd.f32 0.00028619796, %v576_v4  ;;  %v588_v9 = vadd.f32 0.001143296, %v587_v5 }
 0x219   :  { %v551_v10 = vmul.f32 %v550_v6, %v535_v58  ;;  %v540_v14 = vmul.f32 %v539_v7, %v535_v58 }
 0x21a   :  { %v578_v11 = vmul.f32 %v577_v8, %v575_v1  ;;  %v589_v12 = vmul.f32 %v588_v9, %v575_v1  ;;  %v531_v8 = vmul.f32 0.5, %v4097_v57 }
 0x21b   :  { %v552_v13 = vadd.f32 0.112945676, %v551_v10  ;;  %v541_v21 = vadd.f32 0.05243302, %v540_v14 }
 0x21c   :  { %v579_v15 = vadd.f32 0.0036580483, %v578_v11  ;;  %v590_v16 = vadd.f32 0.014752088, %v589_v12 }
 0x21d   :  { %v553_v17 = vmul.f32 %v552_v13, %v535_v58  ;;  %v542_v27 = vmul.f32 %v541_v21, %v535_v58  ;;  %v3808_v13 = vmov 32.0  }
 0x21e   :  { %v580_v18 = vmul.f32 %v579_v15, %v575_v1  ;;  %v591_v19 = vmul.f32 %v590_v16, %v575_v1 }
 0x21f   :  { %v554_v20 = vadd.f32 0.4994258, %v553_v17  ;;  %v543_v31 = vadd.f32 0.18741608, %v542_v27 }
 0x220   :  { %v592_v22 = vadd.f32 0.112945676, %v591_v19  ;;  %v581_v24 = vadd.f32 0.05243302, %v580_v18 }
 0x221   :  { %v555_v23 = vmul.f32 %v554_v20, %v535_v58  ;;  %v544_v35 = vmul.f32 %v543_v31, %v535_v58  ;;  %v687_v31 = vld [vmem:[%s4578_s29 + $0x8] sm:$0xff] }
 0x222   :  { %v593_v25 = vmul.f32 %v592_v22, %v575_v1  ;;  %v582_v29 = vmul.f32 %v581_v24, %v575_v1 }
 0x223   :  { %v556_v26 = vadd.f32 1.0, %v555_v23  ;;  %v545_v41 = vadd.f32 1.1283791, %v544_v35 }
 0x224   :  { %v594_v28 = vadd.f32 0.4994258, %v593_v25  ;;  %v583_v33 = vadd.f32 0.18741608, %v582_v29  ;;  %v689_v29 = vld [vmem:[%s4578_s29 + $0x18] sm:$0xff] }
 0x225   :  { %3097 = vrcp.f32 %v556_v26  ;;  %v568_v38 = vand.u32 2147483648, %v556_v26  ;;  %v566_v43 = vand.u32 2147483647, %v556_v26  ;;  %vm562_vm9 = vweird.f32 %v556_v26  ;;  %712 = vmatpush.msra.mxu1 %v689_v29 }
 0x226   :  { %v595_v30 = vmul.f32 %v594_v28, %v575_v1  ;;  %v584_v39 = vmul.f32 %v583_v33, %v575_v1  ;;  %v546_v51 = vmul.f32 %v545_v41, %v4093_v54  ;;  %v530_v1 = vmul.f32 0.5, %v4090_v53  ;;  %v618_v54 = vld [vmem:[%s4577_s6] sm:$0xff]  ;;  %v619_v53 = vld [vmem:[%s4577_s6 + $0x8] sm:$0xff]  ;;  %s2892_s6 = sshll.u32 %s3821_s30, 4  ;;  %s2893_s6 = int_to_ptr.vmem [resolvable:$true] %s2892_s6 }
 0x227   :  { %v569_v46 = vor.u32 1.1754944e-38, %v568_v38  ;;  %vm567_vm13 = vcmp.eq.f32.partialorder %v566_v43, 8.507059e+37 }
 0x228   :  { %v596_v32 = vadd.f32 1.0, %v595_v30  ;;  %v585_v47 = vadd.f32 1.1283791, %v584_v39  ;;  %v688_v30 = vld [vmem:[%s4578_s29 + $0x10] sm:$0xff] }
 0x229   :  { %713 = vmatpush.msra.mxu1 %v688_v30 }
 0x22a   :  { %3099 = vrcp.f32 %v596_v32  ;;  %v608_v48 = vand.u32 2147483648, %v596_v32  ;;  %vm602_vm11 = vweird.f32 %v596_v32  ;;  %v606_v50 = vand.u32 2147483647, %v596_v32 }
 0x22b   :  { %v3098_v34 = vpop.eup %3097  ;;  %v586_v61 = vmul.f32 %v585_v47, %v4100_v59  ;;  %3101 = vrcp.f32 %v3808_v13  ;;  %714 = vmatpush.msra.mxu1 %v687_v31 }
 0x22c   :  { %v558_v36 = vmul.f32 %v3098_v34, %v556_v26  ;;  %vm563_vm8 = vweird.f32 %v3098_v34  ;;  %v609_v60 = vor.u32 1.1754944e-38, %v608_v48  ;;  %vm607_vm15 = vcmp.eq.f32.partialorder %v606_v50, 8.507059e+37 }
 0x22d   :  { %vm564_vm10 = vmor %vm562_vm9, %vm563_vm8  ;;  %vm730_vm8 = vcmask 64512  }
 0x22e   :  { %v559_v37 = vsub.f32 1.0, %v558_v36 }
 0x230   :  { %v3100_v40 = vpop.eup %3099  ;;  %v560_v42 = vmul.f32 %v3098_v34, %v559_v37 }
 0x231   :  { %v598_v44 = vmul.f32 %v3100_v40, %v596_v32  ;;  %vm603_vm12 = vweird.f32 %v3100_v40  ;;  %v3102_v14 = vpop.eup %3101  ;;  %v686_v32 = vld [vmem:[%s4578_s29] sm:$0xff] }
 0x232   :  { %v561_v45 = vadd.f32 %v3098_v34, %v560_v42  ;;  %vm604_vm14 = vmor %vm602_vm11, %vm603_vm12  ;;  %v632_v15 = vmul.f32 32.0, %v3102_v14  ;;  %vm636_vm1 = vweird.f32 %v3102_v14  ;;  %715 = vmatpush.msra.mxu1 %v686_v32 }
 0x233   :  { %v599_v49 = vsub.f32 1.0, %v598_v44 }
 0x234   :  { %v565_v52 = vsel %vm564_vm10, %v3098_v34, %v561_v45  ;;  %v633_v16 = vsub.f32 1.0, %v632_v15  ;;  %v422_v15 = vld [vmem:[#allocation2] sm:$0xff] }
 0x235   :  { %v570_v55 = vsel %vm567_vm13, %v569_v46, %v565_v52  ;;  %v600_v56 = vmul.f32 %v3100_v40, %v599_v49  ;;  %v3069_v49 = vld [vmem:[#allocation10] ss:$0 sm:$0xff] }
 0x236   :  { %v571_v58 = vmul.f32 %v570_v55, %v546_v51  ;;  %v634_v17 = vmul.f32 %v3102_v14, %v633_v16  ;;  %v3070_v55 = vld [vmem:[#allocation11] ss:$0 sm:$0xff] }
 0x237   :  { %v601_v62 = vadd.f32 %v3100_v40, %v600_v56 }
 0x238   :  { %v2925_v63 = vclamps-f32 %v571_v58, 1.0  ;;  %v635_v57 = vadd.f32 %v3102_v14, %v634_v17 }
 0x239   :  { %v605_v0 = vsel %vm604_vm14, %v3100_v40, %v601_v62 }
 0x23a   :  { %v610_v2 = vsel %vm607_vm15, %v609_v60, %v605_v0  ;;  %v614_v3 = vadd.f32 1.0, %v2925_v63  ;;  %v4116_v18 = vsel %vm636_vm1, %v3102_v14, %v635_v57 }
 0x23b   :  { %v611_v4 = vmul.f32 %v610_v2, %v586_v61 }
 0x23c   :  { %v616_v5 = vmul.f32 %v614_v3, %v530_v1  ;;  %v3071_v1 = vld [vmem:[#allocation13] ss:$0 sm:$0xff] }
 0x23d   :  { %v2926_v6 = vclamps-f32 %v611_v4, 1.0 }
 0x23e   :  { %v620_v7 = vadd.f32 %v618_v54, %v616_v5 }
 0x23f   :  { %v615_v59 = vadd.f32 1.0, %v2926_v6 }
 0x240   :  { %v625_v9 = vsel %vm624_vm0, %v620_v7, 0.0 }
 0x241   :  { %626 = vadd.xlane.f32.xlu2 %v625_v9  ;;  %v617_v10 = vmul.f32 %v615_v59, %v531_v8 }
 0x243   :  { %v621_v11 = vadd.f32 %v619_v53, %v617_v10  ;;  %v415_v53 = vlaneseq }
 0x245   :  { %v628_v12 = vsel %vm624_vm0, %v621_v11, 0.0  ;;  %v416_v10 = vshrl.u32 %v415_v53, 7 }
 0x246   :  { %629 = vadd.xlane.f32.xlu0 %v628_v12  ;;  %v3813_v12 = vmov 0.0  }
 0x2b4   :  { %v627_v19 = vpop.xlane.xlu2 %626 }
 0x2b5   :  { %v638_v20 = vmul.f32 %v4116_v18, %v627_v19 }
 0x2b7   :  { %v640_v21 = vsub.f32 %v620_v7, %v638_v20 }
 0x2b9   :  { %v630_v22 = vpop.xlane.xlu0 %629  ;;  %v642_v23 = vmul.f32 %v640_v21, %v640_v21 }
 0x2ba   :  { %v639_v24 = vmul.f32 %v4116_v18, %v630_v22 }
 0x2bb   :  { %v644_v25 = vsel %vm624_vm0, %v642_v23, 0.0 }
 0x2bc   :  { %v641_v26 = vsub.f32 %v621_v11, %v639_v24  ;;  %645 = vadd.xlane.f32.xlu2 %v644_v25  ;;  %v418_v11 = vand.u32 127, %v415_v53 }
 0x2be   :  { %v643_v27 = vmul.f32 %v641_v26, %v641_v26  ;;  %vm419_vm9 = vcmp.eq.s32.totalorder %v416_v10, %v418_v11 }
 0x2bf   :  { %v2922_v13 = vsel %vm419_vm9, 1.0, %v3813_v12  ;;  %v724_v12 = vld [vmem:[#allocation14 + $0x8] sm:$0xff] }
 0x2c0   :  { %v647_v28 = vsel %vm624_vm0, %v643_v27, 0.0  ;;  %v424_v14 = vsub.f32 1.0, %v2922_v13 }
 0x2c1   :  { %648 = vadd.xlane.f32.xlu1 %v647_v28 }
 0x2c2   :  { %v425_v16 = vmul.f32 %v424_v14, %v422_v15 }
 0x2c4   :  { %v4171_v17 = vadd.f32 %v2922_v13, %v425_v16 }
 0x32f   :  { %v646_v33 = vpop.xlane.xlu2 %645 }
 0x330   :  { %v650_v34 = vmul.f32 %v646_v33, %v4116_v18 }
 0x332   :  { %v652_v35 = vadd.f32 1e-05, %v650_v34 }
 0x334   :  { %3103 = vrsqrt.f32 %v652_v35  ;;  %v649_v36 = vpop.xlane.xlu1 %648  ;;  %vm660_vm3 = vweird.f32 %v652_v35 }
 0x335   :  { %v651_v37 = vmul.f32 %v649_v36, %v4116_v18 }
 0x337   :  { %v653_v38 = vadd.f32 1e-05, %v651_v37 }
 0x339   :  { %3105 = vrsqrt.f32 %v653_v38  ;;  %vm670_vm6 = vweird.f32 %v653_v38 }
 0x33a   :  { %v3104_v39 = vpop.eup %3103 }
 0x33b   :  { %v655_v40 = vmul.f32 %v3104_v39, %v652_v35  ;;  %vm661_vm2 = vweird.f32 %v3104_v39 }
 0x33c   :  { %vm662_vm4 = vmor %vm660_vm3, %vm661_vm2 }
 0x33d   :  { %v656_v41 = vmul.f32 %v3104_v39, %v655_v40 }
 0x33f   :  { %v3106_v42 = vpop.eup %3105  ;;  %v657_v43 = vmul.f32 0.5, %v656_v41 }
 0x340   :  { %v665_v44 = vmul.f32 %v3106_v42, %v653_v38  ;;  %vm671_vm5 = vweird.f32 %v3106_v42 }
 0x341   :  { %v658_v45 = vsub.f32 1.5, %v657_v43  ;;  %vm672_vm7 = vmor %vm670_vm6, %vm671_vm5 }
 0x342   :  { %v666_v46 = vmul.f32 %v3106_v42, %v665_v44 }
 0x343   :  { %v659_v47 = vmul.f32 %v3104_v39, %v658_v45 }
 0x344   :  { %v667_v48 = vmul.f32 0.5, %v666_v46 }
 0x345   :  { %v663_v50 = vsel %vm662_vm4, %v3104_v39, %v659_v47 }
 0x346   :  { %v668_v51 = vsub.f32 1.5, %v667_v48  ;;  %v674_v52 = vmul.f32 %v663_v50, %v640_v21 }
 0x348   :  { %v669_v56 = vmul.f32 %v3106_v42, %v668_v51  ;;  %v679_v58 = vmul.f32 %v3069_v49, %v674_v52 }
 0x34a   :  { %v673_v60 = vsel %vm672_vm7, %v3106_v42, %v669_v56  ;;  %v4136_v61 = vadd.f32 %v3070_v55, %v679_v58 }
 0x34b   :  { %v675_v62 = vmul.f32 %v673_v60, %v641_v26  ;;  %v423_v26 = vld [vmem:[#allocation2 + $0x8] sm:$0xff] }
 0x34c   :  { %2927 = vmatmul.msk.f32.vlgmr.msra.gmra.mxu1 %vm624_vm0, %v4136_v61  ;;  %v426_v27 = vmul.f32 %v424_v14, %v423_v26  ;;  %v723_v60 = vld [vmem:[#allocation14] sm:$0xff] }
 0x34d   :  { %v680_v63 = vmul.f32 %v3069_v49, %v675_v62 }
 0x34e   :  { %v4177_v28 = vadd.f32 %v2922_v13, %v426_v27 }
 0x34f   :  { %v4140_v0 = vadd.f32 %v3070_v55, %v680_v63 }
 0x354   :  { %2928 = vmatmul.msk.f32.gmra.mxu1 %vm624_vm0, %v4140_v0 }
 0x3c9   :  { %v717_v2 = vpop.f32.mrf.mxu1 }
 0x3ca   :  { %v4144_v3 = vadd.f32 %v3071_v1, %v717_v2 }
 0x3cc   :  { %728 = vrot.lane.b32.xlu2 %v4144_v3, %s3809_s27  ;;  %862 = vrot.lane.b32.xlu1 %v4144_v3, %s3810_s28 }
 0x3d1   :  { %v720_v4 = vpop.f32.mrf.mxu1 }
 0x3d2   :  { %v4150_v54 = vadd.f32 %v3071_v1, %v720_v4 }
 0x3d4   :  { %860 = vrot.lane.b32.xlu2 %v4144_v3, %s3811_s22  ;;  %808 = vrot.lane.b32.xlu1 %v4144_v3, %s3812_s1 }
 0x3d5   :  { %756 = vrot.lane.b32.xlu0 %v4150_v54, %s3809_s27 }
 0x3dc   :  { %890 = vrot.lane.b32.xlu1 %v4150_v54, %s3810_s28 }
 0x3e4   :  { %888 = vrot.lane.b32.xlu1 %v4150_v54, %s3811_s22 }
 0x426   :  { %v729_v5 = vpop.permute.xlu2 %728 }
 0x427   :  { %2929 = vmatpush.xpose.msk.msrb.mxu2 %vm730_vm8, %v729_v5 }
 0x42a   :  { %2930 = vmatmul.msk.f32.vlgmr.msrb.gmra.mxu2 %vm730_vm8, %v4144_v3 }
 0x42e   :  { %v861_v7 = vpop.permute.xlu2 %860 }
 0x43e   :  { %v863_v6 = vpop.permute.xlu1 %862 }
 0x43f   :  { %2935 = vmatpush.xpose.msk.msrb.mxu0 %vm730_vm8, %v863_v6 }
 0x442   :  { %2936 = vmatmul.msk.f32.vlgmr.msrb.gmra.mxu0 %vm730_vm8, %v861_v7 }
 0x443   :  { %1015 = vmatpush.msra.mxu0 %v724_v12 }
 0x446   :  { %v809_v8 = vpop.permute.xlu1 %808 }
 0x447   :  { %v757_v59 = vpop.permute.xlu0 %756  ;;  %829 = vmatpush.msra.mxu2 %v809_v8 }
 0x448   :  { %2931 = vmatpush.xpose.msk.msra.mxu3 %vm730_vm8, %v757_v59 }
 0x44b   :  { %2932 = vmatmul.msk.f32.vlgmr.msra.gmra.mxu3 %vm730_vm8, %v4150_v54 }
 0x44e   :  { %v891_v9 = vpop.permute.xlu1 %890 }
 0x44f   :  { %2937 = vmatpush.xpose.msk.msrb.mxu2 %vm730_vm8, %v891_v9 }
 0x456   :  { %v889_v43 = vpop.permute.xlu1 %888 }
 0x4ad   :  { %v752_v57 = vpop.f32.mrf.mxu2 }
 0x4ae   :  { %v782_v19 = vmul.f32 0.35355338, %v752_v57 }
 0x4b0   :  { %v784_v20 = vmul.f32 %v782_v19, %v4171_v17 }
 0x4b2   :  { %v786_v21 = vsel %vm730_vm8, %v784_v20, -inf }
 0x4b3   :  { %787 = vmax.xlane.f32.xlu0 %v786_v21 }
 0x4bf   :  { %v885_v22 = vpop.f32.mrf.mxu0 }
 0x4c0   :  { %v916_v23 = vmul.f32 0.35355338, %v885_v22 }
 0x4c2   :  { %v918_v24 = vmul.f32 %v916_v23, %v4171_v17 }
 0x4c4   :  { %v920_v25 = vsel %vm730_vm8, %v918_v24, -inf }
 0x4c5   :  { %921 = vmax.xlane.f32.xlu0 %v920_v25 }
 0x4ce   :  { %v779_v29 = vpop.f32.mrf.mxu3 }
 0x4cf   :  { %v783_v30 = vmul.f32 0.35355338, %v779_v29 }
 0x4d1   :  { %v785_v31 = vmul.f32 %v783_v30, %v4177_v28 }
 0x4d3   :  { %v789_v32 = vsel %vm730_vm8, %v785_v31, -inf }
 0x4d4   :  { %790 = vmax.xlane.f32.xlu1 %v789_v32 }
 0x4ed   :  { %1054 = vrot.lane.b32.xlu1 %v4144_v3, %s3814_s5 }
 0x4f5   :  { %968 = vrot.lane.b32.xlu1 %v4150_v54, %s3815_s14 }
 0x4fd   :  { %1082 = vrot.lane.b32.xlu1 %v4150_v54, %s3814_s5 }
 0x505   :  { %1219 = vrot.lane.b32.xlu1 %v4144_v3, %s3816_s4 }
 0x50d   :  { %1217 = vrot.lane.b32.xlu1 %v4144_v3, %s3817_s24 }
 0x526   :  { %v788_v33 = vpop.xlane.xlu0 %787 }
 0x527   :  { %v792_v34 = vsub.f32 %v784_v20, %v788_v33 }
 0x529   :  { %v794_v35 = vmul.f32 1.442695, %v792_v34 }
 0x52b   :  { %3107 = vpow2.f32 %v794_v35 }
 0x531   :  { %v3108_v36 = vpop.eup %3107 }
 0x532   :  { %v798_v37 = vsel %vm730_vm8, %v3108_v36, 0.0 }
 0x533   :  { %799 = vadd.xlane.f32.xlu2 %v798_v37 }
 0x538   :  { %v922_v38 = vpop.xlane.xlu0 %921 }
 0x539   :  { %v926_v39 = vsub.f32 %v918_v24, %v922_v38 }
 0x53b   :  { %v928_v40 = vmul.f32 1.442695, %v926_v39 }
 0x53d   :  { %3109 = vpow2.f32 %v928_v40 }
 0x543   :  { %v3110_v41 = vpop.eup %3109 }
 0x544   :  { %v932_v42 = vsel %vm730_vm8, %v3110_v41, 0.0 }
 0x545   :  { %933 = vadd.xlane.f32.xlu0 %v932_v42 }
 0x547   :  { %v791_v44 = vpop.xlane.xlu1 %790 }
 0x548   :  { %v793_v46 = vsub.f32 %v785_v31, %v791_v44 }
 0x54a   :  { %v796_v47 = vmul.f32 1.442695, %v793_v46 }
 0x54b   :  { %834 = vrot.lane.b32.xlu2 %v4150_v54, %s3812_s1 }
 0x54c   :  { %3111 = vpow2.f32 %v796_v47 }
 0x552   :  { %v3112_v50 = vpop.eup %3111 }
 0x553   :  { %v801_v51 = vsel %vm730_vm8, %v3112_v50, 0.0 }
 0x559   :  { %942 = vrot.lane.b32.xlu0 %v4144_v3, %s3815_s14 }
 0x55f   :  { %v1055_v45 = vpop.permute.xlu1 %1054 }
 0x567   :  { %v969_v48 = vpop.permute.xlu1 %968 }
 0x568   :  { %989 = vmatpush.msrb.mxu1 %v969_v48 }
 0x56f   :  { %v1083_v49 = vpop.permute.xlu1 %1082 }
 0x570   :  { %2947 = vmatpush.xpose.msk.msra.mxu1 %vm730_vm8, %v1083_v49 }
 0x574   :  { %802 = vadd.xlane.f32.xlu2 %v801_v51 }
 0x577   :  { %v1220_v62 = vpop.permute.xlu1 %1219 }
 0x57f   :  { %v1218_v14 = vpop.permute.xlu1 %1217 }
 0x58c   :  { %1052 = vrot.lane.b32.xlu2 %v4144_v3, %s3818_s26 }
 0x5a6   :  { %v800_v52 = vpop.xlane.xlu2 %799 }
 0x5a7   :  { %3113 = vrcp.f32 %v800_v52 }
 0x5ad   :  { %v3114_v55 = vpop.eup %3113 }
 0x5ae   :  { %v806_v56 = vmul.f32 %v3114_v55, %v3108_v36  ;;  %v835_v58 = vpop.permute.xlu2 %834 }
 0x5af   :  { %855 = vmatpush.msrb.mxu3 %v835_v58 }
 0x5b0   :  { %2933 = vmatmul.msk.f32.vlgmr.msra.gmra.mxu2 %vm730_vm8, %v806_v56 }
 0x5b1   :  { %1044 = vmatpush.msra.mxu2 %v723_v60 }
 0x5b8   :  { %2938 = vmatmul.msk.f32.vlgmr.msrb.gmra.mxu2 %vm730_vm8, %v889_v43  ;;  %v934_v63 = vpop.xlane.xlu0 %933 }
 0x5b9   :  { %2953 = vmatpush.xpose.msk.msrb.mxu2 %vm730_vm8, %v1220_v62 }
 0x5cb   :  { %v943_v1 = vpop.permute.xlu0 %942 }
 0x5cc   :  { %963 = vmatpush.msra.mxu3 %v943_v1 }
 0x5e7   :  { %v803_v2 = vpop.xlane.xlu2 %802 }
 0x5e8   :  { %3115 = vrcp.f32 %v803_v2 }
 0x5e9   :  { %3117 = vrcp.f32 %v934_v63  ;;  %v725_v63 = vld [vmem:[#allocation14 + $0x10] sm:$0xff] }
 0x5ea   :  { %1207 = vmatpush.msrb.mxu0 %v725_v63 }
 0x5ee   :  { %v3116_v4 = vpop.eup %3115 }
 0x5ef   :  { %v807_v5 = vmul.f32 %v3116_v4, %v3112_v50  ;;  %v3118_v6 = vpop.eup %3117  ;;  %v1053_v8 = vpop.permute.xlu2 %1052 }
 0x5f0   :  { %v940_v7 = vmul.f32 %v3118_v6, %v3110_v41 }
 0x5f1   :  { %2934 = vmatmul.msk.f32.vlgmr.msrb.gmra.mxu3 %vm730_vm8, %v807_v5 }
 0x5f2   :  { %2945 = vmatpush.xpose.msk.msrb.mxu3 %vm730_vm8, %v1055_v45 }
 0x5f9   :  { %2939 = vmatmul.msk.f32.vlgmr.msra.gmra.mxu3 %vm730_vm8, %v940_v7 }
 0x601   :  { %2946 = vmatmul.msk.f32.vlgmr.msrb.gmra.mxu3 %vm730_vm8, %v1053_v8 }
 0x633   :  { %v831_v59 = vpop.f32.mrf.mxu2 }
 0x634   :  { %2943 = vmatmul.msk.f32.vlgmr.msra.gmra.mxu2 %vm730_vm8, %v831_v59 }
 0x63b   :  { %v913_v9 = vpop.f32.mrf.mxu2 }
 0x63c   :  { %v917_v53 = vmul.f32 0.35355338, %v913_v9 }
 0x63e   :  { %v919_v10 = vmul.f32 %v917_v53, %v4177_v28 }
 0x640   :  { %v923_v11 = vsel %vm730_vm8, %v919_v10, -inf }
 0x641   :  { %924 = vmax.xlane.f32.xlu0 %v923_v11 }
 0x655   :  { %1080 = vrot.lane.b32.xlu0 %v4150_v54, %s3818_s26 }
 0x65d   :  { %1247 = vrot.lane.b32.xlu0 %v4150_v54, %s3816_s4 }
 0x665   :  { %1245 = vrot.lane.b32.xlu0 %v4150_v54, %s3817_s24 }
 0x674   :  { %v857_v13 = vpop.f32.mrf.mxu3 }
 0x675   :  { %2944 = vmatmul.msk.f32.gmra.mxu2 %vm730_vm8, %v857_v13 }
 0x67c   :  { %v965_v15 = vpop.f32.mrf.mxu3 }
 0x67d   :  { %2941 = vmatmul.msk.f32.vlgmr.msra.gmra.mxu0 %vm730_vm8, %v965_v15  ;;  %2954 = vmatmul.msk.f32.vlgmr.msrb.gmra.mxu2 %vm730_vm8, %v1218_v14 }
 0x684   :  { %v1077_v20 = vpop.f32.mrf.mxu3 }
 0x685   :  { %v1108_v22 = vmul.f32 0.35355338, %v1077_v20 }
 0x687   :  { %v1110_v24 = vmul.f32 %v1108_v22, %v4171_v17 }
 0x689   :  { %v1112_v25 = vsel %vm730_vm8, %v1110_v24, -inf }
 0x6b4   :  { %v925_v16 = vpop.xlane.xlu0 %924 }
 0x6b5   :  { %v927_v57 = vsub.f32 %v919_v10, %v925_v16 }
 0x6b7   :  { %v930_v19 = vmul.f32 1.442695, %v927_v57  ;;  %v4225_v26 = vpop.f32.mrf.mxu2 }
 0x6b9   :  { %3119 = vpow2.f32 %v930_v19 }
 0x6bf   :  { %v3120_v21 = vpop.eup %3119 }
 0x6c0   :  { %v935_v23 = vsel %vm730_vm8, %v3120_v21, 0.0 }
 0x6c1   :  { %936 = vadd.xlane.f32.xlu2 %v935_v23  ;;  %v726_v23 = vld [vmem:[#allocation14 + $0x18] sm:$0xff] }
 0x6c7   :  { %v1081_v35 = vpop.permute.xlu0 %1080 }
 0x6c9   :  { %1113 = vmax.xlane.f32.xlu2 %v1112_v25 }
 0x6cf   :  { %v1248_v41 = vpop.permute.xlu0 %1247 }
 0x6d7   :  { %v1246_v62 = vpop.permute.xlu0 %1245 }
 0x6e1   :  { %1134 = vrot.lane.b32.xlu2 %v4144_v3, %s3819_s8 }
 0x6f8   :  { %v4227_v27 = vpop.f32.mrf.mxu2 }
 0x700   :  { %v1242_v29 = vpop.f32.mrf.mxu2 }
 0x701   :  { %v1273_v30 = vmul.f32 0.35355338, %v1242_v29 }
 0x703   :  { %v1275_v31 = vmul.f32 %v1273_v30, %v4171_v17 }
 0x705   :  { %v1277_v32 = vsel %vm730_vm8, %v1275_v31, -inf }
 0x70a   :  { %1278 = vmax.xlane.f32.xlu2 %v1277_v32  ;;  %v1017_v32 = vpop.f32.mrf.mxu0 }
 0x734   :  { %v937_v33 = vpop.xlane.xlu2 %936 }
 0x735   :  { %3121 = vrcp.f32 %v937_v33 }
 0x73b   :  { %v3122_v34 = vpop.eup %3121 }
 0x73c   :  { %v1114_v36 = vpop.xlane.xlu2 %1113  ;;  %v941_v37 = vmul.f32 %v3122_v34, %v3120_v21 }
 0x73d   :  { %v1118_v38 = vsub.f32 %v1110_v24, %v1114_v36  ;;  %v1047_v36 = vadd.f32 %v4225_v26, %v1017_v32 }
 0x73e   :  { %2940 = vmatmul.msk.f32.vlgmr.msrb.gmra.mxu1 %vm730_vm8, %v941_v37 }
 0x73f   :  { %v1120_v39 = vmul.f32 1.442695, %v1118_v38  ;;  %v3072_v38 = vld [vmem:[#allocation16] ss:$0 sm:$0xff] }
 0x741   :  { %3123 = vpow2.f32 %v1120_v39 }
 0x744   :  { %v1135_v40 = vpop.permute.xlu2 %1134 }
 0x745   :  { %1155 = vmatpush.msra.mxu3 %v1135_v40 }
 0x746   :  { %2948 = vmatmul.msk.f32.vlgmr.msra.gmra.mxu1 %vm730_vm8, %v1081_v35 }
 0x747   :  { %2955 = vmatpush.xpose.msk.msrb.mxu3 %vm730_vm8, %v1248_v41  ;;  %v3124_v42 = vpop.eup %3123 }
 0x748   :  { %v1124_v43 = vsel %vm730_vm8, %v3124_v42, 0.0 }
 0x749   :  { %1125 = vadd.xlane.f32.xlu1 %v1124_v43 }
 0x77d   :  { %v1279_v44 = vpop.xlane.xlu2 %1278 }
 0x77e   :  { %v1283_v45 = vsub.f32 %v1275_v31, %v1279_v44 }
 0x780   :  { %v1285_v46 = vmul.f32 1.442695, %v1283_v45 }
 0x782   :  { %3125 = vpow2.f32 %v1285_v46 }
 0x788   :  { %v3126_v47 = vpop.eup %3125 }
 0x789   :  { %v1289_v48 = vsel %vm730_vm8, %v3126_v47, 0.0 }
 0x78a   :  { %1290 = vadd.xlane.f32.xlu1 %v1289_v48 }
 0x7bb   :  { %v991_v49 = vpop.f32.mrf.mxu1 }
 0x7bc   :  { %2942 = vmatmul.msk.f32.gmra.mxu0 %vm730_vm8, %v991_v49  ;;  %v1126_v50 = vpop.xlane.xlu1 %1125 }
 0x7bd   :  { %3127 = vrcp.f32 %v1126_v50 }
 0x7c3   :  { %v3128_v51 = vpop.eup %3127  ;;  %v1105_v52 = vpop.f32.mrf.mxu1 }
 0x7c4   :  { %v1132_v55 = vmul.f32 %v3128_v51, %v3124_v42  ;;  %v1109_v56 = vmul.f32 0.35355338, %v1105_v52 }
 0x7c6   :  { %2949 = vmatmul.msk.f32.vlgmr.msra.gmra.mxu3 %vm730_vm8, %v1132_v55  ;;  %v1111_v58 = vmul.f32 %v1109_v56, %v4177_v28 }
 0x7c7   :  { %1372 = vmatpush.msra.mxu3 %v726_v23 }
 0x7c8   :  { %v1115_v60 = vsel %vm730_vm8, %v1111_v58, -inf }
 0x7c9   :  { %1116 = vmax.xlane.f32.xlu0 %v1115_v60  ;;  %v1447_v60 = vld [vmem:[#allocation23 + $0x8] sm:$0xff] }
 0x7ce   :  { %2956 = vmatmul.msk.f32.vlgmr.msrb.gmra.mxu3 %vm730_vm8, %v1246_v62  ;;  %v1446_v62 = vld [vmem:[#allocation23] sm:$0xff] }
 0x7dd   :  { %1299 = vrot.lane.b32.xlu0 %v4144_v3, %s3820_s9 }
 0x7fd   :  { %v1291_v3 = vpop.xlane.xlu1 %1290 }
 0x839   :  { %v1020_v33 = vpop.f32.mrf.mxu0 }
 0x83a   :  { %v1050_v45 = vadd.f32 %v4227_v27, %v1020_v33  ;;  %v1448_v27 = vld [vmem:[#allocation23 + $0x10] sm:$0xff]  ;;  %v3075_v33 = vld [vmem:[#allocation25] ss:$0 sm:$0xff] }
 0x83c   :  { %v1117_v1 = vpop.xlane.xlu0 %1116 }
 0x83d   :  { %v1119_v2 = vsub.f32 %v1111_v58, %v1117_v1  ;;  %v1449_v58 = vld [vmem:[#allocation23 + $0x18] sm:$0xff] }
 0x83f   :  { %v1122_v4 = vmul.f32 1.442695, %v1119_v2 }
 0x841   :  { %3129 = vpow2.f32 %v1122_v4 }
 0x847   :  { %v3130_v5 = vpop.eup %3129 }
 0x848   :  { %v1127_v6 = vsel %vm730_vm8, %v3130_v5, 0.0 }
 0x849   :  { %v1157_v7 = vpop.f32.mrf.mxu3  ;;  %1128 = vadd.xlane.f32.xlu1 %v1127_v6 }
 0x84a   :  { %2951 = vmatmul.msk.f32.vlgmr.msrb.gmra.mxu0 %vm730_vm8, %v1157_v7 }
 0x84f   :  { %v1300_v19 = vpop.permute.xlu0 %1299 }
 0x851   :  { %v1270_v8 = vpop.f32.mrf.mxu3 }
 0x852   :  { %v1274_v59 = vmul.f32 0.35355338, %v1270_v8 }
 0x854   :  { %v1276_v9 = vmul.f32 %v1274_v59, %v4177_v28 }
 0x856   :  { %v1280_v53 = vsel %vm730_vm8, %v1276_v9, -inf }
 0x857   :  { %1281 = vmax.xlane.f32.xlu2 %v1280_v53 }
 0x862   :  { %1160 = vrot.lane.b32.xlu1 %v4150_v54, %s3819_s8 }
 0x86a   :  { %1325 = vrot.lane.b32.xlu1 %v4150_v54, %s3820_s9 }
 0x8bc   :  { %v1129_v10 = vpop.xlane.xlu1 %1128 }
 0x8bd   :  { %3131 = vrcp.f32 %v1129_v10 }
 0x8c3   :  { %v3132_v14 = vpop.eup %3131 }
 0x8c4   :  { %v1133_v15 = vmul.f32 %v3132_v14, %v3130_v5  ;;  %v3074_v14 = vld [vmem:[#allocation19] ss:$0 sm:$0xff] }
 0x8c7   :  { %v1209_v35 = vpop.f32.mrf.mxu0 }
 0x8c8   :  { %v1215_v37 = vadd.f32 %v1209_v35, %v1047_v36 }
 0x8ca   :  { %v1282_v11 = vpop.xlane.xlu2 %1281 }
 0x8cb   :  { %v1284_v12 = vsub.f32 %v1276_v9, %v1282_v11  ;;  %v3073_v11 = vld [vmem:[#allocation17] ss:$0 sm:$0xff] }
 0x8cd   :  { %v1287_v13 = vmul.f32 1.442695, %v1284_v12 }
 0x8cf   :  { %3133 = vpow2.f32 %v1287_v13 }
 0x8d0   :  { %3135 = vrcp.f32 %v1291_v3 }
 0x8d4   :  { %v1161_v16 = vpop.permute.xlu1 %1160 }
 0x8d5   :  { %v3134_v57 = vpop.eup %3133  ;;  %1181 = vmatpush.msrb.mxu1 %v1161_v16 }
 0x8d6   :  { %2950 = vmatmul.msk.f32.vlgmr.msrb.gmra.mxu1 %vm730_vm8, %v1133_v15  ;;  %v1292_v20 = vsel %vm730_vm8, %v3134_v57, 0.0  ;;  %v3136_v54 = vpop.eup %3135 }
 0x8d7   :  { %1320 = vmatpush.msra.mxu1 %v1300_v19  ;;  %1293 = vadd.xlane.f32.xlu2 %v1292_v20  ;;  %v1297_v21 = vmul.f32 %v3136_v54, %v3126_v47 }
 0x8d9   :  { %1472 = vmatpush.msrb.mxu1 %v1449_v58 }
 0x8db   :  { %1473 = vmatpush.msrb.mxu1 %v1448_v27 }
 0x8dc   :  { %v1326_v22 = vpop.permute.xlu1 %1325 }
 0x8dd   :  { %1346 = vmatpush.msra.mxu2 %v1326_v22  ;;  %1474 = vmatpush.msrb.mxu1 %v1447_v60 }
 0x8de   :  { %2957 = vmatmul.msk.f32.vlgmr.msra.gmra.mxu1 %vm730_vm8, %v1297_v21 }
 0x8df   :  { %1475 = vmatpush.msrb.mxu1 %v1446_v62 }
 0x94a   :  { %v1294_v24 = vpop.xlane.xlu2 %1293 }
 0x94b   :  { %3137 = vrcp.f32 %v1294_v24 }
 0x951   :  { %v3138_v25 = vpop.eup %3137 }
 0x952   :  { %v1298_v29 = vmul.f32 %v3138_v25, %v3134_v57 }
 0x953   :  { %v1183_v30 = vpop.f32.mrf.mxu1 }
 0x954   :  { %2952 = vmatmul.msk.f32.gmra.mxu0 %vm730_vm8, %v1183_v30  ;;  %2958 = vmatmul.msk.f32.vlgmr.msra.gmra.mxu2 %vm730_vm8, %v1298_v29 }
 0x95b   :  { %v1322_v31 = vpop.f32.mrf.mxu1 }
 0x95c   :  { %2959 = vmatmul.msk.f32.vlgmr.msra.gmra.mxu3 %vm730_vm8, %v1322_v31 }
 0x9d1   :  { %v1212_v44 = vpop.f32.mrf.mxu0 }
 0x9d2   :  { %v1216_v46 = vadd.f32 %v1212_v44, %v1050_v45 }
 0x9d7   :  { %v1348_v34 = vpop.f32.mrf.mxu2 }
 0x9d8   :  { %2960 = vmatmul.msk.f32.gmra.mxu3 %vm730_vm8, %v1348_v34 }
 0x9df   :  { %v1374_v39 = vpop.f32.mrf.mxu3 }
 0x9e0   :  { %v1380_v40 = vadd.f32 %v1374_v39, %v1215_v37 }
 0x9e2   :  { %v1386_v41 = vadd.f32 %v3072_v38, %v1380_v40 }
 0x9e4   :  { %v1388_v42 = vadd.f32 %v1386_v41, %v4136_v61 }
 0x9e6   :  { %v1392_v43 = vsel %vm624_vm0, %v1388_v42, 0.0 }
 0x9e7   :  { %1393 = vadd.xlane.f32.xlu2 %v1392_v43 }
 0xa5a   :  { %v1394_v47 = vpop.xlane.xlu2 %1393 }
 0xa5b   :  { %v1398_v48 = vmul.f32 %v1394_v47, %v4116_v18  ;;  %v1377_v49 = vpop.f32.mrf.mxu3 }
 0xa5c   :  { %v1381_v50 = vadd.f32 %v1377_v49, %v1216_v46  ;;  %v1574_v46 = vld [vmem:[#allocation26 + $0x18] sm:$0xff]  ;;  %v1573_v49 = vld [vmem:[#allocation26 + $0x10] sm:$0xff] }
 0xa5d   :  { %v1400_v26 = vsub.f32 %v1388_v42, %v1398_v48  ;;  %1597 = vmatpush.msra.mxu0 %v1574_v46 }
 0xa5e   :  { %v1387_v51 = vadd.f32 %v3072_v38, %v1381_v50 }
 0xa5f   :  { %v1402_v52 = vmul.f32 %v1400_v26, %v1400_v26  ;;  %1598 = vmatpush.msra.mxu0 %v1573_v49 }
 0xa60   :  { %v1389_v55 = vadd.f32 %v1387_v51, %v4140_v0 }
 0xa61   :  { %v1404_v56 = vsel %vm624_vm0, %v1402_v52, 0.0  ;;  %v1571_v52 = vld [vmem:[#allocation26] sm:$0xff] }
 0xa62   :  { %1405 = vadd.xlane.f32.xlu0 %v1404_v56  ;;  %v1395_v61 = vsel %vm624_vm0, %v1389_v55, 0.0 }
 0xa63   :  { %1396 = vadd.xlane.f32.xlu1 %v1395_v61 }
 0xad5   :  { %v1406_v63 = vpop.xlane.xlu0 %1405 }
 0xad6   :  { %v1410_v1 = vmul.f32 %v1406_v63, %v4116_v18  ;;  %v1397_v2 = vpop.xlane.xlu1 %1396 }
 0xad7   :  { %v1399_v0 = vmul.f32 %v1397_v2, %v4116_v18 }
 0xad8   :  { %v1412_v4 = vadd.f32 1e-05, %v1410_v1 }
 0xad9   :  { %v1401_v5 = vsub.f32 %v1389_v55, %v1399_v0 }
 0xada   :  { %3139 = vrsqrt.f32 %v1412_v4  ;;  %vm1420_vm11 = vweird.f32 %v1412_v4 }
 0xadb   :  { %v1403_v6 = vmul.f32 %v1401_v5, %v1401_v5 }
 0xadd   :  { %v1407_v7 = vsel %vm624_vm0, %v1403_v6, 0.0 }
 0xade   :  { %1408 = vadd.xlane.f32.xlu2 %v1407_v7 }
 0xae0   :  { %v3140_v8 = vpop.eup %3139 }
 0xae1   :  { %v1415_v59 = vmul.f32 %v3140_v8, %v1412_v4  ;;  %vm1421_vm10 = vweird.f32 %v3140_v8 }
 0xae2   :  { %vm1422_vm12 = vmor %vm1420_vm11, %vm1421_vm10 }
 0xae3   :  { %v1416_v9 = vmul.f32 %v3140_v8, %v1415_v59 }
 0xae5   :  { %v1417_v53 = vmul.f32 0.5, %v1416_v9 }
 0xae7   :  { %v1418_v3 = vsub.f32 1.5, %v1417_v53 }
 0xae9   :  { %v1419_v10 = vmul.f32 %v3140_v8, %v1418_v3 }
 0xaeb   :  { %v1423_v12 = vsel %vm1422_vm12, %v3140_v8, %v1419_v10 }
 0xaec   :  { %v1434_v13 = vmul.f32 %v1423_v12, %v1400_v26  ;;  %v1572_v26 = vld [vmem:[#allocation26 + $0x8] sm:$0xff] }
 0xaed   :  { %1599 = vmatpush.msra.mxu0 %v1572_v26 }
 0xaee   :  { %v1439_v15 = vmul.f32 %v3073_v11, %v1434_v13 }
 0xaef   :  { %1600 = vmatpush.msra.mxu0 %v1571_v52 }
 0xaf0   :  { %v4269_v16 = vadd.f32 %v3074_v14, %v1439_v15 }
 0xaf2   :  { %2961 = vmatmul.msk.f32.vlgmr.msrb.gmra.mxu1 %vm624_vm0, %v4269_v16 }
 0xb51   :  { %v1409_v57 = vpop.xlane.xlu2 %1408 }
 0xb52   :  { %v1411_v19 = vmul.f32 %v1409_v57, %v4116_v18 }
 0xb54   :  { %v1413_v20 = vadd.f32 1e-05, %v1411_v19 }
 0xb56   :  { %3141 = vrsqrt.f32 %v1413_v20  ;;  %vm1430_vm14 = vweird.f32 %v1413_v20 }
 0xb5c   :  { %v3142_v54 = vpop.eup %3141 }
 0xb5d   :  { %v1425_v21 = vmul.f32 %v3142_v54, %v1413_v20  ;;  %vm1431_vm13 = vweird.f32 %v3142_v54 }
 0xb5e   :  { %vm1432_vm15 = vmor %vm1430_vm14, %vm1431_vm13 }
 0xb5f   :  { %v1426_v22 = vmul.f32 %v3142_v54, %v1425_v21 }
 0xb61   :  { %v1427_v23 = vmul.f32 0.5, %v1426_v22 }
 0xb63   :  { %v1428_v24 = vsub.f32 1.5, %v1427_v23 }
 0xb65   :  { %v1429_v25 = vmul.f32 %v3142_v54, %v1428_v24 }
 0xb67   :  { %v1433_v29 = vsel %vm1432_vm15, %v3142_v54, %v1429_v25 }
 0xb68   :  { %v1435_v30 = vmul.f32 %v1433_v29, %v1401_v5 }
 0xb6a   :  { %v1440_v31 = vmul.f32 %v3073_v11, %v1435_v30 }
 0xb6c   :  { %v4274_v32 = vadd.f32 %v3074_v14, %v1440_v31 }
 0xb6e   :  { %2962 = vmatmul.msk.f32.gmra.mxu1 %vm624_vm0, %v4274_v32 }
 0xb6f   :  { %v1477_v34 = vpop.f32.mrf.mxu1 }
 0xb70   :  { %v1478_v35 = vadd.f32 %v3075_v33, %v1477_v34 }
 0xb72   :  { %v1485_v36 = vmul.f32 0.70710677, %v1478_v35  ;;  %v1483_v12 = vmul.f32 0.5, %v1478_v35 }
 0xb74   :  { %v1487_v37 = vmul.f32 %v1485_v36, %v1485_v36 }
 0xb76   :  { %v1488_v38 = vmin.f32 %v1487_v37, 16.0 }
 0xb78   :  { %v1489_v39 = vmul.f32 2.1237322e-06, %v1488_v38  ;;  %v1500_v40 = vmul.f32 3.8918573e-05, %v1488_v38 }
 0xb7a   :  { %v1490_v41 = vadd.f32 0.00028619796, %v1489_v39  ;;  %v1501_v42 = vadd.f32 0.001143296, %v1500_v40 }
 0xb7c   :  { %v1491_v43 = vmul.f32 %v1490_v41, %v1488_v38  ;;  %v1502_v44 = vmul.f32 %v1501_v42, %v1488_v38 }
 0xb7e   :  { %v1503_v45 = vadd.f32 0.014752088, %v1502_v44  ;;  %v1492_v47 = vadd.f32 0.0036580483, %v1491_v43 }
 0xb80   :  { %v1504_v48 = vmul.f32 %v1503_v45, %v1488_v38  ;;  %v1493_v51 = vmul.f32 %v1492_v47, %v1488_v38 }
 0xb82   :  { %v1505_v50 = vadd.f32 0.112945676, %v1504_v48  ;;  %v1494_v61 = vadd.f32 0.05243302, %v1493_v51 }
 0xb84   :  { %v1506_v55 = vmul.f32 %v1505_v50, %v1488_v38  ;;  %v1495_v60 = vmul.f32 %v1494_v61, %v1488_v38 }
 0xb86   :  { %v1507_v56 = vadd.f32 0.4994258, %v1506_v55  ;;  %v1496_v62 = vadd.f32 0.18741608, %v1495_v60 }
 0xb88   :  { %v1508_v58 = vmul.f32 %v1507_v56, %v1488_v38  ;;  %v1497_v1 = vmul.f32 %v1496_v62, %v1488_v38 }
 0xb8a   :  { %v1509_v27 = vadd.f32 1.0, %v1508_v58  ;;  %v1498_v5 = vadd.f32 1.1283791, %v1497_v1 }
 0xb8c   :  { %3143 = vrcp.f32 %v1509_v27  ;;  %v1521_v4 = vand.u32 2147483648, %v1509_v27  ;;  %v1519_v7 = vand.u32 2147483647, %v1509_v27  ;;  %vm1515_vm2 = vweird.f32 %v1509_v27 }
 0xb8d   :  { %v1499_v9 = vmul.f32 %v1498_v5, %v1485_v36 }
 0xb8e   :  { %v1522_v59 = vor.u32 1.1754944e-38, %v1521_v4  ;;  %vm1520_vm4 = vcmp.eq.f32.partialorder %v1519_v7, 8.507059e+37 }
 0xb92   :  { %v3144_v63 = vpop.eup %3143 }
 0xb93   :  { %v1511_v2 = vmul.f32 %v3144_v63, %v1509_v27  ;;  %vm1516_vm1 = vweird.f32 %v3144_v63 }
 0xb94   :  { %vm1517_vm3 = vmor %vm1515_vm2, %vm1516_vm1 }
 0xb95   :  { %v1512_v0 = vsub.f32 1.0, %v1511_v2 }
 0xb97   :  { %v1513_v6 = vmul.f32 %v3144_v63, %v1512_v0 }
 0xb99   :  { %v1514_v8 = vadd.f32 %v3144_v63, %v1513_v6 }
 0xb9b   :  { %v1518_v53 = vsel %vm1517_vm3, %v3144_v63, %v1514_v8  ;;  %v3076_v63 = vld [vmem:[#allocation28] ss:$0 sm:$0xff] }
 0xb9c   :  { %v1523_v3 = vsel %vm1520_vm4, %v1522_v59, %v1518_v53 }
 0xb9d   :  { %v1524_v10 = vmul.f32 %v1523_v3, %v1499_v9 }
 0xb9f   :  { %v2963_v11 = vclamps-f32 %v1524_v10, 1.0 }
 0xba1   :  { %v1567_v13 = vadd.f32 1.0, %v2963_v11  ;;  %v2969_v11 = vld [vmem:[%s4578_s29 + $0x30] sm:$0xff] }
 0xba3   :  { %v1569_v14 = vmul.f32 %v1567_v13, %v1483_v12  ;;  %v2968_v12 = vld [vmem:[%s4578_s29 + $0x28] sm:$0xff] }
 0xba5   :  { %2965 = vmatmul.msk.f32.vlgmr.msra.gmra.mxu0 %vm624_vm0, %v1569_v14 }
 0xbeb   :  { %v1480_v15 = vpop.f32.mrf.mxu1 }
 0xbec   :  { %v1481_v57 = vadd.f32 %v3075_v33, %v1480_v15 }
 0xbee   :  { %v1486_v19 = vmul.f32 0.70710677, %v1481_v57  ;;  %v1484_v27 = vmul.f32 0.5, %v1481_v57 }
 0xbf0   :  { %v1527_v20 = vmul.f32 %v1486_v19, %v1486_v19 }
 0xbf2   :  { %v1528_v54 = vmin.f32 %v1527_v20, 16.0 }
 0xbf4   :  { %v1529_v21 = vmul.f32 2.1237322e-06, %v1528_v54  ;;  %v1540_v22 = vmul.f32 3.8918573e-05, %v1528_v54 }
 0xbf6   :  { %v1530_v23 = vadd.f32 0.00028619796, %v1529_v21  ;;  %v1541_v24 = vadd.f32 0.001143296, %v1540_v22 }
 0xbf8   :  { %v1531_v25 = vmul.f32 %v1530_v23, %v1528_v54  ;;  %v1542_v29 = vmul.f32 %v1541_v24, %v1528_v54 }
 0xbfa   :  { %v1543_v30 = vadd.f32 0.014752088, %v1542_v29  ;;  %v1532_v31 = vadd.f32 0.0036580483, %v1531_v25 }
 0xbfc   :  { %v1544_v34 = vmul.f32 %v1543_v30, %v1528_v54  ;;  %v1533_v35 = vmul.f32 %v1532_v31, %v1528_v54  ;;  %v3077_v31 = vld [vmem:[#allocation20] ss:$0 sm:$0xff] }
 0xbfe   :  { %v1545_v36 = vadd.f32 0.112945676, %v1544_v34  ;;  %v1534_v39 = vadd.f32 0.05243302, %v1533_v35  ;;  %v3078_v35 = vld [vmem:[#allocation22] ss:$0 sm:$0xff] }
 0xc00   :  { %v1546_v37 = vmul.f32 %v1545_v36, %v1528_v54  ;;  %v1535_v33 = vmul.f32 %v1534_v39, %v1528_v54 }
 0xc02   :  { %v1547_v38 = vadd.f32 0.4994258, %v1546_v37  ;;  %v1536_v42 = vadd.f32 0.18741608, %v1535_v33 }
 0xc04   :  { %v1548_v40 = vmul.f32 %v1547_v38, %v1528_v54  ;;  %v1537_v44 = vmul.f32 %v1536_v42, %v1528_v54 }
 0xc06   :  { %v1549_v41 = vadd.f32 1.0, %v1548_v40  ;;  %v1538_v48 = vadd.f32 1.1283791, %v1537_v44 }
 0xc08   :  { %3145 = vrcp.f32 %v1549_v41  ;;  %v1561_v47 = vand.u32 2147483648, %v1549_v41  ;;  %v1559_v50 = vand.u32 2147483647, %v1549_v41  ;;  %vm1555_vm6 = vweird.f32 %v1549_v41 }
 0xc09   :  { %v1539_v52 = vmul.f32 %v1538_v48, %v1486_v19 }
 0xc0a   :  { %v1562_v51 = vor.u32 1.1754944e-38, %v1561_v47  ;;  %vm1560_vm9 = vcmp.eq.f32.partialorder %v1559_v50, 8.507059e+37  ;;  %v3079_v50 = vld [vmem:[#allocation13 + $0x1] ss:$0 sm:$0xff] }
 0xc0e   :  { %v3146_v43 = vpop.eup %3145 }
 0xc0f   :  { %v1551_v45 = vmul.f32 %v3146_v43, %v1549_v41  ;;  %vm1556_vm5 = vweird.f32 %v3146_v43 }
 0xc10   :  { %vm1557_vm7 = vmor %vm1555_vm6, %vm1556_vm5 }
 0xc11   :  { %v1552_v46 = vsub.f32 1.0, %v1551_v45 }
 0xc13   :  { %v1553_v49 = vmul.f32 %v3146_v43, %v1552_v46 }
 0xc15   :  { %v1554_v26 = vadd.f32 %v3146_v43, %v1553_v49 }
 0xc17   :  { %v1558_v55 = vsel %vm1557_vm7, %v3146_v43, %v1554_v26 }
 0xc18   :  { %v1563_v56 = vsel %vm1560_vm9, %v1562_v51, %v1558_v55 }
 0xc19   :  { %v1564_v61 = vmul.f32 %v1563_v56, %v1539_v52 }
 0xc1b   :  { %v2964_v58 = vclamps-f32 %v1564_v61, 1.0 }
 0xc1d   :  { %v1568_v60 = vadd.f32 1.0, %v2964_v58 }
 0xc1f   :  { %v1570_v62 = vmul.f32 %v1568_v60, %v1484_v27 }
 0xc21   :  { %2966 = vmatmul.msk.f32.gmra.mxu0 %vm624_vm0, %v1570_v62 }
 0xc22   :  { %v1602_v1 = vpop.f32.mrf.mxu0 }
 0xc23   :  { %v1603_v2 = vadd.f32 %v3076_v63, %v1602_v1 }
 0xc25   :  { %v1608_v0 = vadd.f32 %v1603_v2, %v4269_v16  ;;  %v2970_v16 = vld [vmem:[%s4578_s29 + $0x38] sm:$0xff] }
 0xc26   :  { %1694 = vmatpush.msrb.mxu2 %v2970_v16 }
 0xc27   :  { %v1612_v4 = vsel %vm624_vm0, %v1608_v0, 0.0 }
 0xc28   :  { %1613 = vadd.xlane.f32.xlu2 %v1612_v4  ;;  %1695 = vmatpush.msrb.mxu2 %v2969_v11 }
 0xc2a   :  { %1696 = vmatpush.msrb.mxu2 %v2968_v12 }
 0xc9b   :  { %v1614_v5 = vpop.xlane.xlu2 %1613 }
 0xc9c   :  { %v1618_v6 = vmul.f32 %v1614_v5, %v4116_v18 }
 0xc9e   :  { %v1620_v7 = vsub.f32 %v1608_v0, %v1618_v6  ;;  %v1605_v8 = vpop.f32.mrf.mxu0 }
 0xc9f   :  { %v1606_v9 = vadd.f32 %v3076_v63, %v1605_v8 }
 0xca0   :  { %v1622_v59 = vmul.f32 %v1620_v7, %v1620_v7 }
 0xca1   :  { %v1609_v3 = vadd.f32 %v1606_v9, %v4274_v32  ;;  %v2967_v32 = vld [vmem:[%s4578_s29 + $0x20] sm:$0xff] }
 0xca2   :  { %v1624_v53 = vsel %vm624_vm0, %v1622_v59, 0.0  ;;  %1697 = vmatpush.msrb.mxu2 %v2967_v32 }
 0xca3   :  { %1625 = vadd.xlane.f32.xlu2 %v1624_v53  ;;  %v1615_v10 = vsel %vm624_vm0, %v1609_v3, 0.0 }
 0xcab   :  { %1616 = vadd.xlane.f32.xlu2 %v1615_v10 }
 0xd16   :  { %v1626_v13 = vpop.xlane.xlu2 %1625 }
 0xd17   :  { %v1630_v14 = vmul.f32 %v1626_v13, %v4116_v18 }
 0xd19   :  { %v1632_v15 = vadd.f32 1e-05, %v1630_v14 }
 0xd1b   :  { %3147 = vrsqrt.f32 %v1632_v15  ;;  %vm1640_vm11 = vweird.f32 %v1632_v15 }
 0xd1e   :  { %v1617_v57 = vpop.xlane.xlu2 %1616 }
 0xd1f   :  { %v1619_v19 = vmul.f32 %v1617_v57, %v4116_v18 }
 0xd21   :  { %v3148_v20 = vpop.eup %3147  ;;  %v1621_v54 = vsub.f32 %v1609_v3, %v1619_v19 }
 0xd22   :  { %v1635_v21 = vmul.f32 %v3148_v20, %v1632_v15  ;;  %vm1641_vm10 = vweird.f32 %v3148_v20 }
 0xd23   :  { %v1623_v22 = vmul.f32 %v1621_v54, %v1621_v54  ;;  %vm1642_vm12 = vmor %vm1640_vm11, %vm1641_vm10 }
 0xd24   :  { %v1636_v23 = vmul.f32 %v3148_v20, %v1635_v21 }
 0xd25   :  { %v1627_v24 = vsel %vm624_vm0, %v1623_v22, 0.0 }
 0xd26   :  { %v1637_v25 = vmul.f32 0.5, %v1636_v23  ;;  %1628 = vadd.xlane.f32.xlu2 %v1627_v24 }
 0xd28   :  { %v1638_v29 = vsub.f32 1.5, %v1637_v25 }
 0xd2a   :  { %v1639_v30 = vmul.f32 %v3148_v20, %v1638_v29 }
 0xd2c   :  { %v1643_v34 = vsel %vm1642_vm12, %v3148_v20, %v1639_v30 }
 0xd2d   :  { %v1654_v36 = vmul.f32 %v1643_v34, %v1620_v7 }
 0xd2f   :  { %v1659_v37 = vmul.f32 %v3077_v31, %v1654_v36 }
 0xd31   :  { %v4301_v38 = vadd.f32 %v3078_v35, %v1659_v37 }
 0xd33   :  { %2971 = vmatmul.msk.f32.vlgmr.msrb.gmra.mxu2 %vm624_vm0, %v4301_v38 }
 0xd99   :  { %v1629_v39 = vpop.xlane.xlu2 %1628 }
 0xd9a   :  { %v1631_v40 = vmul.f32 %v1629_v39, %v4116_v18 }
 0xd9c   :  { %v1633_v41 = vadd.f32 1e-05, %v1631_v40 }
 0xd9e   :  { %3149 = vrsqrt.f32 %v1633_v41  ;;  %vm1650_vm14 = vweird.f32 %v1633_v41 }
 0xda4   :  { %v3150_v33 = vpop.eup %3149 }
 0xda5   :  { %v1645_v42 = vmul.f32 %v3150_v33, %v1633_v41  ;;  %vm1651_vm13 = vweird.f32 %v3150_v33 }
 0xda6   :  { %vm1652_vm15 = vmor %vm1650_vm14, %vm1651_vm13 }
 0xda7   :  { %v1646_v43 = vmul.f32 %v3150_v33, %v1645_v42 }
 0xda9   :  { %v1647_v44 = vmul.f32 0.5, %v1646_v43 }
 0xdab   :  { %v1648_v45 = vsub.f32 1.5, %v1647_v44  ;;  %v1706_v44 = vld [vmem:[#allocation14 + $0x20] sm:$0xff] }
 0xdad   :  { %v1649_v46 = vmul.f32 %v3150_v33, %v1648_v45 }
 0xdaf   :  { %v1653_v47 = vsel %vm1652_vm15, %v3150_v33, %v1649_v46 }
 0xdb0   :  { %v1655_v48 = vmul.f32 %v1653_v47, %v1621_v54 }
 0xdb2   :  { %v1660_v49 = vmul.f32 %v3077_v31, %v1655_v48 }
 0xdb4   :  { %v4306_v26 = vadd.f32 %v3078_v35, %v1660_v49 }
 0xdb6   :  { %v1699_v51 = vpop.f32.mrf.mxu2  ;;  %2972 = vmatmul.msk.f32.gmra.mxu2 %vm624_vm0, %v4306_v26 }
 0xdb7   :  { %v4310_v52 = vadd.f32 %v3079_v50, %v1699_v51 }
 0xdb9   :  { %1846 = vrot.lane.b32.xlu1 %v4310_v52, %s3810_s28  ;;  %1711 = vrot.lane.b32.xlu0 %v4310_v52, %s3809_s27 }
 0xdba   :  { %1844 = vrot.lane.b32.xlu2 %v4310_v52, %s3811_s22 }
 0xe14   :  { %v1845_v61 = vpop.permute.xlu2 %1844 }
 0xe2b   :  { %v1847_v55 = vpop.permute.xlu1 %1846  ;;  %v1712_v56 = vpop.permute.xlu0 %1711 }
 0xe2c   :  { %2973 = vmatpush.xpose.msk.msrb.mxu3 %vm730_vm8, %v1712_v56 }
 0xe2f   :  { %2974 = vmatmul.msk.f32.vlgmr.msrb.gmra.mxu3 %vm730_vm8, %v4310_v52 }
 0xe30   :  { %2979 = vmatpush.xpose.msk.msra.mxu3 %vm730_vm8, %v1847_v55 }
 0xe37   :  { %2980 = vmatmul.msk.f32.vlgmr.msra.gmra.mxu3 %vm730_vm8, %v1845_v61  ;;  %v1707_v61 = vld [vmem:[#allocation14 + $0x28] sm:$0xff] }
 0xe38   :  { %2002 = vmatpush.msrb.mxu3 %v1707_v61 }
 0xe39   :  { %v1702_v58 = vpop.f32.mrf.mxu2 }
 0xe3a   :  { %v4323_v27 = vadd.f32 %v3079_v50, %v1702_v58 }
 0xe3c   :  { %1738 = vrot.lane.b32.xlu0 %v4323_v27, %s3809_s27 }
 0xe44   :  { %1874 = vrot.lane.b32.xlu0 %v4323_v27, %s3810_s28 }
 0xe4c   :  { %1872 = vrot.lane.b32.xlu0 %v4323_v27, %s3811_s22 }
 0xeae   :  { %v1739_v60 = vpop.permute.xlu0 %1738 }
 0xeaf   :  { %2975 = vmatpush.xpose.msk.msra.mxu1 %vm730_vm8, %v1739_v60 }
 0xeb2   :  { %v1734_v62 = vpop.f32.mrf.mxu3  ;;  %2976 = vmatmul.msk.f32.vlgmr.msra.gmra.mxu1 %vm730_vm8, %v4323_v27 }
 0xeb3   :  { %v1764_v63 = vmul.f32 0.35355338, %v1734_v62 }
 0xeb5   :  { %v1766_v1 = vmul.f32 %v1764_v63, %v4171_v17 }
 0xeb6   :  { %v1875_v2 = vpop.permute.xlu0 %1874 }
 0xeb7   :  { %2981 = vmatpush.xpose.msk.msrb.mxu1 %vm730_vm8, %v1875_v2  ;;  %v1768_v0 = vsel %vm730_vm8, %v1766_v1, -inf }
 0xeb8   :  { %1769 = vmax.xlane.f32.xlu1 %v1768_v0 }
 0xeba   :  { %v1869_v4 = vpop.f32.mrf.mxu3 }
 0xebb   :  { %v1900_v5 = vmul.f32 0.35355338, %v1869_v4  ;;  %2031 = vmatpush.msra.mxu1 %v1706_v44 }
 0xebd   :  { %v1902_v6 = vmul.f32 %v1900_v5, %v4171_v17 }
 0xebe   :  { %v1873_v7 = vpop.permute.xlu0 %1872 }
 0xebf   :  { %2982 = vmatmul.msk.f32.vlgmr.msrb.gmra.mxu1 %vm730_vm8, %v1873_v7  ;;  %v1904_v8 = vsel %vm730_vm8, %v1902_v6, -inf }
 0xec0   :  { %1905 = vmax.xlane.f32.xlu2 %v1904_v8 }
 0xed8   :  { %1792 = vrot.lane.b32.xlu2 %v4310_v52, %s3812_s1 }
 0xee0   :  { %2039 = vrot.lane.b32.xlu2 %v4310_v52, %s3818_s26 }
 0xf2b   :  { %v1770_v59 = vpop.xlane.xlu1 %1769 }
 0xf2c   :  { %v1774_v9 = vsub.f32 %v1766_v1, %v1770_v59 }
 0xf2e   :  { %v1776_v53 = vmul.f32 1.442695, %v1774_v9 }
 0xf2f   :  { %v1761_v3 = vpop.f32.mrf.mxu1 }
 0xf30   :  { %3151 = vpow2.f32 %v1776_v53  ;;  %v1765_v10 = vmul.f32 0.35355338, %v1761_v3 }
 0xf32   :  { %v1767_v16 = vmul.f32 %v1765_v10, %v4177_v28 }
 0xf33   :  { %v1906_v11 = vpop.xlane.xlu2 %1905 }
 0xf34   :  { %v1910_v12 = vsub.f32 %v1902_v6, %v1906_v11  ;;  %v1771_v32 = vsel %vm730_vm8, %v1767_v16, -inf }
 0xf35   :  { %1772 = vmax.xlane.f32.xlu2 %v1771_v32 }
 0xf36   :  { %v3152_v13 = vpop.eup %3151  ;;  %v1912_v14 = vmul.f32 1.442695, %v1910_v12 }
 0xf37   :  { %v1780_v15 = vsel %vm730_vm8, %v3152_v13, 0.0 }
 0xf38   :  { %3153 = vpow2.f32 %v1912_v14  ;;  %1781 = vadd.xlane.f32.xlu0 %v1780_v15 }
 0xf3b   :  { %v1793_v57 = vpop.permute.xlu2 %1792 }
 0xf3c   :  { %1813 = vmatpush.msrb.mxu0 %v1793_v57  ;;  %v1897_v54 = vpop.f32.mrf.mxu1 }
 0xf3d   :  { %v1901_v21 = vmul.f32 0.35355338, %v1897_v54 }
 0xf3e   :  { %v3154_v19 = vpop.eup %3153 }
 0xf3f   :  { %v1916_v20 = vsel %vm730_vm8, %v3154_v19, 0.0  ;;  %v1903_v22 = vmul.f32 %v1901_v21, %v4177_v28 }
 0xf40   :  { %1917 = vadd.xlane.f32.xlu1 %v1916_v20 }
 0xf41   :  { %v1907_v23 = vsel %vm730_vm8, %v1903_v22, -inf }
 0xf43   :  { %v2040_v24 = vpop.permute.xlu2 %2039 }
 0xf4c   :  { %2041 = vrot.lane.b32.xlu0 %v4310_v52, %s3814_s5 }
 0xf54   :  { %1818 = vrot.lane.b32.xlu0 %v4323_v27, %s3812_s1 }
 0xf59   :  { %1929 = vrot.lane.b32.xlu1 %v4310_v52, %s3815_s14 }
 0xf7e   :  { %1908 = vmax.xlane.f32.xlu0 %v1907_v23 }
 0xf92   :  { %2067 = vrot.lane.b32.xlu0 %v4323_v27, %s3818_s26 }
 0xf9a   :  { %2209 = vrot.lane.b32.xlu0 %v4310_v52, %s3816_s4 }
 0xfa2   :  { %2124 = vrot.lane.b32.xlu0 %v4310_v52, %s3819_s8 }
 0xfa8   :  { %v1773_v25 = vpop.xlane.xlu2 %1772 }
 0xfa9   :  { %v1775_v29 = vsub.f32 %v1767_v16, %v1773_v25 }
 0xfaa   :  { %2235 = vrot.lane.b32.xlu0 %v4323_v27, %s3817_s24 }
 0xfab   :  { %v1778_v30 = vmul.f32 1.442695, %v1775_v29  ;;  %v1782_v31 = vpop.xlane.xlu0 %1781 }
 0xfac   :  { %3155 = vrcp.f32 %v1782_v31  ;;  %v1708_v31 = vld [vmem:[#allocation14 + $0x30] sm:$0xff] }
 0xfad   :  { %3157 = vpow2.f32 %v1778_v30  ;;  %2197 = vmatpush.msra.mxu3 %v1708_v31  ;;  %v2446_v31 = vld [vmem:[#allocation23 + $0x38] sm:$0xff] }
 0xfb2   :  { %v3156_v34 = vpop.eup %3155 }
 0xfb3   :  { %v3158_v36 = vpop.eup %3157  ;;  %v1788_v35 = vmul.f32 %v3156_v34, %v3152_v13  ;;  %v1918_v37 = vpop.xlane.xlu1 %1917 }
 0xfb4   :  { %3159 = vrcp.f32 %v1918_v37  ;;  %v1783_v39 = vsel %vm730_vm8, %v3158_v36, 0.0 }
 0xfb5   :  { %1790 = vst.msk [vmem:[%s4579_s2] sm:$0xff] %vm730_vm8, %v1788_v35  ;;  %2977 = vmatmul.msk.f32.vlgmr.msrb.gmra.mxu0 %vm730_vm8, %v1788_v35  ;;  %1784 = vadd.xlane.f32.xlu1 %v1783_v39 }
 0xfba   :  { %v3160_v40 = vpop.eup %3159 }
 0xfbb   :  { %v1924_v41 = vmul.f32 %v3160_v40, %v3154_v19 }
 0xfbd   :  { %2983 = vst.msk [vmem:[%s4579_s2 + $0x10] sm:$0xff] %vm730_vm8, %v1924_v41 }
 0xfbe   :  { %v2042_v33 = vpop.permute.xlu0 %2041 }
 0xfc6   :  { %v1819_v42 = vpop.permute.xlu0 %1818 }
 0xfc7   :  { %1839 = vmatpush.msra.mxu2 %v1819_v42 }
 0xfcb   :  { %v1930_v43 = vpop.permute.xlu1 %1929 }
 0xfcc   :  { %1950 = vmatpush.msra.mxu0 %v1930_v43 }
 0xfcd   :  { %2985 = vmatmul.msk.f32.vlgmr.msra.gmra.mxu0 %vm730_vm8, %v1924_v41 }
 0xfce   :  { %2991 = vmatpush.xpose.msk.msrb.mxu0 %vm730_vm8, %v2042_v33 }
 0xfd5   :  { %2992 = vmatmul.msk.f32.vlgmr.msrb.gmra.mxu0 %vm730_vm8, %v2040_v24 }
 0xff1   :  { %v1909_v45 = vpop.xlane.xlu0 %1908 }
 0xff2   :  { %v1911_v46 = vsub.f32 %v1903_v22, %v1909_v45 }
 0xff4   :  { %v1914_v47 = vmul.f32 1.442695, %v1911_v46 }
 0xff6   :  { %3161 = vpow2.f32 %v1914_v47 }
 0xffc   :  { %v3162_v48 = vpop.eup %3161 }
 0xffd   :  { %v1919_v49 = vsel %vm730_vm8, %v3162_v48, 0.0 }
 0xffe   :  { %1920 = vadd.xlane.f32.xlu1 %v1919_v49 }
0x1004   :  { %v2068_v50 = vpop.permute.xlu0 %2067 }
0x100c   :  { %v2210_v51 = vpop.permute.xlu0 %2209 }
0x100d   :  { %3001 = vmatpush.xpose.msk.msrb.mxu1 %vm730_vm8, %v2210_v51 }
0x1014   :  { %v2125_v55 = vpop.permute.xlu0 %2124 }
0x1015   :  { %2145 = vmatpush.msra.mxu0 %v2125_v55 }
0x1017   :  { %2069 = vrot.lane.b32.xlu1 %v4323_v27, %s3814_s5 }
0x101c   :  { %v2236_v24 = vpop.permute.xlu0 %2235 }
0x101f   :  { %2207 = vrot.lane.b32.xlu1 %v4310_v52, %s3817_s24 }
0x1027   :  { %2237 = vrot.lane.b32.xlu1 %v4323_v27, %s3816_s4 }
0x1028   :  { %v1785_v56 = vpop.xlane.xlu1 %1784 }
0x1029   :  { %3163 = vrcp.f32 %v1785_v56 }
0x102f   :  { %v3164_v58 = vpop.eup %3163 }
0x1030   :  { %v1789_v60 = vmul.f32 %v3164_v58, %v3158_v36 }
0x1032   :  { %1791 = vst.msk [vmem:[%s4579_s2 + $0x8] sm:$0xff] %vm730_vm8, %v1789_v60  ;;  %v1815_v62 = vpop.f32.mrf.mxu0  ;;  %2978 = vmatmul.msk.f32.vlgmr.msra.gmra.mxu2 %vm730_vm8, %v1789_v60 }
0x1033   :  { %2989 = vmatmul.msk.f32.vlgmr.msra.gmra.mxu1 %vm730_vm8, %v1815_v62 }
0x104a   :  { %v1952_v63 = vpop.f32.mrf.mxu0 }
0x104b   :  { %2987 = vmatmul.msk.f32.vlgmr.msrb.gmra.mxu3 %vm730_vm8, %v1952_v63 }
0x1052   :  { %v2064_v1 = vpop.f32.mrf.mxu0 }
0x1053   :  { %v2095_v2 = vmul.f32 0.35355338, %v2064_v1 }
0x1055   :  { %v2097_v0 = vmul.f32 %v2095_v2, %v4171_v17  ;;  %v1709_v2 = vld [vmem:[#allocation14 + $0x38] sm:$0xff] }
0x1057   :  { %v2099_v4 = vsel %vm730_vm8, %v2097_v0, -inf }
0x1058   :  { %2100 = vmax.xlane.f32.xlu2 %v2099_v4 }
0x1070   :  { %1955 = vrot.lane.b32.xlu2 %v4323_v27, %s3815_s14 }
0x1071   :  { %v1921_v5 = vpop.xlane.xlu1 %1920 }
0x1072   :  { %3165 = vrcp.f32 %v1921_v5 }
0x1078   :  { %v3166_v6 = vpop.eup %3165 }
0x1079   :  { %v1925_v7 = vmul.f32 %v3166_v6, %v3162_v48 }
0x107b   :  { %2984 = vst.msk [vmem:[%s4579_s2 + $0x18] sm:$0xff] %vm730_vm8, %v1925_v7 }
0x1089   :  { %v2070_v8 = vpop.permute.xlu1 %2069 }
0x1091   :  { %v2208_v59 = vpop.permute.xlu1 %2207 }
0x1099   :  { %v2238_v9 = vpop.permute.xlu1 %2237 }
0x109a   :  { %3003 = vmatpush.xpose.msk.msrb.mxu0 %vm730_vm8, %v2238_v9 }
0x10b0   :  { %v4407_v13 = vpop.f32.mrf.mxu1 }
0x10b5   :  { %v1841_v53 = vpop.f32.mrf.mxu2 }
0x10b6   :  { %2990 = vmatmul.msk.f32.gmra.mxu1 %vm730_vm8, %v1841_v53 }
0x10be   :  { %3002 = vmatmul.msk.f32.vlgmr.msrb.gmra.mxu1 %vm730_vm8, %v2208_v59 }
0x10cb   :  { %v2101_v3 = vpop.xlane.xlu2 %2100 }
0x10cc   :  { %v2105_v10 = vsub.f32 %v2097_v0, %v2101_v3 }
0x10ce   :  { %v2107_v16 = vmul.f32 1.442695, %v2105_v10 }
0x10d0   :  { %3167 = vpow2.f32 %v2107_v16  ;;  %v3080_v16 = vld [vmem:[#allocation16 + $0x1] ss:$0 sm:$0xff] }
0x10d3   :  { %v1956_v11 = vpop.permute.xlu2 %1955 }
0x10d4   :  { %1976 = vmatpush.msrb.mxu2 %v1956_v11 }
0x10d5   :  { %2986 = vmatmul.msk.f32.vlgmr.msrb.gmra.mxu2 %vm730_vm8, %v1925_v7 }
0x10d6   :  { %v3168_v12 = vpop.eup %3167  ;;  %2993 = vmatpush.xpose.msk.msra.mxu2 %vm730_vm8, %v2070_v8 }
0x10d7   :  { %v2111_v32 = vsel %vm730_vm8, %v3168_v12, 0.0 }
0x10d8   :  { %2112 = vadd.xlane.f32.xlu2 %v2111_v32 }
0x10dd   :  { %2994 = vmatmul.msk.f32.vlgmr.msra.gmra.mxu2 %vm730_vm8, %v2068_v50 }
0x1133   :  { %v4409_v14 = vpop.f32.mrf.mxu1 }
0x113b   :  { %v2232_v15 = vpop.f32.mrf.mxu1 }
0x113c   :  { %v2263_v57 = vmul.f32 0.35355338, %v2232_v15 }
0x113e   :  { %v2265_v19 = vmul.f32 %v2263_v57, %v4171_v17 }
0x1140   :  { %v2267_v20 = vsel %vm730_vm8, %v2265_v19, -inf }
0x1141   :  { %2268 = vmax.xlane.f32.xlu0 %v2267_v20 }
0x114b   :  { %v2113_v54 = vpop.xlane.xlu2 %2112 }
0x114c   :  { %3169 = vrcp.f32 %v2113_v54 }
0x1152   :  { %v3170_v21 = vpop.eup %3169 }
0x1153   :  { %v2119_v22 = vmul.f32 %v3170_v21, %v3168_v12 }
0x1155   :  { %2995 = vst.msk [vmem:[%s4579_s2 + $0x20] sm:$0xff] %vm730_vm8, %v2119_v22  ;;  %2997 = vmatmul.msk.f32.vlgmr.msra.gmra.mxu0 %vm730_vm8, %v2119_v22 }
0x1156   :  { %2365 = vmatpush.msra.mxu0 %v1709_v2 }
0x1158   :  { %v1978_v23 = vpop.f32.mrf.mxu2 }
0x1159   :  { %2988 = vmatmul.msk.f32.gmra.mxu3 %vm730_vm8, %v1978_v23 }
0x115d   :  { %3004 = vmatmul.msk.f32.vlgmr.msrb.gmra.mxu0 %vm730_vm8, %v2236_v24 }
0x1160   :  { %v2092_v17 = vpop.f32.mrf.mxu2 }
0x1161   :  { %v2096_v25 = vmul.f32 0.35355338, %v2092_v17 }
0x1163   :  { %v2098_v29 = vmul.f32 %v2096_v25, %v4177_v28 }
0x1165   :  { %v2102_v30 = vsel %vm730_vm8, %v2098_v29, -inf }
0x1166   :  { %2103 = vmax.xlane.f32.xlu1 %v2102_v30 }
0x117f   :  { %2150 = vrot.lane.b32.xlu1 %v4323_v27, %s3819_s8  ;;  %s4580_s8 = sld [smem:[#allocation64_spill]] }
0x11b4   :  { %v2269_v39 = vpop.xlane.xlu0 %2268 }
0x11b5   :  { %v2273_v33 = vsub.f32 %v2265_v19, %v2269_v39 }
0x11b7   :  { %v2275_v44 = vmul.f32 1.442695, %v2273_v33 }
0x11d2   :  { %v2147_v34 = vpop.f32.mrf.mxu0 }
0x11d3   :  { %2999 = vmatmul.msk.f32.vlgmr.msra.gmra.mxu3 %vm730_vm8, %v2147_v34  ;;  %v2444_v34 = vld [vmem:[#allocation23 + $0x28] sm:$0xff] }
0x11d9   :  { %v2104_v36 = vpop.xlane.xlu1 %2103 }
0x11da   :  { %v2106_v35 = vsub.f32 %v2098_v29, %v2104_v36  ;;  %v2260_v40 = vpop.f32.mrf.mxu0  ;;  %v2443_v36 = vld [vmem:[#allocation23 + $0x20] sm:$0xff] }
0x11db   :  { %v2264_v42 = vmul.f32 0.35355338, %v2260_v40 }
0x11dc   :  { %v2109_v37 = vmul.f32 1.442695, %v2106_v35 }
0x11dd   :  { %v2266_v45 = vmul.f32 %v2264_v42, %v4177_v28 }
0x11de   :  { %3171 = vpow2.f32 %v2109_v37 }
0x11df   :  { %3173 = vpow2.f32 %v2275_v44  ;;  %v2270_v46 = vsel %vm730_vm8, %v2266_v45, -inf }
0x11e4   :  { %v3172_v41 = vpop.eup %3171 }
0x11e5   :  { %v2114_v43 = vsel %vm730_vm8, %v3172_v41, 0.0  ;;  %v3174_v48 = vpop.eup %3173 }
0x11e6   :  { %2115 = vadd.xlane.f32.xlu2 %v2114_v43  ;;  %v2279_v49 = vsel %vm730_vm8, %v3174_v48, 0.0 }
0x11ee   :  { %2271 = vmax.xlane.f32.xlu2 %v2270_v46 }
0x11f1   :  { %v2151_v47 = vpop.permute.xlu1 %2150 }
0x11f2   :  { %2171 = vmatpush.msrb.mxu2 %v2151_v47 }
0x11f6   :  { %2280 = vadd.xlane.f32.xlu2 %v2279_v49  ;;  %v3081_v49 = vld [vmem:[#allocation17 + $0x1] ss:$0 sm:$0xff] }
0x120e   :  { %2292 = vrot.lane.b32.xlu2 %v4310_v52, %s3820_s9 }
0x1259   :  { %v2116_v50 = vpop.xlane.xlu2 %2115 }
0x125a   :  { %3175 = vrcp.f32 %v2116_v50 }
0x1260   :  { %v3176_v51 = vpop.eup %3175 }
0x1261   :  { %v2120_v55 = vmul.f32 %v3176_v51, %v3172_v41  ;;  %v2272_v56 = vpop.xlane.xlu2 %2271 }
0x1262   :  { %v2274_v61 = vsub.f32 %v2266_v45, %v2272_v56 }
0x1263   :  { %2996 = vst.msk [vmem:[%s4579_s2 + $0x28] sm:$0xff] %vm730_vm8, %v2120_v55  ;;  %2998 = vmatmul.msk.f32.vlgmr.msrb.gmra.mxu2 %vm730_vm8, %v2120_v55  ;;  %v3082_v55 = vld [vmem:[#allocation19 + $0x1] ss:$0 sm:$0xff] }
0x1264   :  { %v2277_v28 = vmul.f32 1.442695, %v2274_v61 }
0x1266   :  { %3177 = vpow2.f32 %v2277_v28 }
0x1269   :  { %v2281_v58 = vpop.xlane.xlu2 %2280 }
0x126a   :  { %3179 = vrcp.f32 %v2281_v58 }
0x126c   :  { %v3178_v60 = vpop.eup %3177 }
0x126d   :  { %v2282_v52 = vsel %vm730_vm8, %v3178_v60, 0.0 }
0x126e   :  { %2283 = vadd.xlane.f32.xlu0 %v2282_v52 }
0x1270   :  { %v3180_v62 = vpop.eup %3179 }
0x1271   :  { %v2287_v63 = vmul.f32 %v3180_v62, %v3174_v48  ;;  %v2293_v1 = vpop.permute.xlu2 %2292 }
0x1272   :  { %2313 = vmatpush.msra.mxu2 %v2293_v1 }
0x1273   :  { %3005 = vst.msk [vmem:[%s4579_s2 + $0x30] sm:$0xff] %vm730_vm8, %v2287_v63  ;;  %3007 = vmatmul.msk.f32.vlgmr.msra.gmra.mxu2 %vm730_vm8, %v2287_v63 }
0x1274   :  { %2470 = vmatpush.msrb.mxu2 %v2446_v31 }
0x1282   :  { %2318 = vrot.lane.b32.xlu0 %v4323_v27, %s3820_s9  ;;  %v2004_v27 = vpop.f32.mrf.mxu3 }
0x1283   :  { %v2034_v53 = vadd.f32 %v4407_v13, %v2004_v27 }
0x128a   :  { %v2007_v59 = vpop.f32.mrf.mxu3 }
0x128b   :  { %v2037_v20 = vadd.f32 %v4409_v14, %v2007_v59  ;;  %v2445_v14 = vld [vmem:[#allocation23 + $0x30] sm:$0xff] }
0x128c   :  { %2471 = vmatpush.msrb.mxu2 %v2445_v14 }
0x128e   :  { %2472 = vmatpush.msrb.mxu2 %v2444_v34 }
0x1290   :  { %2473 = vmatpush.msrb.mxu2 %v2443_v36 }
0x1292   :  { %v2199_v9 = vpop.f32.mrf.mxu3 }
0x1293   :  { %v2205_v3 = vadd.f32 %v2199_v9, %v2034_v53 }
0x12e1   :  { %v2284_v0 = vpop.xlane.xlu0 %2283 }
0x12e2   :  { %3181 = vrcp.f32 %v2284_v0 }
0x12e6   :  { %v2173_v4 = vpop.f32.mrf.mxu2 }
0x12e7   :  { %3000 = vmatmul.msk.f32.gmra.mxu3 %vm730_vm8, %v2173_v4 }
0x12e8   :  { %v3182_v5 = vpop.eup %3181 }
0x12e9   :  { %v2288_v6 = vmul.f32 %v3182_v5, %v3178_v60 }
0x12eb   :  { %3006 = vst.msk [vmem:[%s4579_s2 + $0x38] sm:$0xff] %vm730_vm8, %v2288_v6  ;;  %s2894_s2 = sshll.u32 %s4581_s23, 4  ;;  %s2895_s2 = int_to_ptr.hbm [resolvable:$true] %s2894_s2 }
0x12f4   :  { %v2319_v7 = vpop.permute.xlu0 %2318 }
0x12f5   :  { %2339 = vmatpush.msra.mxu1 %v2319_v7 }
0x12f6   :  { %v2315_v8 = vpop.f32.mrf.mxu2  ;;  %3008 = vmatmul.msk.f32.vlgmr.msra.gmra.mxu1 %vm730_vm8, %v2288_v6 }
0x12f7   :  { %3009 = vmatmul.msk.f32.vlgmr.msra.gmra.mxu0 %vm730_vm8, %v2315_v8  ;;  %v3083_v8 = vld [vmem:[#allocation25 + $0x1] ss:$0 sm:$0xff] }
0x136a   :  { %v2202_v19 = vpop.f32.mrf.mxu3 }
0x136b   :  { %v2206_v21 = vadd.f32 %v2202_v19, %v2037_v20  ;;  %v2573_v19 = vld [vmem:[#allocation26 + $0x38] sm:$0xff] }
0x136c   :  { %2597 = vmatpush.msrb.mxu3 %v2573_v19 }
0x1373   :  { %v2341_v10 = vpop.f32.mrf.mxu1 }
0x1374   :  { %v2367_v11 = vpop.f32.mrf.mxu0  ;;  %3010 = vmatmul.msk.f32.gmra.mxu0 %vm730_vm8, %v2341_v10 }
0x1375   :  { %v2373_v12 = vadd.f32 %v2367_v11, %v2205_v3 }
0x1377   :  { %v2380_v32 = vadd.f32 %v3080_v16, %v2373_v12 }
0x1379   :  { %v2382_v15 = vadd.f32 %v2380_v32, %v4301_v38 }
0x137b   :  { %v2388_v57 = vsel %vm624_vm0, %v2382_v15, 0.0 }
0x137c   :  { %2389 = vadd.xlane.f32.xlu1 %v2388_v57 }
0x13ef   :  { %v2390_v54 = vpop.xlane.xlu1 %2389 }
0x13f0   :  { %v2394_v13 = vmul.f32 %v2390_v54, %v4116_v18 }
0x13f1   :  { %v2370_v22 = vpop.f32.mrf.mxu0 }
0x13f2   :  { %v2396_v23 = vsub.f32 %v2382_v15, %v2394_v13  ;;  %v2374_v24 = vadd.f32 %v2370_v22, %v2206_v21  ;;  %v2572_v21 = vld [vmem:[#allocation26 + $0x30] sm:$0xff]  ;;  %v2571_v22 = vld [vmem:[#allocation26 + $0x28] sm:$0xff] }
0x13f3   :  { %2598 = vmatpush.msrb.mxu3 %v2572_v21 }
0x13f4   :  { %v2381_v17 = vadd.f32 %v3080_v16, %v2374_v24  ;;  %v2398_v25 = vmul.f32 %v2396_v23, %v2396_v23  ;;  %v2570_v24 = vld [vmem:[#allocation26 + $0x20] sm:$0xff] }
0x13f5   :  { %2599 = vmatpush.msrb.mxu3 %v2571_v22 }
0x13f6   :  { %v2400_v29 = vsel %vm624_vm0, %v2398_v25, 0.0  ;;  %v2383_v30 = vadd.f32 %v2381_v17, %v4306_v26 }
0x13f7   :  { %2401 = vadd.xlane.f32.xlu0 %v2400_v29  ;;  %2600 = vmatpush.msrb.mxu3 %v2570_v24 }
0x13f8   :  { %v2391_v38 = vsel %vm624_vm0, %v2383_v30, 0.0 }
0x13f9   :  { %2392 = vadd.xlane.f32.xlu2 %v2391_v38 }
0x146a   :  { %v2402_v35 = vpop.xlane.xlu0 %2401 }
0x146b   :  { %v2406_v37 = vmul.f32 %v2402_v35, %v4116_v18 }
0x146c   :  { %v2393_v39 = vpop.xlane.xlu2 %2392 }
0x146d   :  { %v2408_v40 = vadd.f32 1e-05, %v2406_v37  ;;  %v2395_v41 = vmul.f32 %v2393_v39, %v4116_v18 }
0x146f   :  { %3183 = vrsqrt.f32 %v2408_v40  ;;  %v2397_v26 = vsub.f32 %v2383_v30, %v2395_v41  ;;  %vm2416_vm2 = vweird.f32 %v2408_v40 }
0x1471   :  { %v2399_v33 = vmul.f32 %v2397_v26, %v2397_v26 }
0x1473   :  { %v2403_v42 = vsel %vm624_vm0, %v2399_v33, 0.0 }
0x1474   :  { %2404 = vadd.xlane.f32.xlu1 %v2403_v42 }
0x1475   :  { %v3184_v43 = vpop.eup %3183 }
0x1476   :  { %v2411_v44 = vmul.f32 %v3184_v43, %v2408_v40  ;;  %vm2417_vm1 = vweird.f32 %v3184_v43 }
0x1477   :  { %vm2418_vm3 = vmor %vm2416_vm2, %vm2417_vm1 }
0x1478   :  { %v2412_v45 = vmul.f32 %v3184_v43, %v2411_v44 }
0x147a   :  { %v2413_v46 = vmul.f32 0.5, %v2412_v45 }
0x147c   :  { %v2414_v47 = vsub.f32 1.5, %v2413_v46 }
0x147e   :  { %v2415_v48 = vmul.f32 %v3184_v43, %v2414_v47 }
0x1480   :  { %v2419_v50 = vsel %vm2418_vm3, %v3184_v43, %v2415_v48 }
0x1481   :  { %v2430_v51 = vmul.f32 %v2419_v50, %v2396_v23 }
0x1483   :  { %v2435_v56 = vmul.f32 %v3081_v49, %v2430_v51 }
0x1485   :  { %v4463_v61 = vadd.f32 %v3082_v55, %v2435_v56 }
0x1487   :  { %3011 = vmatmul.msk.f32.vlgmr.msrb.gmra.mxu2 %vm624_vm0, %v4463_v61 }
0x14e7   :  { %v2405_v28 = vpop.xlane.xlu1 %2404 }
0x14e8   :  { %v2407_v58 = vmul.f32 %v2405_v28, %v4116_v18 }
0x14ea   :  { %v2409_v60 = vadd.f32 1e-05, %v2407_v58 }
0x14ec   :  { %3185 = vrsqrt.f32 %v2409_v60  ;;  %vm2426_vm5 = vweird.f32 %v2409_v60 }
0x14f2   :  { %v3186_v52 = vpop.eup %3185 }
0x14f3   :  { %v2421_v62 = vmul.f32 %v3186_v52, %v2409_v60  ;;  %vm2427_vm4 = vweird.f32 %v3186_v52 }
0x14f4   :  { %vm2428_vm6 = vmor %vm2426_vm5, %vm2427_vm4 }
0x14f5   :  { %v2422_v63 = vmul.f32 %v3186_v52, %v2421_v62 }
0x14f7   :  { %v2423_v1 = vmul.f32 0.5, %v2422_v63 }
0x14f9   :  { %v2424_v2 = vsub.f32 1.5, %v2423_v1 }
0x14fb   :  { %v2425_v0 = vmul.f32 %v3186_v52, %v2424_v2 }
0x14fd   :  { %v2429_v4 = vsel %vm2428_vm6, %v3186_v52, %v2425_v0 }
0x14fe   :  { %v2431_v5 = vmul.f32 %v2429_v4, %v2397_v26 }
0x1500   :  { %v2436_v6 = vmul.f32 %v3081_v49, %v2431_v5 }
0x1502   :  { %v4468_v7 = vadd.f32 %v3082_v55, %v2436_v6 }
0x1504   :  { %3012 = vmatmul.msk.f32.gmra.mxu2 %vm624_vm0, %v4468_v7 }
0x150a   :  { %v2475_v27 = vpop.f32.mrf.mxu2 }
0x150b   :  { %v2476_v59 = vadd.f32 %v3083_v8, %v2475_v27 }
0x150d   :  { %v2483_v9 = vmul.f32 0.70710677, %v2476_v59  ;;  %v2481_v48 = vmul.f32 0.5, %v2476_v59 }
0x150f   :  { %v2485_v53 = vmul.f32 %v2483_v9, %v2483_v9 }
0x1511   :  { %v2486_v3 = vmin.f32 %v2485_v53, 16.0 }
0x1513   :  { %v2487_v10 = vmul.f32 2.1237322e-06, %v2486_v3  ;;  %v2498_v16 = vmul.f32 3.8918573e-05, %v2486_v3 }
0x1515   :  { %v2488_v11 = vadd.f32 0.00028619796, %v2487_v10  ;;  %v2499_v12 = vadd.f32 0.001143296, %v2498_v16 }
0x1517   :  { %v2489_v32 = vmul.f32 %v2488_v11, %v2486_v3  ;;  %v2500_v15 = vmul.f32 %v2499_v12, %v2486_v3 }
0x1519   :  { %v2501_v57 = vadd.f32 0.014752088, %v2500_v15  ;;  %v2490_v20 = vadd.f32 0.0036580483, %v2489_v32 }
0x151b   :  { %v2502_v54 = vmul.f32 %v2501_v57, %v2486_v3  ;;  %v2491_v23 = vmul.f32 %v2490_v20, %v2486_v3 }
0x151d   :  { %v2503_v13 = vadd.f32 0.112945676, %v2502_v54  ;;  %v2492_v29 = vadd.f32 0.05243302, %v2491_v23 }
0x151f   :  { %v2504_v17 = vmul.f32 %v2503_v13, %v2486_v3  ;;  %v2493_v31 = vmul.f32 %v2492_v29, %v2486_v3 }
0x1521   :  { %v2505_v25 = vadd.f32 0.4994258, %v2504_v17  ;;  %v2494_v14 = vadd.f32 0.18741608, %v2493_v31  ;;  %v3084_v31 = vld [vmem:[#allocation28 + $0x1] ss:$0 sm:$0xff] }
0x1523   :  { %v2506_v30 = vmul.f32 %v2505_v25, %v2486_v3  ;;  %v2495_v36 = vmul.f32 %v2494_v14, %v2486_v3 }
0x1525   :  { %v2507_v38 = vadd.f32 1.0, %v2506_v30  ;;  %v2496_v40 = vadd.f32 1.1283791, %v2495_v36 }
0x1527   :  { %3187 = vrcp.f32 %v2507_v38  ;;  %v2519_v39 = vand.u32 2147483648, %v2507_v38  ;;  %v2517_v26 = vand.u32 2147483647, %v2507_v38  ;;  %vm2513_vm9 = vweird.f32 %v2507_v38 }
0x1528   :  { %v2497_v43 = vmul.f32 %v2496_v40, %v2483_v9 }
0x1529   :  { %v2520_v42 = vor.u32 1.1754944e-38, %v2519_v39  ;;  %vm2518_vm11 = vcmp.eq.f32.partialorder %v2517_v26, 8.507059e+37 }
0x152d   :  { %v3188_v34 = vpop.eup %3187 }
0x152e   :  { %v2509_v35 = vmul.f32 %v3188_v34, %v2507_v38  ;;  %vm2514_vm7 = vweird.f32 %v3188_v34 }
0x152f   :  { %vm2515_vm10 = vmor %vm2513_vm9, %vm2514_vm7 }
0x1530   :  { %v2510_v37 = vsub.f32 1.0, %v2509_v35 }
0x1532   :  { %v2511_v41 = vmul.f32 %v3188_v34, %v2510_v37 }
0x1534   :  { %v2512_v33 = vadd.f32 %v3188_v34, %v2511_v41 }
0x1536   :  { %v2516_v44 = vsel %vm2515_vm10, %v3188_v34, %v2512_v33 }
0x1537   :  { %v2521_v45 = vsel %vm2518_vm11, %v2520_v42, %v2516_v44 }
0x1538   :  { %v2522_v46 = vmul.f32 %v2521_v45, %v2497_v43  ;;  %v2671_v45 = vld [vmem:[#allocation29 + $0x18] sm:$0xff] }
0x1539   :  { %2694 = vmatpush.msrb.mxu1 %v2671_v45 }
0x153a   :  { %v3013_v47 = vclamps-f32 %v2522_v46, 1.0  ;;  %v2669_v46 = vld [vmem:[#allocation29 + $0x8] sm:$0xff] }
0x153c   :  { %v2565_v49 = vadd.f32 1.0, %v3013_v47  ;;  %v2668_v47 = vld [vmem:[#allocation29] sm:$0xff] }
0x153e   :  { %v2567_v50 = vmul.f32 %v2565_v49, %v2481_v48 }
0x1540   :  { %3015 = vmatmul.msk.f32.vlgmr.msrb.gmra.mxu3 %vm624_vm0, %v2567_v50 }
0x1587   :  { %v2478_v51 = vpop.f32.mrf.mxu2 }
0x1588   :  { %v2479_v55 = vadd.f32 %v3083_v8, %v2478_v51 }
0x158a   :  { %v2484_v56 = vmul.f32 0.70710677, %v2479_v55  ;;  %v2482_v29 = vmul.f32 0.5, %v2479_v55 }
0x158c   :  { %v2525_v28 = vmul.f32 %v2484_v56, %v2484_v56 }
0x158e   :  { %v2526_v58 = vmin.f32 %v2525_v28, 16.0 }
0x1590   :  { %v2527_v60 = vmul.f32 2.1237322e-06, %v2526_v58  ;;  %v2538_v52 = vmul.f32 3.8918573e-05, %v2526_v58 }
0x1592   :  { %v2528_v62 = vadd.f32 0.00028619796, %v2527_v60  ;;  %v2539_v63 = vadd.f32 0.001143296, %v2538_v52 }
0x1594   :  { %v2529_v1 = vmul.f32 %v2528_v62, %v2526_v58  ;;  %v2540_v2 = vmul.f32 %v2539_v63, %v2526_v58 }
0x1596   :  { %v2541_v0 = vadd.f32 0.014752088, %v2540_v2  ;;  %v2530_v4 = vadd.f32 0.0036580483, %v2529_v1  ;;  %v3085_v2 = vld [vmem:[#allocation20 + $0x1] ss:$0 sm:$0xff] }
0x1598   :  { %v2542_v5 = vmul.f32 %v2541_v0, %v2526_v58  ;;  %v2531_v27 = vmul.f32 %v2530_v4, %v2526_v58 }
0x159a   :  { %v2543_v6 = vadd.f32 0.112945676, %v2542_v5  ;;  %v2532_v53 = vadd.f32 0.05243302, %v2531_v27  ;;  %v3086_v5 = vld [vmem:[#allocation22 + $0x1] ss:$0 sm:$0xff] }
0x159c   :  { %v2544_v59 = vmul.f32 %v2543_v6, %v2526_v58  ;;  %v2533_v8 = vmul.f32 %v2532_v53, %v2526_v58 }
0x159e   :  { %v2545_v9 = vadd.f32 0.4994258, %v2544_v59  ;;  %v2534_v16 = vadd.f32 0.18741608, %v2533_v8 }
0x15a0   :  { %v2546_v3 = vmul.f32 %v2545_v9, %v2526_v58  ;;  %v2535_v12 = vmul.f32 %v2534_v16, %v2526_v58 }
0x15a2   :  { %v2547_v10 = vadd.f32 1.0, %v2546_v3  ;;  %v2536_v19 = vadd.f32 1.1283791, %v2535_v12 }
0x15a4   :  { %3189 = vrcp.f32 %v2547_v10  ;;  %v2559_v57 = vand.u32 2147483648, %v2547_v10  ;;  %v2557_v54 = vand.u32 2147483647, %v2547_v10  ;;  %vm2553_vm13 = vweird.f32 %v2547_v10 }
0x15a5   :  { %v2537_v22 = vmul.f32 %v2536_v19, %v2484_v56  ;;  %v3087_v19 = vld [vmem:[#allocation31] ss:$0 sm:$0xff] }
0x15a6   :  { %v2560_v13 = vor.u32 1.1754944e-38, %v2559_v57  ;;  %vm2558_vm15 = vcmp.eq.f32.partialorder %v2557_v54, 8.507059e+37 }
0x15aa   :  { %v3190_v11 = vpop.eup %3189 }
0x15ab   :  { %v2549_v32 = vmul.f32 %v3190_v11, %v2547_v10  ;;  %vm2554_vm12 = vweird.f32 %v3190_v11 }
0x15ac   :  { %vm2555_vm14 = vmor %vm2553_vm13, %vm2554_vm12 }
0x15ad   :  { %v2550_v15 = vsub.f32 1.0, %v2549_v32 }
0x15af   :  { %v2551_v20 = vmul.f32 %v3190_v11, %v2550_v15 }
0x15b1   :  { %v2552_v21 = vadd.f32 %v3190_v11, %v2551_v20 }
0x15b3   :  { %v2556_v23 = vsel %vm2555_vm14, %v3190_v11, %v2552_v21 }
0x15b4   :  { %v2561_v24 = vsel %vm2558_vm15, %v2560_v13, %v2556_v23 }
0x15b5   :  { %v2562_v17 = vmul.f32 %v2561_v24, %v2537_v22 }
0x15b7   :  { %v3014_v25 = vclamps-f32 %v2562_v17, 1.0 }
0x15b9   :  { %v2566_v30 = vadd.f32 1.0, %v3014_v25 }
0x15bb   :  { %v2568_v38 = vmul.f32 %v2566_v30, %v2482_v29 }
0x15bd   :  { %3016 = vmatmul.msk.f32.gmra.mxu3 %vm624_vm0, %v2568_v38 }
0x15c3   :  { %v2602_v14 = vpop.f32.mrf.mxu3 }
0x15c4   :  { %v2603_v34 = vadd.f32 %v3084_v31, %v2602_v14 }
0x15c6   :  { %v2608_v36 = vadd.f32 %v2603_v34, %v4463_v61  ;;  %v2670_v61 = vld [vmem:[#allocation29 + $0x10] sm:$0xff] }
0x15c7   :  { %2695 = vmatpush.msrb.mxu1 %v2670_v61 }
0x15c8   :  { %v2614_v35 = vsel %vm624_vm0, %v2608_v36, 0.0 }
0x15c9   :  { %2615 = vadd.xlane.f32.xlu2 %v2614_v35  ;;  %2696 = vmatpush.msrb.mxu1 %v2669_v46 }
0x15cb   :  { %2697 = vmatpush.msrb.mxu1 %v2668_v47 }
0x163c   :  { %v2616_v37 = vpop.xlane.xlu2 %2615 }
0x163d   :  { %v2620_v39 = vmul.f32 %v2616_v37, %v4116_v18 }
0x163f   :  { %v2622_v40 = vsub.f32 %v2608_v36, %v2620_v39 }
0x1640   :  { %v2605_v41 = vpop.f32.mrf.mxu3 }
0x1641   :  { %v2606_v26 = vadd.f32 %v3084_v31, %v2605_v41  ;;  %v2624_v33 = vmul.f32 %v2622_v40, %v2622_v40 }
0x1643   :  { %v2626_v42 = vsel %vm624_vm0, %v2624_v33, 0.0  ;;  %v2609_v43 = vadd.f32 %v2606_v26, %v4468_v7 }
0x1644   :  { %2627 = vadd.xlane.f32.xlu2 %v2626_v42 }
0x1645   :  { %v2617_v44 = vsel %vm624_vm0, %v2609_v43, 0.0 }
0x1646   :  { %2618 = vadd.xlane.f32.xlu1 %v2617_v44 }
0x16b7   :  { %v2628_v48 = vpop.xlane.xlu2 %2627 }
0x16b8   :  { %v2632_v49 = vmul.f32 %v2628_v48, %v4116_v18 }
0x16b9   :  { %v2619_v50 = vpop.xlane.xlu1 %2618 }
0x16ba   :  { %v2634_v51 = vadd.f32 1e-05, %v2632_v49  ;;  %v2621_v55 = vmul.f32 %v2619_v50, %v4116_v18 }
0x16bc   :  { %3191 = vrsqrt.f32 %v2634_v51  ;;  %v2623_v7 = vsub.f32 %v2609_v43, %v2621_v55  ;;  %vm2642_vm2 = vweird.f32 %v2634_v51 }
0x16be   :  { %v2625_v56 = vmul.f32 %v2623_v7, %v2623_v7 }
0x16c0   :  { %v2629_v28 = vsel %vm624_vm0, %v2625_v56, 0.0 }
0x16c1   :  { %2630 = vadd.xlane.f32.xlu0 %v2629_v28 }
0x16c2   :  { %v3192_v58 = vpop.eup %3191 }
0x16c3   :  { %v2637_v60 = vmul.f32 %v3192_v58, %v2634_v51  ;;  %vm2643_vm1 = vweird.f32 %v3192_v58 }
0x16c4   :  { %vm2644_vm3 = vmor %vm2642_vm2, %vm2643_vm1 }
0x16c5   :  { %v2638_v52 = vmul.f32 %v3192_v58, %v2637_v60 }
0x16c7   :  { %v2639_v62 = vmul.f32 0.5, %v2638_v52 }
0x16c9   :  { %v2640_v63 = vsub.f32 1.5, %v2639_v62 }
0x16cb   :  { %v2641_v1 = vmul.f32 %v3192_v58, %v2640_v63 }
0x16cd   :  { %v2645_v0 = vsel %vm2644_vm3, %v3192_v58, %v2641_v1 }
0x16ce   :  { %v2656_v4 = vmul.f32 %v2645_v0, %v2622_v40 }
0x16d0   :  { %v2661_v6 = vmul.f32 %v3085_v2, %v2656_v4 }
0x16d2   :  { %v2666_v27 = vadd.f32 %v3086_v5, %v2661_v6 }
0x16d4   :  { %3017 = vmatmul.msk.f32.vlgmr.msrb.gmra.mxu1 %vm624_vm0, %v2666_v27 }
0x1734   :  { %v2631_v59 = vpop.xlane.xlu0 %2630 }
0x1735   :  { %v2633_v9 = vmul.f32 %v2631_v59, %v4116_v18 }
0x1737   :  { %v2635_v53 = vadd.f32 1e-05, %v2633_v9 }
0x1739   :  { %3193 = vrsqrt.f32 %v2635_v53  ;;  %vm2652_vm5 = vweird.f32 %v2635_v53 }
0x173f   :  { %v3194_v3 = vpop.eup %3193 }
0x1740   :  { %v2647_v10 = vmul.f32 %v3194_v3, %v2635_v53  ;;  %vm2653_vm4 = vweird.f32 %v3194_v3 }
0x1741   :  { %vm2654_vm6 = vmor %vm2652_vm5, %vm2653_vm4 }
0x1742   :  { %v2648_v8 = vmul.f32 %v3194_v3, %v2647_v10 }
0x1744   :  { %v2649_v16 = vmul.f32 0.5, %v2648_v8 }
0x1746   :  { %v2650_v11 = vsub.f32 1.5, %v2649_v16 }
0x1748   :  { %v2651_v12 = vmul.f32 %v3194_v3, %v2650_v11 }
0x174a   :  { %v2655_v32 = vsel %vm2654_vm6, %v3194_v3, %v2651_v12 }
0x174b   :  { %v2657_v15 = vmul.f32 %v2655_v32, %v2623_v7 }
0x174d   :  { %v2662_v57 = vmul.f32 %v3085_v2, %v2657_v15 }
0x174f   :  { %v2667_v20 = vadd.f32 %v3086_v5, %v2662_v57 }
0x1751   :  { %v2699_v54 = vpop.f32.mrf.mxu1  ;;  %3018 = vmatmul.msk.f32.gmra.mxu1 %vm624_vm0, %v2667_v20 }
0x1752   :  { %v2700_v21 = vadd.f32 %v3087_v19, %v2699_v54 }
0x1754   :  { %v2707_v13 = vmul.f32 0.70710677, %v2700_v21  ;;  %v2705_v60 = vmul.f32 0.5, %v2700_v21 }
0x1756   :  { %v2709_v22 = vmul.f32 %v2707_v13, %v2707_v13 }
0x1758   :  { %v2710_v23 = vmin.f32 %v2709_v22, 16.0 }
0x175a   :  { %v2711_v24 = vmul.f32 2.1237322e-06, %v2710_v23  ;;  %v2722_v17 = vmul.f32 3.8918573e-05, %v2710_v23 }
0x175c   :  { %v2712_v25 = vadd.f32 0.00028619796, %v2711_v24  ;;  %v2723_v29 = vadd.f32 0.001143296, %v2722_v17 }
0x175e   :  { %v2713_v30 = vmul.f32 %v2712_v25, %v2710_v23  ;;  %v2724_v38 = vmul.f32 %v2723_v29, %v2710_v23 }
0x1760   :  { %v2725_v31 = vadd.f32 0.014752088, %v2724_v38  ;;  %v2714_v14 = vadd.f32 0.0036580483, %v2713_v30 }
0x1762   :  { %v2726_v34 = vmul.f32 %v2725_v31, %v2710_v23  ;;  %v2715_v35 = vmul.f32 %v2714_v14, %v2710_v23 }
0x1764   :  { %v2727_v36 = vadd.f32 0.112945676, %v2726_v34  ;;  %v2716_v40 = vadd.f32 0.05243302, %v2715_v35 }
0x1766   :  { %v2728_v37 = vmul.f32 %v2727_v36, %v2710_v23  ;;  %v2717_v33 = vmul.f32 %v2716_v40, %v2710_v23 }
0x1768   :  { %v2729_v39 = vadd.f32 0.4994258, %v2728_v37  ;;  %v2718_v42 = vadd.f32 0.18741608, %v2717_v33 }
0x176a   :  { %v2730_v41 = vmul.f32 %v2729_v39, %v2710_v23  ;;  %v2719_v44 = vmul.f32 %v2718_v42, %v2710_v23 }
0x176c   :  { %v2731_v26 = vadd.f32 1.0, %v2730_v41  ;;  %v2720_v47 = vadd.f32 1.1283791, %v2719_v44 }
0x176e   :  { %3195 = vrcp.f32 %v2731_v26  ;;  %v2743_v46 = vand.u32 2147483648, %v2731_v26  ;;  %v2741_v49 = vand.u32 2147483647, %v2731_v26  ;;  %vm2737_vm9 = vweird.f32 %v2731_v26 }
0x176f   :  { %v2721_v55 = vmul.f32 %v2720_v47, %v2707_v13  ;;  %v2850_v47 = vld [vmem:[%s4580_s8 + $0x8] sm:$0xff] }
0x1770   :  { %v2744_v51 = vor.u32 1.1754944e-38, %v2743_v46  ;;  %vm2742_vm11 = vcmp.eq.f32.partialorder %v2741_v49, 8.507059e+37  ;;  %v2851_v46 = vld [vmem:[%s4580_s8 + $0x10] sm:$0xff] }
0x1774   :  { %v3196_v43 = vpop.eup %3195 }
0x1775   :  { %v2733_v45 = vmul.f32 %v3196_v43, %v2731_v26  ;;  %vm2738_vm7 = vweird.f32 %v3196_v43 }
0x1776   :  { %vm2739_vm10 = vmor %vm2737_vm9, %vm2738_vm7 }
0x1777   :  { %v2734_v61 = vsub.f32 1.0, %v2733_v45 }
0x1779   :  { %v2735_v48 = vmul.f32 %v3196_v43, %v2734_v61  ;;  %v2852_v61 = vld [vmem:[%s4580_s8 + $0x18] sm:$0xff] }
0x177a   :  { %2875 = vmatpush.msrb.mxu0 %v2852_v61 }
0x177b   :  { %v2736_v50 = vadd.f32 %v3196_v43, %v2735_v48  ;;  %v2849_v48 = vld [vmem:[%s4580_s8] sm:$0xff] }
0x177c   :  { %2876 = vmatpush.msrb.mxu0 %v2851_v46 }
0x177d   :  { %v2740_v7 = vsel %vm2739_vm10, %v3196_v43, %v2736_v50 }
0x177e   :  { %v2745_v56 = vsel %vm2742_vm11, %v2744_v51, %v2740_v7  ;;  %2877 = vmatpush.msrb.mxu0 %v2850_v47 }
0x177f   :  { %v2746_v28 = vmul.f32 %v2745_v56, %v2721_v55 }
0x1780   :  { %2878 = vmatpush.msrb.mxu0 %v2849_v48 }
0x1781   :  { %v3019_v58 = vclamps-f32 %v2746_v28, 1.0 }
0x1783   :  { %v2789_v52 = vadd.f32 1.0, %v3019_v58 }
0x1785   :  { %v2791_v62 = vmul.f32 %v2789_v52, %v2705_v60 }
0x1787   :  { %v2795_v63 = vsel %vm624_vm0, %v2791_v62, 0.0 }
0x1788   :  { %2796 = vadd.xlane.f32.xlu1 %v2795_v63 }
0x17ce   :  { %v2702_v1 = vpop.f32.mrf.mxu1 }
0x17cf   :  { %v2703_v2 = vadd.f32 %v3087_v19, %v2702_v1 }
0x17d1   :  { %v2708_v0 = vmul.f32 0.70710677, %v2703_v2  ;;  %v2706_v26 = vmul.f32 0.5, %v2703_v2 }
0x17d3   :  { %v2749_v4 = vmul.f32 %v2708_v0, %v2708_v0 }
0x17d5   :  { %v2750_v5 = vmin.f32 %v2749_v4, 16.0 }
0x17d7   :  { %v2751_v6 = vmul.f32 2.1237322e-06, %v2750_v5  ;;  %v2762_v27 = vmul.f32 3.8918573e-05, %v2750_v5 }
0x17d9   :  { %v2752_v59 = vadd.f32 0.00028619796, %v2751_v6  ;;  %v2763_v9 = vadd.f32 0.001143296, %v2762_v27  ;;  %v3089_v6 = vld [vmem:[#allocation34] ss:$0 sm:$0xff] }
0x17db   :  { %v2753_v53 = vmul.f32 %v2752_v59, %v2750_v5  ;;  %v2764_v3 = vmul.f32 %v2763_v9, %v2750_v5 }
0x17dd   :  { %v2765_v10 = vadd.f32 0.014752088, %v2764_v3  ;;  %v2754_v8 = vadd.f32 0.0036580483, %v2753_v53 }
0x17df   :  { %v2766_v16 = vmul.f32 %v2765_v10, %v2750_v5  ;;  %v2755_v12 = vmul.f32 %v2754_v8, %v2750_v5 }
0x17e1   :  { %v2767_v11 = vadd.f32 0.112945676, %v2766_v16  ;;  %v2756_v57 = vadd.f32 0.05243302, %v2755_v12 }
0x17e3   :  { %v2768_v32 = vmul.f32 %v2767_v11, %v2750_v5  ;;  %v2757_v19 = vmul.f32 %v2756_v57, %v2750_v5 }
0x17e5   :  { %v2769_v15 = vadd.f32 0.4994258, %v2768_v32  ;;  %v2758_v21 = vadd.f32 0.18741608, %v2757_v19 }
0x17e7   :  { %v2770_v20 = vmul.f32 %v2769_v15, %v2750_v5  ;;  %v2759_v22 = vmul.f32 %v2758_v21, %v2750_v5 }
0x17e9   :  { %v2771_v54 = vadd.f32 1.0, %v2770_v20  ;;  %v2760_v25 = vadd.f32 1.1283791, %v2759_v22 }
0x17eb   :  { %3197 = vrcp.f32 %v2771_v54  ;;  %v2783_v17 = vand.u32 2147483648, %v2771_v54  ;;  %v2781_v30 = vand.u32 2147483647, %v2771_v54  ;;  %vm2777_vm13 = vweird.f32 %v2771_v54 }
0x17ec   :  { %v2761_v14 = vmul.f32 %v2760_v25, %v2708_v0  ;;  %v3088_v0 = vld [vmem:[#allocation32] ss:$0 sm:$0xff] }
0x17ed   :  { %v2784_v31 = vor.u32 1.1754944e-38, %v2783_v17  ;;  %vm2782_vm15 = vcmp.eq.f32.partialorder %v2781_v30, 8.507059e+37 }
0x17f1   :  { %v3198_v13 = vpop.eup %3197 }
0x17f2   :  { %v2773_v23 = vmul.f32 %v3198_v13, %v2771_v54  ;;  %vm2778_vm12 = vweird.f32 %v3198_v13  ;;  %v3090_v54 = vld [vmem:[#allocation35] ss:$0 sm:$0xff] }
0x17f3   :  { %vm2779_vm14 = vmor %vm2777_vm13, %vm2778_vm12 }
0x17f4   :  { %v2774_v24 = vsub.f32 1.0, %v2773_v23 }
0x17f6   :  { %v2775_v29 = vmul.f32 %v3198_v13, %v2774_v24 }
0x17f8   :  { %v2776_v38 = vadd.f32 %v3198_v13, %v2775_v29 }
0x17fa   :  { %v2780_v34 = vsel %vm2779_vm14, %v3198_v13, %v2776_v38 }
0x17fb   :  { %v2797_v36 = vpop.xlane.xlu1 %2796  ;;  %v2785_v35 = vsel %vm2782_vm15, %v2784_v31, %v2780_v34 }
0x17fc   :  { %v2801_v37 = vmul.f32 %v2797_v36, %v4116_v18  ;;  %v2786_v39 = vmul.f32 %v2785_v35, %v2761_v14 }
0x17fe   :  { %v2803_v40 = vsub.f32 %v2791_v62, %v2801_v37  ;;  %v3020_v41 = vclamps-f32 %v2786_v39, 1.0 }
0x1800   :  { %v2805_v33 = vmul.f32 %v2803_v40, %v2803_v40  ;;  %v2790_v42 = vadd.f32 1.0, %v3020_v41 }
0x1802   :  { %v2807_v43 = vsel %vm624_vm0, %v2805_v33, 0.0  ;;  %v2792_v44 = vmul.f32 %v2790_v42, %v2706_v26 }
0x1803   :  { %2808 = vadd.xlane.f32.xlu0 %v2807_v43 }
0x1804   :  { %v2798_v45 = vsel %vm624_vm0, %v2792_v44, 0.0 }
0x1805   :  { %2799 = vadd.xlane.f32.xlu2 %v2798_v45 }
0x1876   :  { %v2809_v49 = vpop.xlane.xlu0 %2808 }
0x1877   :  { %v2813_v50 = vmul.f32 %v2809_v49, %v4116_v18 }
0x1878   :  { %v2800_v51 = vpop.xlane.xlu2 %2799 }
0x1879   :  { %v2815_v55 = vadd.f32 1e-05, %v2813_v50  ;;  %v2802_v7 = vmul.f32 %v2800_v51, %v4116_v18 }
0x187b   :  { %3199 = vrsqrt.f32 %v2815_v55  ;;  %v2804_v56 = vsub.f32 %v2792_v44, %v2802_v7  ;;  %vm2823_vm2 = vweird.f32 %v2815_v55 }
0x187d   :  { %v2806_v28 = vmul.f32 %v2804_v56, %v2804_v56 }
0x187f   :  { %v2810_v58 = vsel %vm624_vm0, %v2806_v28, 0.0 }
0x1880   :  { %2811 = vadd.xlane.f32.xlu1 %v2810_v58 }
0x1881   :  { %v3200_v60 = vpop.eup %3199 }
0x1882   :  { %v2818_v52 = vmul.f32 %v3200_v60, %v2815_v55  ;;  %vm2824_vm1 = vweird.f32 %v3200_v60 }
0x1883   :  { %vm2825_vm3 = vmor %vm2823_vm2, %vm2824_vm1 }
0x1884   :  { %v2819_v62 = vmul.f32 %v3200_v60, %v2818_v52 }
0x1886   :  { %v2820_v63 = vmul.f32 0.5, %v2819_v62 }
0x1888   :  { %v2821_v1 = vsub.f32 1.5, %v2820_v63 }
0x188a   :  { %v2822_v2 = vmul.f32 %v3200_v60, %v2821_v1 }
0x188c   :  { %v2826_v4 = vsel %vm2825_vm3, %v3200_v60, %v2822_v2 }
0x188d   :  { %v2837_v5 = vmul.f32 %v2826_v4, %v2803_v40 }
0x188f   :  { %v2842_v27 = vmul.f32 %v3088_v0, %v2837_v5 }
0x1891   :  { %v2847_v59 = vadd.f32 %v3089_v6, %v2842_v27 }
0x1893   :  { %3021 = vmatmul.msk.f32.vlgmr.msrb.gmra.mxu0 %vm624_vm0, %v2847_v59 }
0x18f3   :  { %v2812_v9 = vpop.xlane.xlu1 %2811 }
0x18f4   :  { %v2814_v53 = vmul.f32 %v2812_v9, %v4116_v18 }
0x18f6   :  { %v2816_v3 = vadd.f32 1e-05, %v2814_v53 }
0x18f8   :  { %3201 = vrsqrt.f32 %v2816_v3  ;;  %vm2833_vm5 = vweird.f32 %v2816_v3 }
0x18fe   :  { %v3202_v10 = vpop.eup %3201 }
0x18ff   :  { %v2828_v8 = vmul.f32 %v3202_v10, %v2816_v3  ;;  %vm2834_vm4 = vweird.f32 %v3202_v10 }
0x1900   :  { %vm2835_vm6 = vmor %vm2833_vm5, %vm2834_vm4 }
0x1901   :  { %v2829_v16 = vmul.f32 %v3202_v10, %v2828_v8 }
0x1903   :  { %v2830_v11 = vmul.f32 0.5, %v2829_v16 }
0x1905   :  { %v2831_v12 = vsub.f32 1.5, %v2830_v11 }
0x1907   :  { %v2832_v32 = vmul.f32 %v3202_v10, %v2831_v12 }
0x1909   :  { %v2836_v15 = vsel %vm2835_vm6, %v3202_v10, %v2832_v32 }
0x190a   :  { %v2838_v57 = vmul.f32 %v2836_v15, %v2804_v56 }
0x190c   :  { %v2843_v20 = vmul.f32 %v3088_v0, %v2838_v57 }
0x190e   :  { %v2848_v19 = vadd.f32 %v3089_v6, %v2843_v20 }
0x1910   :  { %v2880_v21 = vpop.f32.mrf.mxu0  ;;  %3022 = vmatmul.msk.f32.gmra.mxu0 %vm624_vm0, %v2848_v19 }
0x1911   :  { %v2881_v18 = vadd.f32 %v3090_v54, %v2880_v21 }
0x1913   :  { %2886 = vst.msk [vmem:[#allocation37] sm:$0xff] %vm730_vm8, %v2881_v18 }
0x198d   :  { %v2883_v13 = vpop.f32.mrf.mxu0 }
0x198e   :  { %v2884_v22 = vadd.f32 %v3090_v54, %v2883_v13 }
0x1990   :  { %2887 = vst.msk [vmem:[#allocation37 + $0x8] sm:$0xff] %vm730_vm8, %v2884_v22 }
0x1991   :  { %2900 = dma.vmem_to_hbm [thread:$0]  %s2893_s6, 256, %s2895_s2, [#allocation4], %s3785_s10, %s3785_s10, %s3786_s0  }
0x1992   :  { %3779 = dma.done.wait [#allocation4], 256  }
0x1993   :  { %3780 = vsyncadd [#allocation4], 4294967040 }
0x1994   :  { %2909 = vsyncpa [#allocation3], 1 }
0x1995   :  { %2910 = vsyncpa [#allocation6], 1 }
0x1996   :  { %2911 = vsyncpa [#allocation9], 1 }
0x1997   :  { %2912 = vsyncpa [#allocation12], 1 }
0x1998   :  { %2913 = vsyncpa [#allocation15], 1 }
0x1999   :  { %2914 = vsyncpa [#allocation18], 1 }
0x199a   :  { %2915 = vsyncpa [#allocation21], 1 }
0x199b   :  { %2916 = vsyncpa [#allocation24], 1 }
0x199c   :  { %2917 = vsyncpa [#allocation27], 1 }
0x199d   :  { %2918 = vsyncpa [#allocation30], 1 }
0x199e   :  { %2919 = vsyncpa [#allocation33], 1 }
0x199f   :  { %2920 = vsyncpa [#allocation36], 1 }
0x19a0   :  { %2921 = vsyncpa [#allocation4], 1 }

</bundles_post_ra>
